<compile_context>
chip_gen: v7x
topology: tpu7x:2x2x1
jax: 0.10.0
libtpu: 0.0.40
codegen_flags: <defaults>
</compile_context>

<pallas_src>
import jax
import jax.numpy as jnp
import numpy as np
from jax.experimental import pallas as pl
from jax.experimental.pallas import tpu as pltpu

BN_EPS = 1e-5


def _round_up(x, m):
    return (x + m - 1) // m * m


# ------------------------------ Pallas kernel ------------------------------ #
def _epilogue(acc, epi_ref):
    """bias -> ReLU -> BatchNorm affine. epi rows: 0=bias, 1=scale, 2=shift."""
    bias = epi_ref[0:1, :]
    scale = epi_ref[1:2, :]
    shift = epi_ref[2:3, :]
    return jnp.maximum(acc + bias, 0.0) * scale + shift


def _build_fused_kernel(meta):
    """meta: per-layer static tuples (ntaps, mop, cin, cout)."""

    def kernel(*refs):
        out_ref = refs[-1]
        # ---- layer 1: A (im2col'd in the wrapper) @ W, fused epilogue ----
        a_ref, w_ref, e_ref = refs[0], refs[1], refs[2]
        h = jnp.dot(a_ref[...], w_ref[...], preferred_element_type=jnp.float32)
        h = _epilogue(h, e_ref)
        # ---- layers 2..L: in-kernel patch gather (0/1 matmul) + per-tap matmuls ----
        pos = 3
        for (ntaps, mop, cin, cout) in meta[1:]:
            g_ref, w_ref, e_ref = refs[pos], refs[pos + 1], refs[pos + 2]
            pos += 3
            # Gather the (ntaps*mop, cin) patch rows from the previous activation.
            patches = jnp.dot(g_ref[...], h.astype(jnp.bfloat16),
                              preferred_element_type=jnp.float32)
            patches = patches.astype(jnp.bfloat16)
            acc = None
            for t in range(ntaps):
                part = jnp.dot(patches[t * mop:(t + 1) * mop, :],
                               w_ref[t * cin:(t + 1) * cin, :],
                               preferred_element_type=jnp.float32)
                acc = part if acc is None else acc + part
            h = _epilogue(acc, e_ref)
        out_ref[...] = h

    return kernel


# ------------------------------ host-side prep ----------------------------- #
def im2col(x_nhwc, kh, kw, stride, pad):
    # Only used for layer 1 (one tiny XLA fusion on the raw input).
    n, h, w, c = x_nhwc.shape
    xp = jnp.pad(x_nhwc, ((0, 0), (pad, pad), (pad, pad), (0, 0)))
    ho = (h + 2 * pad - kh) // stride + 1
    wo = (w + 2 * pad - kw) // stride + 1
    cols = []
    for i in range(kh):
        for j in range(kw):
            cols.append(xp[:, i:i + stride * ho:stride, j:j + stride * wo:stride, :])
    patches = jnp.concatenate(cols, axis=-1)          # (n, ho, wo, kh*kw*c)
    return patches.reshape(n * ho * wo, kh * kw * c), n, ho, wo


def init_params(key, input_nc, ngf=64, n_layers=3):
    # Mirrors FeatureExtraction.__init__ + weights_init_normal.
    cfg = [(input_nc, ngf, 4, 2, 1, True)]
    for i in range(n_layers):
        in_ngf = 2 ** i * ngf if 2 ** i * ngf < 512 else 512
        out_ngf = 2 ** (i + 1) * ngf if 2 ** i * ngf < 512 else 512
        cfg.append((in_ngf, out_ngf, 4, 2, 1, True))
    cfg.append((512, 512, 3, 1, 1, True))
    cfg.append((512, 512, 3, 1, 1, False))            # final Conv + ReLU, no BN

    layers = []
    for (cin, cout, k, s, p, has_bn) in cfg:
        key, kw_, kb_, kg_ = jax.random.split(key, 4)
        # Conv weight ~ N(0, 0.02); layout (KH, KW, Cin, Cout).
        w = 0.02 * jax.random.normal(kw_, (k, k, cin, cout), jnp.float32)
        # Conv bias keeps PyTorch default: U(-1/sqrt(fan_in), +1/sqrt(fan_in)).
        bound = 1.0 / float((cin * k * k) ** 0.5)
        b = jax.random.uniform(kb_, (cout,), jnp.float32, -bound, bound)
        gamma = (1.0 + 0.02 * jax.random.normal(kg_, (cout,), jnp.float32)) if has_bn else None
        beta = jnp.zeros((cout,), jnp.float32) if has_bn else None
        rmean = jnp.zeros((cout,), jnp.float32) if has_bn else None   # running stats
        rvar = jnp.ones((cout,), jnp.float32) if has_bn else None
        layers.append(dict(w=w, b=b, gamma=gamma, beta=beta, rmean=rmean, rvar=rvar,
                           k=k, s=s, p=p, cin=cin, cout=cout, has_bn=has_bn))
    return layers


def pack_for_input(raw_layers, n_batch, h_in, w_in):
    """Specialize weights / gather matrices / epilogues for a given input size."""
    packed = []
    H, W = h_in, w_in
    m_in_stored = None
    for li, lp in enumerate(raw_layers):
        k, s, p = lp["k"], lp["s"], lp["p"]
        cin, cout = lp["cin"], lp["cout"]
        ho = (H + 2 * p - k) // s + 1
        wo = (W + 2 * p - k) // s + 1
        m_out = n_batch * ho * wo
        mop = _round_up(m_out, 16)                    # bf16 sublane-pack friendly
        if li == 0:
            taps = [(i, j) for i in range(k) for j in range(k)]
        else:
            # Prune taps that only ever read zero padding (e.g. 1x1-spatial layers).
            taps = [(i, j) for i in range(k) for j in range(k)
                    if any(0 <= s * oh - p + i < H for oh in range(ho))
                    and any(0 <= s * ow - p + j < W for ow in range(wo))]
        w_packed = jnp.concatenate([lp["w"][i, j] for (i, j) in taps],
                                   axis=0).astype(jnp.bfloat16)   # (ntaps*cin, cout)
        if lp["has_bn"]:
            scale = lp["gamma"] / jnp.sqrt(lp["rvar"] + BN_EPS)
            shift = lp["beta"] - lp["rmean"] * scale
        else:
            scale = jnp.ones((cout,), jnp.float32)
            shift = jnp.zeros((cout,), jnp.float32)
        epi = jnp.zeros((8, cout), jnp.float32)
        epi = epi.at[0].set(lp["b"]).at[1].set(scale).at[2].set(shift)

        entry = dict(w=w_packed, epi=epi, ntaps=len(taps), mop=mop, m_out=m_out,
                     cin=cin, cout=cout, k=k, s=s, p=p, ho=ho, wo=wo)
        if li > 0:
            # 0/1 gather matrix: row (tap, out-pixel) selects the previous
            # activation row holding that input pixel (zero row => padding).
            G = np.zeros((len(taps) * mop, m_in_stored), np.float32)
            for ti, (i, j) in enumerate(taps):
                for n in range(n_batch):
                    for oh in range(ho):
                        for ow in range(wo):
                            ih, iw = s * oh - p + i, s * ow - p + j
                            if 0 <= ih < H and 0 <= iw < W:
                                G[ti * mop + n * ho * wo + oh * wo + ow,
                                  n * H * W + ih * W + iw] = 1.0
            entry["g"] = jnp.asarray(G, jnp.bfloat16)
        packed.append(entry)
        H, W, m_in_stored = ho, wo, mop
    return packed


def feature_extraction_forward(x_nchw, packed):
    l0 = packed[0]
    x = jnp.transpose(x_nchw, (0, 2, 3, 1))           # NCHW -> NHWC
    a, n, _, _ = im2col(x, l0["k"], l0["k"], l0["s"], l0["p"])
    a = jnp.pad(a.astype(jnp.bfloat16), ((0, l0["mop"] - a.shape[0]), (0, 0)))

    operands = [a]
    meta = []
    flops = 2 * l0["mop"] * a.shape[1] * l0["cout"]
    for li, lp in enumerate(packed):
        if li > 0:
            operands.append(lp["g"])
            flops += 2 * lp["g"].shape[0] * lp["g"].shape[1] * lp["cin"]
            flops += 2 * lp["ntaps"] * lp["mop"] * lp["cin"] * lp["cout"]
        operands.append(lp["w"])
        operands.append(lp["epi"])
        meta.append((lp["ntaps"], lp["mop"], lp["cin"], lp["cout"]))

    lN = packed[-1]
    out_shape = jax.ShapeDtypeStruct((lN["mop"], lN["cout"]), jnp.float32)
    bytes_accessed = sum(int(op.size) * op.dtype.itemsize for op in operands)
    bytes_accessed += lN["mop"] * lN["cout"] * 4

    out = pl.pallas_call(
        _build_fused_kernel(tuple(meta)),
        out_shape=out_shape,
        compiler_params=pltpu.CompilerParams(vmem_limit_bytes=32 * 1024 * 1024),
        cost_estimate=pl.CostEstimate(flops=int(flops), transcendentals=0,
                                      bytes_accessed=int(bytes_accessed)),
    )(*operands)

    y = out[: n * lN["ho"] * lN["wo"], :]
    y = y.reshape(n, lN["ho"], lN["wo"], lN["cout"])
    return jnp.transpose(y, (0, 3, 1, 2))             # NHWC -> NCHW (f32)


# ------------------------------ f32 reference ------------------------------ #
def reference_forward(x_nchw, raw_layers):
    y = x_nchw
    for lp in raw_layers:
        w_oihw = jnp.transpose(lp["w"], (3, 2, 0, 1))
        y = jax.lax.conv_general_dilated(
            y, w_oihw, window_strides=(lp["s"], lp["s"]),
            padding=[(lp["p"], lp["p"]), (lp["p"], lp["p"])],
            dimension_numbers=("NCHW", "OIHW", "NCHW"),
            precision=jax.lax.Precision.HIGHEST)
        y = y + lp["b"][None, :, None, None]
        y = jnp.maximum(y, 0.0)
        if lp["has_bn"]:
            inv = lp["gamma"] / jnp.sqrt(lp["rvar"] + BN_EPS)
            y = ((y - lp["rmean"][None, :, None, None]) * inv[None, :, None, None]
                 + lp["beta"][None, :, None, None])
    return y


if __name__ == "__main__":
    key = jax.random.PRNGKey(0)
    kx, kp = jax.random.split(key)
    # Small NCHW input consistent with the module: batch=2, input_nc=4, 16x16.
    x = jax.random.normal(kx, (2, 4, 16, 16), jnp.float32)

    raw = init_params(kp, input_nc=4, ngf=64, n_layers=3)
    packed = pack_for_input(raw, n_batch=2, h_in=16, w_in=16)

    fwd = jax.jit(lambda inp: feature_extraction_forward(inp, packed))
    y = jax.block_until_ready(fwd(x))
    assert y.shape == (2, 512, 1, 1), y.shape          # 4 stride-2 downsamples of 16x16
    assert bool(jnp.all(jnp.isfinite(y)))

    ref = reference_forward(x, raw)
    rel = float(jnp.sqrt(jnp.sum((y - ref) ** 2)) /
                (jnp.sqrt(jnp.sum(ref ** 2)) + 1e-12))
    assert rel < 0.06, f"relative L2 error too large: {rel}"

    print("KERNEL_OK")
</pallas_src>

<mosaic_0001>
module attributes {stable_mosaic.version = 11 : i64} {
  func.func @kernel(%arg0: memref<128x64xbf16, #tpu.memory_space<vmem>>, %arg1: memref<64x64xbf16, #tpu.memory_space<vmem>>, %arg2: memref<8x64xf32, #tpu.memory_space<vmem>>, %arg3: memref<512x128xbf16, #tpu.memory_space<vmem>>, %arg4: memref<1024x128xbf16, #tpu.memory_space<vmem>>, %arg5: memref<8x128xf32, #tpu.memory_space<vmem>>, %arg6: memref<256x32xbf16, #tpu.memory_space<vmem>>, %arg7: memref<2048x256xbf16, #tpu.memory_space<vmem>>, %arg8: memref<8x256xf32, #tpu.memory_space<vmem>>, %arg9: memref<64x16xbf16, #tpu.memory_space<vmem>>, %arg10: memref<1024x512xbf16, #tpu.memory_space<vmem>>, %arg11: memref<8x512xf32, #tpu.memory_space<vmem>>, %arg12: memref<16x16xbf16, #tpu.memory_space<vmem>>, %arg13: memref<512x512xbf16, #tpu.memory_space<vmem>>, %arg14: memref<8x512xf32, #tpu.memory_space<vmem>>, %arg15: memref<16x16xbf16, #tpu.memory_space<vmem>>, %arg16: memref<512x512xbf16, #tpu.memory_space<vmem>>, %arg17: memref<8x512xf32, #tpu.memory_space<vmem>>, %arg18: memref<16x512xf32, #tpu.memory_space<vmem>>) attributes {dimension_semantics = [], scalar_prefetch = 0 : i64, scratch_operands = 0 : i64, tpu.core_type = #tpu.core_type<tc>} {
    %c0 = arith.constant 0 : index
    %c0_0 = arith.constant 0 : index
    %0 = vector.load %arg0[%c0, %c0_0] : memref<128x64xbf16, #tpu.memory_space<vmem>>, vector<128x64xbf16>
    %c0_1 = arith.constant 0 : index
    %c0_2 = arith.constant 0 : index
    %1 = vector.load %arg1[%c0_1, %c0_2] : memref<64x64xbf16, #tpu.memory_space<vmem>>, vector<64x64xbf16>
    %cst = arith.constant dense<0.000000e+00> : vector<128x64xf32>
    %2 = tpu.matmul %0, %1, %cst {dimension_numbers = #tpu.dot_dimension_numbers<[1], [0], [0], [1], [0, 0, 1, 1], [], []>} : vector<128x64xbf16>, vector<64x64xbf16>, vector<128x64xf32> -> vector<128x64xf32>
    %c0_3 = arith.constant 0 : index
    %c0_4 = arith.constant 0 : index
    %3 = vector.load %arg2[%c0_3, %c0_4] : memref<8x64xf32, #tpu.memory_space<vmem>>, vector<1x64xf32>
    %c1 = arith.constant 1 : index
    %c0_5 = arith.constant 0 : index
    %4 = vector.load %arg2[%c1, %c0_5] : memref<8x64xf32, #tpu.memory_space<vmem>>, vector<1x64xf32>
    %c2 = arith.constant 2 : index
    %c0_6 = arith.constant 0 : index
    %5 = vector.load %arg2[%c2, %c0_6] : memref<8x64xf32, #tpu.memory_space<vmem>>, vector<1x64xf32>
    %6 = vector.broadcast %3 : vector<1x64xf32> to vector<128x64xf32>
    %7 = arith.addf %2, %6 : vector<128x64xf32>
    %cst_7 = arith.constant 0.000000e+00 : f32
    %8 = vector.broadcast %cst_7 : f32 to vector<128x64xf32>
    %9 = arith.maximumf %7, %8 : vector<128x64xf32>
    %10 = vector.broadcast %4 : vector<1x64xf32> to vector<128x64xf32>
    %11 = arith.mulf %9, %10 : vector<128x64xf32>
    %12 = vector.broadcast %5 : vector<1x64xf32> to vector<128x64xf32>
    %13 = arith.addf %11, %12 : vector<128x64xf32>
    %c0_8 = arith.constant 0 : index
    %c0_9 = arith.constant 0 : index
    %14 = vector.load %arg3[%c0_8, %c0_9] : memref<512x128xbf16, #tpu.memory_space<vmem>>, vector<512x128xbf16>
    %15 = arith.truncf %13 : vector<128x64xf32> to vector<128x64xbf16>
    %cst_10 = arith.constant dense<0.000000e+00> : vector<512x64xf32>
    %16 = tpu.matmul %14, %15, %cst_10 {dimension_numbers = #tpu.dot_dimension_numbers<[1], [0], [0], [1], [0, 0, 1, 1], [], []>} : vector<512x128xbf16>, vector<128x64xbf16>, vector<512x64xf32> -> vector<512x64xf32>
    %17 = arith.truncf %16 : vector<512x64xf32> to vector<512x64xbf16>
    %18 = vector.extract_strided_slice %17 {offsets = [0, 0], sizes = [32, 64], strides = [1, 1]} : vector<512x64xbf16> to vector<32x64xbf16>
    %c0_11 = arith.constant 0 : index
    %c0_12 = arith.constant 0 : index
    %19 = vector.load %arg4[%c0_11, %c0_12] : memref<1024x128xbf16, #tpu.memory_space<vmem>>, vector<64x128xbf16>
    %cst_13 = arith.constant dense<0.000000e+00> : vector<32x128xf32>
    %20 = tpu.matmul %18, %19, %cst_13 {dimension_numbers = #tpu.dot_dimension_numbers<[1], [0], [0], [1], [0, 0, 1, 1], [], []>} : vector<32x64xbf16>, vector<64x128xbf16>, vector<32x128xf32> -> vector<32x128xf32>
    %21 = vector.extract_strided_slice %17 {offsets = [32, 0], sizes = [32, 64], strides = [1, 1]} : vector<512x64xbf16> to vector<32x64xbf16>
    %c64 = arith.constant 64 : index
    %c0_14 = arith.constant 0 : index
    %22 = vector.load %arg4[%c64, %c0_14] : memref<1024x128xbf16, #tpu.memory_space<vmem>>, vector<64x128xbf16>
    %cst_15 = arith.constant dense<0.000000e+00> : vector<32x128xf32>
    %23 = tpu.matmul %21, %22, %cst_15 {dimension_numbers = #tpu.dot_dimension_numbers<[1], [0], [0], [1], [0, 0, 1, 1], [], []>} : vector<32x64xbf16>, vector<64x128xbf16>, vector<32x128xf32> -> vector<32x128xf32>
    %24 = arith.addf %20, %23 : vector<32x128xf32>
    %25 = vector.extract_strided_slice %17 {offsets = [64, 0], sizes = [32, 64], strides = [1, 1]} : vector<512x64xbf16> to vector<32x64xbf16>
    %c128 = arith.constant 128 : index
    %c0_16 = arith.constant 0 : index
    %26 = vector.load %arg4[%c128, %c0_16] : memref<1024x128xbf16, #tpu.memory_space<vmem>>, vector<64x128xbf16>
    %cst_17 = arith.constant dense<0.000000e+00> : vector<32x128xf32>
    %27 = tpu.matmul %25, %26, %cst_17 {dimension_numbers = #tpu.dot_dimension_numbers<[1], [0], [0], [1], [0, 0, 1, 1], [], []>} : vector<32x64xbf16>, vector<64x128xbf16>, vector<32x128xf32> -> vector<32x128xf32>
    %28 = arith.addf %24, %27 : vector<32x128xf32>
    %29 = vector.extract_strided_slice %17 {offsets = [96, 0], sizes = [32, 64], strides = [1, 1]} : vector<512x64xbf16> to vector<32x64xbf16>
    %c192 = arith.constant 192 : index
    %c0_18 = arith.constant 0 : index
    %30 = vector.load %arg4[%c192, %c0_18] : memref<1024x128xbf16, #tpu.memory_space<vmem>>, vector<64x128xbf16>
    %cst_19 = arith.constant dense<0.000000e+00> : vector<32x128xf32>
    %31 = tpu.matmul %29, %30, %cst_19 {dimension_numbers = #tpu.dot_dimension_numbers<[1], [0], [0], [1], [0, 0, 1, 1], [], []>} : vector<32x64xbf16>, vector<64x128xbf16>, vector<32x128xf32> -> vector<32x128xf32>
    %32 = arith.addf %28, %31 : vector<32x128xf32>
    %33 = vector.extract_strided_slice %17 {offsets = [128, 0], sizes = [32, 64], strides = [1, 1]} : vector<512x64xbf16> to vector<32x64xbf16>
    %c256 = arith.constant 256 : index
    %c0_20 = arith.constant 0 : index
    %34 = vector.load %arg4[%c256, %c0_20] : memref<1024x128xbf16, #tpu.memory_space<vmem>>, vector<64x128xbf16>
    %cst_21 = arith.constant dense<0.000000e+00> : vector<32x128xf32>
    %35 = tpu.matmul %33, %34, %cst_21 {dimension_numbers = #tpu.dot_dimension_numbers<[1], [0], [0], [1], [0, 0, 1, 1], [], []>} : vector<32x64xbf16>, vector<64x128xbf16>, vector<32x128xf32> -> vector<32x128xf32>
    %36 = arith.addf %32, %35 : vector<32x128xf32>
    %37 = vector.extract_strided_slice %17 {offsets = [160, 0], sizes = [32, 64], strides = [1, 1]} : vector<512x64xbf16> to vector<32x64xbf16>
    %c320 = arith.constant 320 : index
    %c0_22 = arith.constant 0 : index
    %38 = vector.load %arg4[%c320, %c0_22] : memref<1024x128xbf16, #tpu.memory_space<vmem>>, vector<64x128xbf16>
    %cst_23 = arith.constant dense<0.000000e+00> : vector<32x128xf32>
    %39 = tpu.matmul %37, %38, %cst_23 {dimension_numbers = #tpu.dot_dimension_numbers<[1], [0], [0], [1], [0, 0, 1, 1], [], []>} : vector<32x64xbf16>, vector<64x128xbf16>, vector<32x128xf32> -> vector<32x128xf32>
    %40 = arith.addf %36, %39 : vector<32x128xf32>
    %41 = vector.extract_strided_slice %17 {offsets = [192, 0], sizes = [32, 64], strides = [1, 1]} : vector<512x64xbf16> to vector<32x64xbf16>
    %c384 = arith.constant 384 : index
    %c0_24 = arith.constant 0 : index
    %42 = vector.load %arg4[%c384, %c0_24] : memref<1024x128xbf16, #tpu.memory_space<vmem>>, vector<64x128xbf16>
    %cst_25 = arith.constant dense<0.000000e+00> : vector<32x128xf32>
    %43 = tpu.matmul %41, %42, %cst_25 {dimension_numbers = #tpu.dot_dimension_numbers<[1], [0], [0], [1], [0, 0, 1, 1], [], []>} : vector<32x64xbf16>, vector<64x128xbf16>, vector<32x128xf32> -> vector<32x128xf32>
    %44 = arith.addf %40, %43 : vector<32x128xf32>
    %45 = vector.extract_strided_slice %17 {offsets = [224, 0], sizes = [32, 64], strides = [1, 1]} : vector<512x64xbf16> to vector<32x64xbf16>
    %c448 = arith.constant 448 : index
    %c0_26 = arith.constant 0 : index
    %46 = vector.load %arg4[%c448, %c0_26] : memref<1024x128xbf16, #tpu.memory_space<vmem>>, vector<64x128xbf16>
    %cst_27 = arith.constant dense<0.000000e+00> : vector<32x128xf32>
    %47 = tpu.matmul %45, %46, %cst_27 {dimension_numbers = #tpu.dot_dimension_numbers<[1], [0], [0], [1], [0, 0, 1, 1], [], []>} : vector<32x64xbf16>, vector<64x128xbf16>, vector<32x128xf32> -> vector<32x128xf32>
    %48 = arith.addf %44, %47 : vector<32x128xf32>
    %49 = vector.extract_strided_slice %17 {offsets = [256, 0], sizes = [32, 64], strides = [1, 1]} : vector<512x64xbf16> to vector<32x64xbf16>
    %c512 = arith.constant 512 : index
    %c0_28 = arith.constant 0 : index
    %50 = vector.load %arg4[%c512, %c0_28] : memref<1024x128xbf16, #tpu.memory_space<vmem>>, vector<64x128xbf16>
    %cst_29 = arith.constant dense<0.000000e+00> : vector<32x128xf32>
    %51 = tpu.matmul %49, %50, %cst_29 {dimension_numbers = #tpu.dot_dimension_numbers<[1], [0], [0], [1], [0, 0, 1, 1], [], []>} : vector<32x64xbf16>, vector<64x128xbf16>, vector<32x128xf32> -> vector<32x128xf32>
    %52 = arith.addf %48, %51 : vector<32x128xf32>
    %53 = vector.extract_strided_slice %17 {offsets = [288, 0], sizes = [32, 64], strides = [1, 1]} : vector<512x64xbf16> to vector<32x64xbf16>
    %c576 = arith.constant 576 : index
    %c0_30 = arith.constant 0 : index
    %54 = vector.load %arg4[%c576, %c0_30] : memref<1024x128xbf16, #tpu.memory_space<vmem>>, vector<64x128xbf16>
    %cst_31 = arith.constant dense<0.000000e+00> : vector<32x128xf32>
    %55 = tpu.matmul %53, %54, %cst_31 {dimension_numbers = #tpu.dot_dimension_numbers<[1], [0], [0], [1], [0, 0, 1, 1], [], []>} : vector<32x64xbf16>, vector<64x128xbf16>, vector<32x128xf32> -> vector<32x128xf32>
    %56 = arith.addf %52, %55 : vector<32x128xf32>
    %57 = vector.extract_strided_slice %17 {offsets = [320, 0], sizes = [32, 64], strides = [1, 1]} : vector<512x64xbf16> to vector<32x64xbf16>
    %c640 = arith.constant 640 : index
    %c0_32 = arith.constant 0 : index
    %58 = vector.load %arg4[%c640, %c0_32] : memref<1024x128xbf16, #tpu.memory_space<vmem>>, vector<64x128xbf16>
    %cst_33 = arith.constant dense<0.000000e+00> : vector<32x128xf32>
    %59 = tpu.matmul %57, %58, %cst_33 {dimension_numbers = #tpu.dot_dimension_numbers<[1], [0], [0], [1], [0, 0, 1, 1], [], []>} : vector<32x64xbf16>, vector<64x128xbf16>, vector<32x128xf32> -> vector<32x128xf32>
    %60 = arith.addf %56, %59 : vector<32x128xf32>
    %61 = vector.extract_strided_slice %17 {offsets = [352, 0], sizes = [32, 64], strides = [1, 1]} : vector<512x64xbf16> to vector<32x64xbf16>
    %c704 = arith.constant 704 : index
    %c0_34 = arith.constant 0 : index
    %62 = vector.load %arg4[%c704, %c0_34] : memref<1024x128xbf16, #tpu.memory_space<vmem>>, vector<64x128xbf16>
    %cst_35 = arith.constant dense<0.000000e+00> : vector<32x128xf32>
    %63 = tpu.matmul %61, %62, %cst_35 {dimension_numbers = #tpu.dot_dimension_numbers<[1], [0], [0], [1], [0, 0, 1, 1], [], []>} : vector<32x64xbf16>, vector<64x128xbf16>, vector<32x128xf32> -> vector<32x128xf32>
    %64 = arith.addf %60, %63 : vector<32x128xf32>
    %65 = vector.extract_strided_slice %17 {offsets = [384, 0], sizes = [32, 64], strides = [1, 1]} : vector<512x64xbf16> to vector<32x64xbf16>
    %c768 = arith.constant 768 : index
    %c0_36 = arith.constant 0 : index
    %66 = vector.load %arg4[%c768, %c0_36] : memref<1024x128xbf16, #tpu.memory_space<vmem>>, vector<64x128xbf16>
    %cst_37 = arith.constant dense<0.000000e+00> : vector<32x128xf32>
    %67 = tpu.matmul %65, %66, %cst_37 {dimension_numbers = #tpu.dot_dimension_numbers<[1], [0], [0], [1], [0, 0, 1, 1], [], []>} : vector<32x64xbf16>, vector<64x128xbf16>, vector<32x128xf32> -> vector<32x128xf32>
    %68 = arith.addf %64, %67 : vector<32x128xf32>
    %69 = vector.extract_strided_slice %17 {offsets = [416, 0], sizes = [32, 64], strides = [1, 1]} : vector<512x64xbf16> to vector<32x64xbf16>
    %c832 = arith.constant 832 : index
    %c0_38 = arith.constant 0 : index
    %70 = vector.load %arg4[%c832, %c0_38] : memref<1024x128xbf16, #tpu.memory_space<vmem>>, vector<64x128xbf16>
    %cst_39 = arith.constant dense<0.000000e+00> : vector<32x128xf32>
    %71 = tpu.matmul %69, %70, %cst_39 {dimension_numbers = #tpu.dot_dimension_numbers<[1], [0], [0], [1], [0, 0, 1, 1], [], []>} : vector<32x64xbf16>, vector<64x128xbf16>, vector<32x128xf32> -> vector<32x128xf32>
    %72 = arith.addf %68, %71 : vector<32x128xf32>
    %73 = vector.extract_strided_slice %17 {offsets = [448, 0], sizes = [32, 64], strides = [1, 1]} : vector<512x64xbf16> to vector<32x64xbf16>
    %c896 = arith.constant 896 : index
    %c0_40 = arith.constant 0 : index
    %74 = vector.load %arg4[%c896, %c0_40] : memref<1024x128xbf16, #tpu.memory_space<vmem>>, vector<64x128xbf16>
    %cst_41 = arith.constant dense<0.000000e+00> : vector<32x128xf32>
    %75 = tpu.matmul %73, %74, %cst_41 {dimension_numbers = #tpu.dot_dimension_numbers<[1], [0], [0], [1], [0, 0, 1, 1], [], []>} : vector<32x64xbf16>, vector<64x128xbf16>, vector<32x128xf32> -> vector<32x128xf32>
    %76 = arith.addf %72, %75 : vector<32x128xf32>
    %77 = vector.extract_strided_slice %17 {offsets = [480, 0], sizes = [32, 64], strides = [1, 1]} : vector<512x64xbf16> to vector<32x64xbf16>
    %c960 = arith.constant 960 : index
    %c0_42 = arith.constant 0 : index
    %78 = vector.load %arg4[%c960, %c0_42] : memref<1024x128xbf16, #tpu.memory_space<vmem>>, vector<64x128xbf16>
    %cst_43 = arith.constant dense<0.000000e+00> : vector<32x128xf32>
    %79 = tpu.matmul %77, %78, %cst_43 {dimension_numbers = #tpu.dot_dimension_numbers<[1], [0], [0], [1], [0, 0, 1, 1], [], []>} : vector<32x64xbf16>, vector<64x128xbf16>, vector<32x128xf32> -> vector<32x128xf32>
    %80 = arith.addf %76, %79 : vector<32x128xf32>
    %c0_44 = arith.constant 0 : index
    %c0_45 = arith.constant 0 : index
    %81 = vector.load %arg5[%c0_44, %c0_45] : memref<8x128xf32, #tpu.memory_space<vmem>>, vector<1x128xf32>
    %c1_46 = arith.constant 1 : index
    %c0_47 = arith.constant 0 : index
    %82 = vector.load %arg5[%c1_46, %c0_47] : memref<8x128xf32, #tpu.memory_space<vmem>>, vector<1x128xf32>
    %c2_48 = arith.constant 2 : index
    %c0_49 = arith.constant 0 : index
    %83 = vector.load %arg5[%c2_48, %c0_49] : memref<8x128xf32, #tpu.memory_space<vmem>>, vector<1x128xf32>
    %84 = vector.broadcast %81 : vector<1x128xf32> to vector<32x128xf32>
    %85 = arith.addf %80, %84 : vector<32x128xf32>
    %cst_50 = arith.constant 0.000000e+00 : f32
    %86 = vector.broadcast %cst_50 : f32 to vector<32x128xf32>
    %87 = arith.maximumf %85, %86 : vector<32x128xf32>
    %88 = vector.broadcast %82 : vector<1x128xf32> to vector<32x128xf32>
    %89 = arith.mulf %87, %88 : vector<32x128xf32>
    %90 = vector.broadcast %83 : vector<1x128xf32> to vector<32x128xf32>
    %91 = arith.addf %89, %90 : vector<32x128xf32>
    %c0_51 = arith.constant 0 : index
    %c0_52 = arith.constant 0 : index
    %92 = vector.load %arg6[%c0_51, %c0_52] : memref<256x32xbf16, #tpu.memory_space<vmem>>, vector<256x32xbf16>
    %93 = arith.truncf %91 : vector<32x128xf32> to vector<32x128xbf16>
    %cst_53 = arith.constant dense<0.000000e+00> : vector<256x128xf32>
    %94 = tpu.matmul %92, %93, %cst_53 {dimension_numbers = #tpu.dot_dimension_numbers<[1], [0], [0], [1], [0, 0, 1, 1], [], []>} : vector<256x32xbf16>, vector<32x128xbf16>, vector<256x128xf32> -> vector<256x128xf32>
    %95 = arith.truncf %94 : vector<256x128xf32> to vector<256x128xbf16>
    %96 = vector.extract_strided_slice %95 {offsets = [0, 0], sizes = [16, 128], strides = [1, 1]} : vector<256x128xbf16> to vector<16x128xbf16>
    %c0_54 = arith.constant 0 : index
    %c0_55 = arith.constant 0 : index
    %97 = vector.load %arg7[%c0_54, %c0_55] : memref<2048x256xbf16, #tpu.memory_space<vmem>>, vector<128x256xbf16>
    %cst_56 = arith.constant dense<0.000000e+00> : vector<16x256xf32>
    %98 = tpu.matmul %96, %97, %cst_56 {dimension_numbers = #tpu.dot_dimension_numbers<[1], [0], [0], [1], [0, 0, 1, 1], [], []>} : vector<16x128xbf16>, vector<128x256xbf16>, vector<16x256xf32> -> vector<16x256xf32>
    %99 = vector.extract_strided_slice %95 {offsets = [16, 0], sizes = [16, 128], strides = [1, 1]} : vector<256x128xbf16> to vector<16x128xbf16>
    %c128_57 = arith.constant 128 : index
    %c0_58 = arith.constant 0 : index
    %100 = vector.load %arg7[%c128_57, %c0_58] : memref<2048x256xbf16, #tpu.memory_space<vmem>>, vector<128x256xbf16>
    %cst_59 = arith.constant dense<0.000000e+00> : vector<16x256xf32>
    %101 = tpu.matmul %99, %100, %cst_59 {dimension_numbers = #tpu.dot_dimension_numbers<[1], [0], [0], [1], [0, 0, 1, 1], [], []>} : vector<16x128xbf16>, vector<128x256xbf16>, vector<16x256xf32> -> vector<16x256xf32>
    %102 = arith.addf %98, %101 : vector<16x256xf32>
    %103 = vector.extract_strided_slice %95 {offsets = [32, 0], sizes = [16, 128], strides = [1, 1]} : vector<256x128xbf16> to vector<16x128xbf16>
    %c256_60 = arith.constant 256 : index
    %c0_61 = arith.constant 0 : index
    %104 = vector.load %arg7[%c256_60, %c0_61] : memref<2048x256xbf16, #tpu.memory_space<vmem>>, vector<128x256xbf16>
    %cst_62 = arith.constant dense<0.000000e+00> : vector<16x256xf32>
    %105 = tpu.matmul %103, %104, %cst_62 {dimension_numbers = #tpu.dot_dimension_numbers<[1], [0], [0], [1], [0, 0, 1, 1], [], []>} : vector<16x128xbf16>, vector<128x256xbf16>, vector<16x256xf32> -> vector<16x256xf32>
    %106 = arith.addf %102, %105 : vector<16x256xf32>
    %107 = vector.extract_strided_slice %95 {offsets = [48, 0], sizes = [16, 128], strides = [1, 1]} : vector<256x128xbf16> to vector<16x128xbf16>
    %c384_63 = arith.constant 384 : index
    %c0_64 = arith.constant 0 : index
    %108 = vector.load %arg7[%c384_63, %c0_64] : memref<2048x256xbf16, #tpu.memory_space<vmem>>, vector<128x256xbf16>
    %cst_65 = arith.constant dense<0.000000e+00> : vector<16x256xf32>
    %109 = tpu.matmul %107, %108, %cst_65 {dimension_numbers = #tpu.dot_dimension_numbers<[1], [0], [0], [1], [0, 0, 1, 1], [], []>} : vector<16x128xbf16>, vector<128x256xbf16>, vector<16x256xf32> -> vector<16x256xf32>
    %110 = arith.addf %106, %109 : vector<16x256xf32>
    %111 = vector.extract_strided_slice %95 {offsets = [64, 0], sizes = [16, 128], strides = [1, 1]} : vector<256x128xbf16> to vector<16x128xbf16>
    %c512_66 = arith.constant 512 : index
    %c0_67 = arith.constant 0 : index
    %112 = vector.load %arg7[%c512_66, %c0_67] : memref<2048x256xbf16, #tpu.memory_space<vmem>>, vector<128x256xbf16>
    %cst_68 = arith.constant dense<0.000000e+00> : vector<16x256xf32>
    %113 = tpu.matmul %111, %112, %cst_68 {dimension_numbers = #tpu.dot_dimension_numbers<[1], [0], [0], [1], [0, 0, 1, 1], [], []>} : vector<16x128xbf16>, vector<128x256xbf16>, vector<16x256xf32> -> vector<16x256xf32>
    %114 = arith.addf %110, %113 : vector<16x256xf32>
    %115 = vector.extract_strided_slice %95 {offsets = [80, 0], sizes = [16, 128], strides = [1, 1]} : vector<256x128xbf16> to vector<16x128xbf16>
    %c640_69 = arith.constant 640 : index
    %c0_70 = arith.constant 0 : index
    %116 = vector.load %arg7[%c640_69, %c0_70] : memref<2048x256xbf16, #tpu.memory_space<vmem>>, vector<128x256xbf16>
    %cst_71 = arith.constant dense<0.000000e+00> : vector<16x256xf32>
    %117 = tpu.matmul %115, %116, %cst_71 {dimension_numbers = #tpu.dot_dimension_numbers<[1], [0], [0], [1], [0, 0, 1, 1], [], []>} : vector<16x128xbf16>, vector<128x256xbf16>, vector<16x256xf32> -> vector<16x256xf32>
    %118 = arith.addf %114, %117 : vector<16x256xf32>
    %119 = vector.extract_strided_slice %95 {offsets = [96, 0], sizes = [16, 128], strides = [1, 1]} : vector<256x128xbf16> to vector<16x128xbf16>
    %c768_72 = arith.constant 768 : index
    %c0_73 = arith.constant 0 : index
    %120 = vector.load %arg7[%c768_72, %c0_73] : memref<2048x256xbf16, #tpu.memory_space<vmem>>, vector<128x256xbf16>
    %cst_74 = arith.constant dense<0.000000e+00> : vector<16x256xf32>
    %121 = tpu.matmul %119, %120, %cst_74 {dimension_numbers = #tpu.dot_dimension_numbers<[1], [0], [0], [1], [0, 0, 1, 1], [], []>} : vector<16x128xbf16>, vector<128x256xbf16>, vector<16x256xf32> -> vector<16x256xf32>
    %122 = arith.addf %118, %121 : vector<16x256xf32>
    %123 = vector.extract_strided_slice %95 {offsets = [112, 0], sizes = [16, 128], strides = [1, 1]} : vector<256x128xbf16> to vector<16x128xbf16>
    %c896_75 = arith.constant 896 : index
    %c0_76 = arith.constant 0 : index
    %124 = vector.load %arg7[%c896_75, %c0_76] : memref<2048x256xbf16, #tpu.memory_space<vmem>>, vector<128x256xbf16>
    %cst_77 = arith.constant dense<0.000000e+00> : vector<16x256xf32>
    %125 = tpu.matmul %123, %124, %cst_77 {dimension_numbers = #tpu.dot_dimension_numbers<[1], [0], [0], [1], [0, 0, 1, 1], [], []>} : vector<16x128xbf16>, vector<128x256xbf16>, vector<16x256xf32> -> vector<16x256xf32>
    %126 = arith.addf %122, %125 : vector<16x256xf32>
    %127 = vector.extract_strided_slice %95 {offsets = [128, 0], sizes = [16, 128], strides = [1, 1]} : vector<256x128xbf16> to vector<16x128xbf16>
    %c1024 = arith.constant 1024 : index
    %c0_78 = arith.constant 0 : index
    %128 = vector.load %arg7[%c1024, %c0_78] : memref<2048x256xbf16, #tpu.memory_space<vmem>>, vector<128x256xbf16>
    %cst_79 = arith.constant dense<0.000000e+00> : vector<16x256xf32>
    %129 = tpu.matmul %127, %128, %cst_79 {dimension_numbers = #tpu.dot_dimension_numbers<[1], [0], [0], [1], [0, 0, 1, 1], [], []>} : vector<16x128xbf16>, vector<128x256xbf16>, vector<16x256xf32> -> vector<16x256xf32>
    %130 = arith.addf %126, %129 : vector<16x256xf32>
    %131 = vector.extract_strided_slice %95 {offsets = [144, 0], sizes = [16, 128], strides = [1, 1]} : vector<256x128xbf16> to vector<16x128xbf16>
    %c1152 = arith.constant 1152 : index
    %c0_80 = arith.constant 0 : index
    %132 = vector.load %arg7[%c1152, %c0_80] : memref<2048x256xbf16, #tpu.memory_space<vmem>>, vector<128x256xbf16>
    %cst_81 = arith.constant dense<0.000000e+00> : vector<16x256xf32>
    %133 = tpu.matmul %131, %132, %cst_81 {dimension_numbers = #tpu.dot_dimension_numbers<[1], [0], [0], [1], [0, 0, 1, 1], [], []>} : vector<16x128xbf16>, vector<128x256xbf16>, vector<16x256xf32> -> vector<16x256xf32>
    %134 = arith.addf %130, %133 : vector<16x256xf32>
    %135 = vector.extract_strided_slice %95 {offsets = [160, 0], sizes = [16, 128], strides = [1, 1]} : vector<256x128xbf16> to vector<16x128xbf16>
    %c1280 = arith.constant 1280 : index
    %c0_82 = arith.constant 0 : index
    %136 = vector.load %arg7[%c1280, %c0_82] : memref<2048x256xbf16, #tpu.memory_space<vmem>>, vector<128x256xbf16>
    %cst_83 = arith.constant dense<0.000000e+00> : vector<16x256xf32>
    %137 = tpu.matmul %135, %136, %cst_83 {dimension_numbers = #tpu.dot_dimension_numbers<[1], [0], [0], [1], [0, 0, 1, 1], [], []>} : vector<16x128xbf16>, vector<128x256xbf16>, vector<16x256xf32> -> vector<16x256xf32>
    %138 = arith.addf %134, %137 : vector<16x256xf32>
    %139 = vector.extract_strided_slice %95 {offsets = [176, 0], sizes = [16, 128], strides = [1, 1]} : vector<256x128xbf16> to vector<16x128xbf16>
    %c1408 = arith.constant 1408 : index
    %c0_84 = arith.constant 0 : index
    %140 = vector.load %arg7[%c1408, %c0_84] : memref<2048x256xbf16, #tpu.memory_space<vmem>>, vector<128x256xbf16>
    %cst_85 = arith.constant dense<0.000000e+00> : vector<16x256xf32>
    %141 = tpu.matmul %139, %140, %cst_85 {dimension_numbers = #tpu.dot_dimension_numbers<[1], [0], [0], [1], [0, 0, 1, 1], [], []>} : vector<16x128xbf16>, vector<128x256xbf16>, vector<16x256xf32> -> vector<16x256xf32>
    %142 = arith.addf %138, %141 : vector<16x256xf32>
    %143 = vector.extract_strided_slice %95 {offsets = [192, 0], sizes = [16, 128], strides = [1, 1]} : vector<256x128xbf16> to vector<16x128xbf16>
    %c1536 = arith.constant 1536 : index
    %c0_86 = arith.constant 0 : index
    %144 = vector.load %arg7[%c1536, %c0_86] : memref<2048x256xbf16, #tpu.memory_space<vmem>>, vector<128x256xbf16>
    %cst_87 = arith.constant dense<0.000000e+00> : vector<16x256xf32>
    %145 = tpu.matmul %143, %144, %cst_87 {dimension_numbers = #tpu.dot_dimension_numbers<[1], [0], [0], [1], [0, 0, 1, 1], [], []>} : vector<16x128xbf16>, vector<128x256xbf16>, vector<16x256xf32> -> vector<16x256xf32>
    %146 = arith.addf %142, %145 : vector<16x256xf32>
    %147 = vector.extract_strided_slice %95 {offsets = [208, 0], sizes = [16, 128], strides = [1, 1]} : vector<256x128xbf16> to vector<16x128xbf16>
    %c1664 = arith.constant 1664 : index
    %c0_88 = arith.constant 0 : index
    %148 = vector.load %arg7[%c1664, %c0_88] : memref<2048x256xbf16, #tpu.memory_space<vmem>>, vector<128x256xbf16>
    %cst_89 = arith.constant dense<0.000000e+00> : vector<16x256xf32>
    %149 = tpu.matmul %147, %148, %cst_89 {dimension_numbers = #tpu.dot_dimension_numbers<[1], [0], [0], [1], [0, 0, 1, 1], [], []>} : vector<16x128xbf16>, vector<128x256xbf16>, vector<16x256xf32> -> vector<16x256xf32>
    %150 = arith.addf %146, %149 : vector<16x256xf32>
    %151 = vector.extract_strided_slice %95 {offsets = [224, 0], sizes = [16, 128], strides = [1, 1]} : vector<256x128xbf16> to vector<16x128xbf16>
    %c1792 = arith.constant 1792 : index
    %c0_90 = arith.constant 0 : index
    %152 = vector.load %arg7[%c1792, %c0_90] : memref<2048x256xbf16, #tpu.memory_space<vmem>>, vector<128x256xbf16>
    %cst_91 = arith.constant dense<0.000000e+00> : vector<16x256xf32>
    %153 = tpu.matmul %151, %152, %cst_91 {dimension_numbers = #tpu.dot_dimension_numbers<[1], [0], [0], [1], [0, 0, 1, 1], [], []>} : vector<16x128xbf16>, vector<128x256xbf16>, vector<16x256xf32> -> vector<16x256xf32>
    %154 = arith.addf %150, %153 : vector<16x256xf32>
    %155 = vector.extract_strided_slice %95 {offsets = [240, 0], sizes = [16, 128], strides = [1, 1]} : vector<256x128xbf16> to vector<16x128xbf16>
    %c1920 = arith.constant 1920 : index
    %c0_92 = arith.constant 0 : index
    %156 = vector.load %arg7[%c1920, %c0_92] : memref<2048x256xbf16, #tpu.memory_space<vmem>>, vector<128x256xbf16>
    %cst_93 = arith.constant dense<0.000000e+00> : vector<16x256xf32>
    %157 = tpu.matmul %155, %156, %cst_93 {dimension_numbers = #tpu.dot_dimension_numbers<[1], [0], [0], [1], [0, 0, 1, 1], [], []>} : vector<16x128xbf16>, vector<128x256xbf16>, vector<16x256xf32> -> vector<16x256xf32>
    %158 = arith.addf %154, %157 : vector<16x256xf32>
    %c0_94 = arith.constant 0 : index
    %c0_95 = arith.constant 0 : index
    %159 = vector.load %arg8[%c0_94, %c0_95] : memref<8x256xf32, #tpu.memory_space<vmem>>, vector<1x256xf32>
    %c1_96 = arith.constant 1 : index
    %c0_97 = arith.constant 0 : index
    %160 = vector.load %arg8[%c1_96, %c0_97] : memref<8x256xf32, #tpu.memory_space<vmem>>, vector<1x256xf32>
    %c2_98 = arith.constant 2 : index
    %c0_99 = arith.constant 0 : index
    %161 = vector.load %arg8[%c2_98, %c0_99] : memref<8x256xf32, #tpu.memory_space<vmem>>, vector<1x256xf32>
    %162 = vector.broadcast %159 : vector<1x256xf32> to vector<16x256xf32>
    %163 = arith.addf %158, %162 : vector<16x256xf32>
    %cst_100 = arith.constant 0.000000e+00 : f32
    %164 = vector.broadcast %cst_100 : f32 to vector<16x256xf32>
    %165 = arith.maximumf %163, %164 : vector<16x256xf32>
    %166 = vector.broadcast %160 : vector<1x256xf32> to vector<16x256xf32>
    %167 = arith.mulf %165, %166 : vector<16x256xf32>
    %168 = vector.broadcast %161 : vector<1x256xf32> to vector<16x256xf32>
    %169 = arith.addf %167, %168 : vector<16x256xf32>
    %c0_101 = arith.constant 0 : index
    %c0_102 = arith.constant 0 : index
    %170 = vector.load %arg9[%c0_101, %c0_102] : memref<64x16xbf16, #tpu.memory_space<vmem>>, vector<64x16xbf16>
    %171 = arith.truncf %169 : vector<16x256xf32> to vector<16x256xbf16>
    %cst_103 = arith.constant dense<0.000000e+00> : vector<64x256xf32>
    %172 = tpu.matmul %170, %171, %cst_103 {dimension_numbers = #tpu.dot_dimension_numbers<[1], [0], [0], [1], [0, 0, 1, 1], [], []>} : vector<64x16xbf16>, vector<16x256xbf16>, vector<64x256xf32> -> vector<64x256xf32>
    %173 = arith.truncf %172 : vector<64x256xf32> to vector<64x256xbf16>
    %174 = vector.extract_strided_slice %173 {offsets = [0, 0], sizes = [16, 256], strides = [1, 1]} : vector<64x256xbf16> to vector<16x256xbf16>
    %c0_104 = arith.constant 0 : index
    %c0_105 = arith.constant 0 : index
    %175 = vector.load %arg10[%c0_104, %c0_105] : memref<1024x512xbf16, #tpu.memory_space<vmem>>, vector<256x512xbf16>
    %cst_106 = arith.constant dense<0.000000e+00> : vector<16x512xf32>
    %176 = tpu.matmul %174, %175, %cst_106 {dimension_numbers = #tpu.dot_dimension_numbers<[1], [0], [0], [1], [0, 0, 1, 1], [], []>} : vector<16x256xbf16>, vector<256x512xbf16>, vector<16x512xf32> -> vector<16x512xf32>
    %177 = vector.extract_strided_slice %173 {offsets = [16, 0], sizes = [16, 256], strides = [1, 1]} : vector<64x256xbf16> to vector<16x256xbf16>
    %c256_107 = arith.constant 256 : index
    %c0_108 = arith.constant 0 : index
    %178 = vector.load %arg10[%c256_107, %c0_108] : memref<1024x512xbf16, #tpu.memory_space<vmem>>, vector<256x512xbf16>
    %cst_109 = arith.constant dense<0.000000e+00> : vector<16x512xf32>
    %179 = tpu.matmul %177, %178, %cst_109 {dimension_numbers = #tpu.dot_dimension_numbers<[1], [0], [0], [1], [0, 0, 1, 1], [], []>} : vector<16x256xbf16>, vector<256x512xbf16>, vector<16x512xf32> -> vector<16x512xf32>
    %180 = arith.addf %176, %179 : vector<16x512xf32>
    %181 = vector.extract_strided_slice %173 {offsets = [32, 0], sizes = [16, 256], strides = [1, 1]} : vector<64x256xbf16> to vector<16x256xbf16>
    %c512_110 = arith.constant 512 : index
    %c0_111 = arith.constant 0 : index
    %182 = vector.load %arg10[%c512_110, %c0_111] : memref<1024x512xbf16, #tpu.memory_space<vmem>>, vector<256x512xbf16>
    %cst_112 = arith.constant dense<0.000000e+00> : vector<16x512xf32>
    %183 = tpu.matmul %181, %182, %cst_112 {dimension_numbers = #tpu.dot_dimension_numbers<[1], [0], [0], [1], [0, 0, 1, 1], [], []>} : vector<16x256xbf16>, vector<256x512xbf16>, vector<16x512xf32> -> vector<16x512xf32>
    %184 = arith.addf %180, %183 : vector<16x512xf32>
    %185 = vector.extract_strided_slice %173 {offsets = [48, 0], sizes = [16, 256], strides = [1, 1]} : vector<64x256xbf16> to vector<16x256xbf16>
    %c768_113 = arith.constant 768 : index
    %c0_114 = arith.constant 0 : index
    %186 = vector.load %arg10[%c768_113, %c0_114] : memref<1024x512xbf16, #tpu.memory_space<vmem>>, vector<256x512xbf16>
    %cst_115 = arith.constant dense<0.000000e+00> : vector<16x512xf32>
    %187 = tpu.matmul %185, %186, %cst_115 {dimension_numbers = #tpu.dot_dimension_numbers<[1], [0], [0], [1], [0, 0, 1, 1], [], []>} : vector<16x256xbf16>, vector<256x512xbf16>, vector<16x512xf32> -> vector<16x512xf32>
    %188 = arith.addf %184, %187 : vector<16x512xf32>
    %c0_116 = arith.constant 0 : index
    %c0_117 = arith.constant 0 : index
    %189 = vector.load %arg11[%c0_116, %c0_117] : memref<8x512xf32, #tpu.memory_space<vmem>>, vector<1x512xf32>
    %c1_118 = arith.constant 1 : index
    %c0_119 = arith.constant 0 : index
    %190 = vector.load %arg11[%c1_118, %c0_119] : memref<8x512xf32, #tpu.memory_space<vmem>>, vector<1x512xf32>
    %c2_120 = arith.constant 2 : index
    %c0_121 = arith.constant 0 : index
    %191 = vector.load %arg11[%c2_120, %c0_121] : memref<8x512xf32, #tpu.memory_space<vmem>>, vector<1x512xf32>
    %192 = vector.broadcast %189 : vector<1x512xf32> to vector<16x512xf32>
    %193 = arith.addf %188, %192 : vector<16x512xf32>
    %cst_122 = arith.constant 0.000000e+00 : f32
    %194 = vector.broadcast %cst_122 : f32 to vector<16x512xf32>
    %195 = arith.maximumf %193, %194 : vector<16x512xf32>
    %196 = vector.broadcast %190 : vector<1x512xf32> to vector<16x512xf32>
    %197 = arith.mulf %195, %196 : vector<16x512xf32>
    %198 = vector.broadcast %191 : vector<1x512xf32> to vector<16x512xf32>
    %199 = arith.addf %197, %198 : vector<16x512xf32>
    %c0_123 = arith.constant 0 : index
    %c0_124 = arith.constant 0 : index
    %200 = vector.load %arg12[%c0_123, %c0_124] : memref<16x16xbf16, #tpu.memory_space<vmem>>, vector<16x16xbf16>
    %201 = arith.truncf %199 : vector<16x512xf32> to vector<16x512xbf16>
    %cst_125 = arith.constant dense<0.000000e+00> : vector<16x512xf32>
    %202 = tpu.matmul %200, %201, %cst_125 {dimension_numbers = #tpu.dot_dimension_numbers<[1], [0], [0], [1], [0, 0, 1, 1], [], []>} : vector<16x16xbf16>, vector<16x512xbf16>, vector<16x512xf32> -> vector<16x512xf32>
    %203 = arith.truncf %202 : vector<16x512xf32> to vector<16x512xbf16>
    %c0_126 = arith.constant 0 : index
    %c0_127 = arith.constant 0 : index
    %204 = vector.load %arg13[%c0_126, %c0_127] : memref<512x512xbf16, #tpu.memory_space<vmem>>, vector<512x512xbf16>
    %cst_128 = arith.constant dense<0.000000e+00> : vector<16x512xf32>
    %205 = tpu.matmul %203, %204, %cst_128 {dimension_numbers = #tpu.dot_dimension_numbers<[1], [0], [0], [1], [0, 0, 1, 1], [], []>} : vector<16x512xbf16>, vector<512x512xbf16>, vector<16x512xf32> -> vector<16x512xf32>
    %c0_129 = arith.constant 0 : index
    %c0_130 = arith.constant 0 : index
    %206 = vector.load %arg14[%c0_129, %c0_130] : memref<8x512xf32, #tpu.memory_space<vmem>>, vector<1x512xf32>
    %c1_131 = arith.constant 1 : index
    %c0_132 = arith.constant 0 : index
    %207 = vector.load %arg14[%c1_131, %c0_132] : memref<8x512xf32, #tpu.memory_space<vmem>>, vector<1x512xf32>
    %c2_133 = arith.constant 2 : index
    %c0_134 = arith.constant 0 : index
    %208 = vector.load %arg14[%c2_133, %c0_134] : memref<8x512xf32, #tpu.memory_space<vmem>>, vector<1x512xf32>
    %209 = vector.broadcast %206 : vector<1x512xf32> to vector<16x512xf32>
    %210 = arith.addf %205, %209 : vector<16x512xf32>
    %cst_135 = arith.constant 0.000000e+00 : f32
    %211 = vector.broadcast %cst_135 : f32 to vector<16x512xf32>
    %212 = arith.maximumf %210, %211 : vector<16x512xf32>
    %213 = vector.broadcast %207 : vector<1x512xf32> to vector<16x512xf32>
    %214 = arith.mulf %212, %213 : vector<16x512xf32>
    %215 = vector.broadcast %208 : vector<1x512xf32> to vector<16x512xf32>
    %216 = arith.addf %214, %215 : vector<16x512xf32>
    %c0_136 = arith.constant 0 : index
    %c0_137 = arith.constant 0 : index
    %217 = vector.load %arg15[%c0_136, %c0_137] : memref<16x16xbf16, #tpu.memory_space<vmem>>, vector<16x16xbf16>
    %218 = arith.truncf %216 : vector<16x512xf32> to vector<16x512xbf16>
    %cst_138 = arith.constant dense<0.000000e+00> : vector<16x512xf32>
    %219 = tpu.matmul %217, %218, %cst_138 {dimension_numbers = #tpu.dot_dimension_numbers<[1], [0], [0], [1], [0, 0, 1, 1], [], []>} : vector<16x16xbf16>, vector<16x512xbf16>, vector<16x512xf32> -> vector<16x512xf32>
    %220 = arith.truncf %219 : vector<16x512xf32> to vector<16x512xbf16>
    %c0_139 = arith.constant 0 : index
    %c0_140 = arith.constant 0 : index
    %221 = vector.load %arg16[%c0_139, %c0_140] : memref<512x512xbf16, #tpu.memory_space<vmem>>, vector<512x512xbf16>
    %cst_141 = arith.constant dense<0.000000e+00> : vector<16x512xf32>
    %222 = tpu.matmul %220, %221, %cst_141 {dimension_numbers = #tpu.dot_dimension_numbers<[1], [0], [0], [1], [0, 0, 1, 1], [], []>} : vector<16x512xbf16>, vector<512x512xbf16>, vector<16x512xf32> -> vector<16x512xf32>
    %c0_142 = arith.constant 0 : index
    %c0_143 = arith.constant 0 : index
    %223 = vector.load %arg17[%c0_142, %c0_143] : memref<8x512xf32, #tpu.memory_space<vmem>>, vector<1x512xf32>
    %c1_144 = arith.constant 1 : index
    %c0_145 = arith.constant 0 : index
    %224 = vector.load %arg17[%c1_144, %c0_145] : memref<8x512xf32, #tpu.memory_space<vmem>>, vector<1x512xf32>
    %c2_146 = arith.constant 2 : index
    %c0_147 = arith.constant 0 : index
    %225 = vector.load %arg17[%c2_146, %c0_147] : memref<8x512xf32, #tpu.memory_space<vmem>>, vector<1x512xf32>
    %226 = vector.broadcast %223 : vector<1x512xf32> to vector<16x512xf32>
    %227 = arith.addf %222, %226 : vector<16x512xf32>
    %cst_148 = arith.constant 0.000000e+00 : f32
    %228 = vector.broadcast %cst_148 : f32 to vector<16x512xf32>
    %229 = arith.maximumf %227, %228 : vector<16x512xf32>
    %230 = vector.broadcast %224 : vector<1x512xf32> to vector<16x512xf32>
    %231 = arith.mulf %229, %230 : vector<16x512xf32>
    %232 = vector.broadcast %225 : vector<1x512xf32> to vector<16x512xf32>
    %233 = arith.addf %231, %232 : vector<16x512xf32>
    %c0_149 = arith.constant 0 : index
    %c0_150 = arith.constant 0 : index
    %234 = vector.load %arg18[%c0_149, %c0_150] : memref<16x512xf32, #tpu.memory_space<vmem>>, vector<16x512xf32>
    tpu.vector_store %arg18[%c0_149, %c0_150], %233 {strides = array<i32>} : memref<16x512xf32, #tpu.memory_space<vmem>>, vector<16x512xf32>,
    return
  }
}

</mosaic_0001>

<bundles_post_ra>
// kernel: _lambda_.1
= control target key start
LH: loop header
LB: loop body
LE: loop exit
PB: predicated region body
PF: predicated region fallthrough
CT: control target
= control target key end

     0   :  { %vm155_vm0 = vcmask 523264   ;;  %vm2511_vm1 = vcmask 261120   ;;  %vm5101_vm2 = vcmask 130048   ;;  %s15800_s1 = inlined_call_operand.vmem [shape: bf16[64,64], index: 1, kind: input, shape index: {}]   ;;  %s15801_s0 = inlined_call_operand.vmem [shape: bf16[128,64], index: 0, kind: input, shape index: {}]   ;;  %s15802_s3 = inlined_call_operand.vmem [shape: bf16[512,128], index: 3, kind: input, shape index: {}]   ;;  %s15803_s2 = inlined_call_operand.vmem [shape: f32[8,64], index: 2, kind: input, shape index: {}]   ;;  %s15804_s4 = inlined_call_operand.vmem [shape: bf16[1024,128], index: 4, kind: input, shape index: {}]   ;;  %s15805_s6 = inlined_call_operand.vmem [shape: bf16[256,32], index: 6, kind: input, shape index: {}]   ;;  %s15806_s7 = inlined_call_operand.vmem [shape: bf16[2048,256], index: 7, kind: input, shape index: {}]   ;;  %s15807_s5 = inlined_call_operand.vmem [shape: f32[8,128], index: 5, kind: input, shape index: {}]   ;;  %s15808_s9 = inlined_call_operand.vmem [shape: bf16[64,16], index: 9, kind: input, shape index: {}]   ;;  %s15809_s10 = inlined_call_operand.vmem [shape: bf16[1024,512], index: 10, kind: input, shape index: {}]   ;;  %s15810_s8 = inlined_call_operand.vmem [shape: f32[8,256], index: 8, kind: input, shape index: {}]   ;;  %s15811_s12 = inlined_call_operand.vmem [shape: bf16[16,16], index: 12, kind: input, shape index: {}, may-alias: {12,15}]   ;;  %s15812_s13 = inlined_call_operand.vmem [shape: bf16[512,512], index: 13, kind: input, shape index: {}]   ;;  %s15813_s11 = inlined_call_operand.vmem [shape: f32[8,512], index: 11, kind: input, shape index: {}]   ;;  %s15814_s15 = inlined_call_operand.vmem [shape: bf16[16,16], index: 15, kind: input, shape index: {}, may-alias: {12,15}]   ;;  %s15815_s16 = inlined_call_operand.vmem [shape: bf16[512,512], index: 16, kind: input, shape index: {}]   ;;  %s15816_s14 = inlined_call_operand.vmem [shape: f32[8,512], index: 14, kind: input, shape index: {}]   ;;  %s15817_s17 = inlined_call_operand.vmem [shape: f32[8,512], index: 17, kind: input, shape index: {}]   ;;  %s15818_s18 = inlined_call_operand.vmem [shape: f32[16,512], index: 18, kind: output, shape index: {}]  }
   0x1   :  { %15822 = sst [smem:[#allocation2_spill]] %s15800_s1  ;;  %v12554_v13 = vld [vmem:[%s15803_s2] ss:$0 sm:$0xff]  ;;  %v12560_v17 = vld [vmem:[%s15803_s2 + $0x1] ss:$0 sm:$0xff] }
   0x2   :  { %15823 = sst [smem:[#allocation3_spill]] %s15801_s0  ;;  %s15825_s29 = sld [smem:[#allocation2_spill]]  ;;  %v12569_v27 = vld [vmem:[%s15803_s2 + $0x2] ss:$0 sm:$0xff] }
   0x3   :  { %15824 = sst [smem:[#allocation4_spill]] %s15802_s3  ;;  %s15826_s22 = sld [smem:[#allocation3_spill]] }
   0x4   :  { %s15827_s26 = sld [smem:[#allocation4_spill]] }
   0x8   :  { %v11126_v0 = vld [vmem:[%s15825_s29] sm:$0xff]   ;;  %v11127_v1 = vld [vmem:[%s15825_s29 + $0x8] sm:$0xff]   ;;  %v11128_v2 = vld [vmem:[%s15825_s29 + $0x10] sm:$0xff]  }
   0x9   :  { %10617 = vmatprep.subr.bf16.mxu1 %v11126_v0  ;;  %v11130_v3 = vld [vmem:[%s15826_s22] sm:$0xff]   ;;  %v11129_v4 = vld [vmem:[%s15825_s29 + $0x18] sm:$0xff]   ;;  %v11131_v5 = vld [vmem:[%s15826_s22 + $0x8] sm:$0xff]  }
   0xa   :  { %10618 = vmatpush3.bf16.msra.mxu1 %v11126_v0  ;;  %10625 = vmatprep.mubr.msk.bf16.mxu1 %vm155_vm0, %v11130_v3  ;;  %v11132_v6 = vld [vmem:[%s15826_s22 + $0x10] sm:$0xff]   ;;  %v11133_v7 = vld [vmem:[%s15826_s22 + $0x18] sm:$0xff]   ;;  %v11134_v8 = vld [vmem:[%s15826_s22 + $0x20] sm:$0xff]  }
   0xb   :  { %10619 = vmatprep.subr.bf16.mxu1 %v11127_v1  ;;  %v11135_v9 = vld [vmem:[%s15826_s22 + $0x28] sm:$0xff]   ;;  %v11136_v10 = vld [vmem:[%s15826_s22 + $0x30] sm:$0xff]   ;;  %v11137_v11 = vld [vmem:[%s15826_s22 + $0x38] sm:$0xff]  }
   0xc   :  { %v11138_v12 = vld [vmem:[%s15827_s26] sm:$0xff]  }
   0xe   :  { %10620 = vmatpush3.bf16.msra.mxu1 %v11127_v1 }
   0xf   :  { %10621 = vmatprep.subr.bf16.mxu1 %v11128_v2 }
  0x12   :  { %10622 = vmatpush3.bf16.msra.mxu1 %v11128_v2 }
  0x13   :  { %10623 = vmatprep.subr.bf16.mxu1 %v11129_v4 }
  0x16   :  { %10624 = vmatpush3.bf16.msra.mxu1 %v11129_v4 }
  0x19   :  { %10626 = vmatmul.mubr.msk.bf16.vlgmr.msra.gmra.mrb[0].mxu1 %vm155_vm0, %v11131_v5 }
  0x1a   :  { %10629 = vmatprep.mubr.msk.bf16.mxu1 %vm155_vm0, %v11132_v6 }
  0x21   :  { %10630 = vmatmul.mubr.msk.bf16.gmra.mrb[4].mxu1 %vm155_vm0, %v11133_v7 }
  0x22   :  { %10633 = vmatprep.mubr.msk.bf16.mxu1 %vm155_vm0, %v11134_v8 }
  0x29   :  { %10634 = vmatmul.mubr.msk.bf16.gmra.mrb[8].mxu1 %vm155_vm0, %v11135_v9 }
  0x2a   :  { %10637 = vmatprep.mubr.msk.bf16.mxu1 %vm155_vm0, %v11136_v10 }
  0x31   :  { %10638 = vmatmul.mubr.msk.bf16.gmra.mrb[12].mxu1 %vm155_vm0, %v11137_v11  ;;  %v11166_v11 = vld [vmem:[%s15804_s4] sm:$0xff]  }
  0x32   :  { %10657 = vmatprep.mubr.bf16.mxu1 %v11138_v12  ;;  %10733 = vmatprep.subr.bf16.mxu0 %v11166_v11 }
  0x33   :  { %10734 = vmatpush3.bf16.msra.mxu0 %v11166_v11  ;;  %v11165_v11 = vld [vmem:[%s15827_s26 + $0xd8] sm:$0xff]  }
  0xec   :  { %v10627_v14 = vpop.f32.mrb[0].mxu1 }
  0xed   :  { %v223_v15 = vadd.f32 %v10627_v14, %v12554_v13  ;;  %v214_v16 = vpop.f32.mrb[1].mxu1 }
  0xee   :  { %v215_v18 = vadd.f32 %v12554_v13, %v214_v16  ;;  %v10628_v19 = vpop.f32.mrb[2].mxu1 }
  0xef   :  { %v279_v20 = vmax.f32 %v223_v15, 0.0  ;;  %v226_v21 = vadd.f32 %v10628_v19, %v12554_v13  ;;  %v217_v22 = vpop.f32.mrb[3].mxu1 }
  0xf0   :  { %v277_v23 = vmax.f32 %v215_v18, 0.0  ;;  %v218_v24 = vadd.f32 %v12554_v13, %v217_v22 }
  0xf1   :  { %v299_v25 = vmul.f32 %v12560_v17, %v279_v20  ;;  %v280_v26 = vmax.f32 %v226_v21, 0.0 }
  0xf2   :  { %v297_v28 = vmul.f32 %v12560_v17, %v277_v23  ;;  %v278_v29 = vmax.f32 %v218_v24, 0.0 }
  0xf3   :  { %v300_v30 = vmul.f32 %v12560_v17, %v280_v26  ;;  %v319_v33 = vadd.f32 %v12569_v27, %v299_v25 }
  0xf4   :  { %v298_v31 = vmul.f32 %v12560_v17, %v278_v29  ;;  %v10631_v32 = vpop.f32.mrb[4].mxu1  ;;  %v317_v37 = vadd.f32 %v12569_v27, %v297_v28 }
  0xf5   :  { %v320_v34 = vadd.f32 %v12569_v27, %v300_v30  ;;  %v239_v35 = vadd.f32 %v10631_v32, %v12554_v13  ;;  %v230_v36 = vpop.f32.mrb[5].mxu1 }
  0xf6   :  { %v318_v38 = vadd.f32 %v12569_v27, %v298_v31  ;;  %v231_v39 = vadd.f32 %v12554_v13, %v230_v36  ;;  %v10632_v40 = vpop.f32.mrb[6].mxu1  ;;  %v11169_v36 = vld [vmem:[%s15804_s4 + $0x8] sm:$0xff]  }
  0xf7   :  { %v283_v41 = vmax.f32 %v239_v35, 0.0  ;;  %v242_v42 = vadd.f32 %v10632_v40, %v12554_v13  ;;  %v233_v43 = vpop.f32.mrb[7].mxu1  ;;  %v398_v44 = vpack.c.bf16 %v320_v34, %v319_v33  ;;  %10735 = vmatprep.subr.bf16.mxu0 %v11169_v36 }
  0xf8   :  { %v281_v45 = vmax.f32 %v231_v39, 0.0  ;;  %v234_v46 = vadd.f32 %v12554_v13, %v233_v43  ;;  %v397_v47 = vpack.c.bf16 %v318_v38, %v317_v37  ;;  %v11170_v37 = vld [vmem:[%s15804_s4 + $0x10] sm:$0xff]   ;;  %10736 = vmatpush3.bf16.msra.mxu0 %v11169_v36  ;;  %v11182_v36 = vld [vmem:[%s15804_s4 + $0x60] sm:$0xff]  }
  0xf9   :  { %v303_v48 = vmul.f32 %v12560_v17, %v283_v41  ;;  %v284_v49 = vmax.f32 %v242_v42, 0.0  ;;  %10737 = vmatprep.subr.bf16.mxu0 %v11170_v37 }
  0xfa   :  { %v301_v50 = vmul.f32 %v12560_v17, %v281_v45  ;;  %v282_v51 = vmax.f32 %v234_v46, 0.0  ;;  %10641 = vmatprep.subr.bf16.mxu1 %v397_v47  ;;  %v11139_v45 = vld [vmem:[%s15827_s26 + $0x8] sm:$0xff]   ;;  %v11141_v46 = vld [vmem:[%s15827_s26 + $0x18] sm:$0xff]  }
  0xfb   :  { %v304_v52 = vmul.f32 %v12560_v17, %v284_v49  ;;  %10642 = vmatpush3.bf16.msra.mxu1 %v397_v47  ;;  %v323_v55 = vadd.f32 %v12569_v27, %v303_v48  ;;  %v11142_v47 = vld [vmem:[%s15827_s26 + $0x20] sm:$0xff]   ;;  %v11143_v48 = vld [vmem:[%s15827_s26 + $0x28] sm:$0xff]   ;;  %v11144_v49 = vld [vmem:[%s15827_s26 + $0x30] sm:$0xff]  }
  0xfc   :  { %v302_v53 = vmul.f32 %v12560_v17, %v282_v51  ;;  %v10635_v54 = vpop.f32.mrb[8].mxu1  ;;  %10643 = vmatprep.subr.bf16.mxu1 %v398_v44  ;;  %v321_v59 = vadd.f32 %v12569_v27, %v301_v50  ;;  %10738 = vmatpush3.bf16.msra.mxu0 %v11170_v37  ;;  %v11145_v50 = vld [vmem:[%s15827_s26 + $0x38] sm:$0xff]   ;;  %v11146_v51 = vld [vmem:[%s15827_s26 + $0x40] sm:$0xff]  }
  0xfd   :  { %v324_v56 = vadd.f32 %v12569_v27, %v304_v52  ;;  %v255_v57 = vadd.f32 %v10635_v54, %v12554_v13  ;;  %v246_v58 = vpop.f32.mrb[9].mxu1  ;;  %v11147_v52 = vld [vmem:[%s15827_s26 + $0x48] sm:$0xff]   ;;  %v11149_v54 = vld [vmem:[%s15827_s26 + $0x58] sm:$0xff]  }
  0xfe   :  { %v322_v60 = vadd.f32 %v12569_v27, %v302_v53  ;;  %v247_v61 = vadd.f32 %v12554_v13, %v246_v58  ;;  %v10636_v62 = vpop.f32.mrb[10].mxu1  ;;  %v11148_v53 = vld [vmem:[%s15827_s26 + $0x50] sm:$0xff]   ;;  %v11153_v58 = vld [vmem:[%s15827_s26 + $0x78] sm:$0xff]  }
  0xff   :  { %v287_v63 = vmax.f32 %v255_v57, 0.0  ;;  %v258_v0 = vadd.f32 %v10636_v62, %v12554_v13  ;;  %v249_v1 = vpop.f32.mrb[11].mxu1  ;;  %10644 = vmatpush3.bf16.msra.mxu1 %v398_v44  ;;  %v400_v2 = vpack.c.bf16 %v324_v56, %v323_v55  ;;  %v11150_v55 = vld [vmem:[%s15827_s26 + $0x60] sm:$0xff]   ;;  %v11151_v56 = vld [vmem:[%s15827_s26 + $0x68] sm:$0xff]   ;;  %v11152_v57 = vld [vmem:[%s15827_s26 + $0x70] sm:$0xff]  }
 0x100   :  { %v285_v3 = vmax.f32 %v247_v61, 0.0  ;;  %v250_v4 = vadd.f32 %v12554_v13, %v249_v1  ;;  %v399_v5 = vpack.c.bf16 %v322_v60, %v321_v59  ;;  %v11154_v59 = vld [vmem:[%s15827_s26 + $0x80] sm:$0xff]   ;;  %v11155_v60 = vld [vmem:[%s15827_s26 + $0x88] sm:$0xff]   ;;  %v11156_v61 = vld [vmem:[%s15827_s26 + $0x90] sm:$0xff]  }
 0x101   :  { %v307_v6 = vmul.f32 %v12560_v17, %v287_v63  ;;  %v288_v7 = vmax.f32 %v258_v0, 0.0  ;;  %v11157_v62 = vld [vmem:[%s15827_s26 + $0x98] sm:$0xff]   ;;  %v11158_v63 = vld [vmem:[%s15827_s26 + $0xa0] sm:$0xff]   ;;  %v11159_v0 = vld [vmem:[%s15827_s26 + $0xa8] sm:$0xff]  }
 0x102   :  { %v305_v8 = vmul.f32 %v12560_v17, %v285_v3  ;;  %v286_v9 = vmax.f32 %v250_v4, 0.0  ;;  %10645 = vmatprep.subr.bf16.mxu1 %v399_v5  ;;  %v11160_v1 = vld [vmem:[%s15827_s26 + $0xb0] sm:$0xff]   ;;  %v11161_v3 = vld [vmem:[%s15827_s26 + $0xb8] sm:$0xff]   ;;  %v11173_v4 = vld [vmem:[%s15804_s4 + $0x28] sm:$0xff]  }
 0x103   :  { %v308_v10 = vmul.f32 %v12560_v17, %v288_v7  ;;  %10646 = vmatpush3.bf16.msra.mxu1 %v399_v5  ;;  %v327_v15 = vadd.f32 %v12569_v27, %v307_v6  ;;  %v11162_v5 = vld [vmem:[%s15827_s26 + $0xc0] sm:$0xff]   ;;  %v11177_v7 = vld [vmem:[%s15804_s4 + $0x30] sm:$0xff]  }
 0x104   :  { %v306_v12 = vmul.f32 %v12560_v17, %v286_v9  ;;  %v10639_v14 = vpop.f32.mrb[12].mxu1  ;;  %10647 = vmatprep.subr.bf16.mxu1 %v400_v2  ;;  %v325_v20 = vadd.f32 %v12569_v27, %v305_v8  ;;  %v11175_v6 = vld [vmem:[%s15804_s4 + $0x40] sm:$0xff]   ;;  %v11163_v8 = vld [vmem:[%s15827_s26 + $0xc8] sm:$0xff]   ;;  %v11164_v9 = vld [vmem:[%s15827_s26 + $0xd0] sm:$0xff]  }
 0x105   :  { %v328_v16 = vadd.f32 %v12569_v27, %v308_v10  ;;  %v271_v18 = vadd.f32 %v10639_v14, %v12554_v13  ;;  %v262_v19 = vpop.f32.mrb[13].mxu1  ;;  %v11179_v10 = vld [vmem:[%s15804_s4 + $0x38] sm:$0xff]   ;;  %v11168_v14 = vld [vmem:[%s15827_s26 + $0xe8] sm:$0xff]  }
 0x106   :  { %v326_v21 = vadd.f32 %v12569_v27, %v306_v12  ;;  %v263_v22 = vadd.f32 %v12554_v13, %v262_v19  ;;  %v10640_v23 = vpop.f32.mrb[14].mxu1  ;;  %v11167_v12 = vld [vmem:[%s15827_s26 + $0xe0] sm:$0xff]  }
 0x107   :  { %v291_v24 = vmax.f32 %v271_v18, 0.0  ;;  %v274_v25 = vadd.f32 %v10640_v23, %v12554_v13  ;;  %v265_v26 = vpop.f32.mrb[15].mxu1  ;;  %10648 = vmatpush3.bf16.msra.mxu1 %v400_v2  ;;  %v402_v28 = vpack.c.bf16 %v328_v16, %v327_v15  ;;  %v11172_v2 = vld [vmem:[%s15804_s4 + $0x18] sm:$0xff]   ;;  %v11174_v15 = vld [vmem:[%s15827_s26 + $0xf0] sm:$0xff]  }
 0x108   :  { %v289_v29 = vmax.f32 %v263_v22, 0.0  ;;  %v266_v30 = vadd.f32 %v12554_v13, %v265_v26  ;;  %v401_v31 = vpack.c.bf16 %v326_v21, %v325_v20  ;;  %10739 = vmatprep.subr.bf16.mxu0 %v11172_v2  ;;  %v11176_v16 = vld [vmem:[%s15827_s26 + $0xf8] sm:$0xff]  }
 0x109   :  { %v311_v32 = vmul.f32 %v12560_v17, %v291_v24  ;;  %v292_v33 = vmax.f32 %v274_v25, 0.0  ;;  %10740 = vmatpush3.bf16.msra.mxu0 %v11172_v2  ;;  %v11178_v24 = vld [vmem:[%s15804_s4 + $0x48] sm:$0xff]  }
 0x10a   :  { %v309_v34 = vmul.f32 %v12560_v17, %v289_v29  ;;  %v290_v35 = vmax.f32 %v266_v30, 0.0  ;;  %10649 = vmatprep.subr.bf16.mxu1 %v401_v31  ;;  %10745 = vmatprep.subr.bf16.mxu0 %v11175_v6 }
 0x10b   :  { %v312_v38 = vmul.f32 %v12560_v17, %v292_v33  ;;  %10650 = vmatpush3.bf16.msra.mxu1 %v401_v31  ;;  %v331_v39 = vadd.f32 %v12569_v27, %v311_v32  ;;  %v11181_v33 = vld [vmem:[%s15804_s4 + $0x58] sm:$0xff]  }
 0x10c   :  { %v310_v13 = vmul.f32 %v12560_v17, %v290_v35  ;;  %10651 = vmatprep.subr.bf16.mxu1 %v402_v28  ;;  %v329_v41 = vadd.f32 %v12569_v27, %v309_v34  ;;  %v11171_v17 = vld [vmem:[%s15804_s4 + $0x20] sm:$0xff]  }
 0x10d   :  { %v332_v40 = vadd.f32 %v12569_v27, %v312_v38 }
 0x10e   :  { %v330_v42 = vadd.f32 %v12569_v27, %v310_v13  ;;  %v11140_v27 = vld [vmem:[%s15827_s26 + $0x10] sm:$0xff]  }
 0x10f   :  { %10652 = vmatpush3.bf16.msra.mxu1 %v402_v28  ;;  %v404_v43 = vpack.c.bf16 %v332_v40, %v331_v39  ;;  %v11180_v28 = vld [vmem:[%s15804_s4 + $0x50] sm:$0xff]   ;;  %v11183_v40 = vld [vmem:[%s15804_s4 + $0x68] sm:$0xff]  }
 0x110   :  { %v403_v44 = vpack.c.bf16 %v330_v42, %v329_v41 }
 0x112   :  { %10653 = vmatprep.subr.bf16.mxu1 %v403_v44 }
 0x113   :  { %10654 = vmatpush3.bf16.msra.mxu1 %v403_v44 }
 0x114   :  { %10655 = vmatprep.subr.bf16.mxu1 %v404_v43 }
 0x117   :  { %10656 = vmatpush3.bf16.msra.mxu1 %v404_v43  ;;  %v11184_v43 = vld [vmem:[%s15804_s4 + $0x70] sm:$0xff]  }
 0x118   :  { %10721 = vmatprep.subr.bf16.mxu1 %v11171_v17 }
 0x11a   :  { %10658 = vmatmul.mubr.bf16.vlgmr.msra.gmra.mrb[16].mxu1 %v11139_v45 }
 0x11b   :  { %10661 = vmatprep.mubr.bf16.mxu1 %v11140_v27  ;;  %10722 = vmatpush3.bf16.msra.mxu1 %v11171_v17 }
 0x11c   :  { %10723 = vmatprep.subr.bf16.mxu1 %v11173_v4 }
 0x11f   :  { %10724 = vmatpush3.bf16.msra.mxu1 %v11173_v4 }
 0x120   :  { %10725 = vmatprep.subr.bf16.mxu1 %v11177_v7 }
 0x122   :  { %10662 = vmatmul.mubr.bf16.gmra.mrb[20].mxu1 %v11141_v46  ;;  %v11185_v46 = vld [vmem:[%s15804_s4 + $0x78] sm:$0xff]  }
 0x123   :  { %10665 = vmatprep.mubr.bf16.mxu1 %v11142_v47  ;;  %10726 = vmatpush3.bf16.msra.mxu1 %v11177_v7 }
 0x124   :  { %10727 = vmatprep.subr.bf16.mxu1 %v11179_v10 }
 0x127   :  { %10728 = vmatpush3.bf16.msra.mxu1 %v11179_v10 }
 0x12a   :  { %10666 = vmatmul.mubr.bf16.gmra.mrb[24].mxu1 %v11143_v48  ;;  %v11186_v48 = vld [vmem:[%s15804_s4 + $0x80] sm:$0xff]  }
 0x12b   :  { %10669 = vmatprep.mubr.bf16.mxu1 %v11144_v49 }
 0x132   :  { %10670 = vmatmul.mubr.bf16.gmra.mrb[28].mxu1 %v11145_v50 }
 0x133   :  { %10673 = vmatprep.mubr.bf16.mxu1 %v11146_v51 }
 0x13a   :  { %10674 = vmatmul.mubr.bf16.gmra.mrb[32].mxu1 %v11147_v52 }
 0x13b   :  { %10677 = vmatprep.mubr.bf16.mxu1 %v11148_v53 }
 0x142   :  { %10678 = vmatmul.mubr.bf16.gmra.mrb[36].mxu1 %v11149_v54  ;;  %v11187_v54 = vld [vmem:[%s15804_s4 + $0x88] sm:$0xff]  }
 0x143   :  { %10681 = vmatprep.mubr.bf16.mxu1 %v11150_v55 }
 0x14a   :  { %10682 = vmatmul.mubr.bf16.gmra.mrb[40].mxu1 %v11151_v56  ;;  %v11188_v56 = vld [vmem:[%s15804_s4 + $0x90] sm:$0xff]  }
 0x14b   :  { %10685 = vmatprep.mubr.bf16.mxu1 %v11152_v57 }
 0x152   :  { %10686 = vmatmul.mubr.bf16.gmra.mrb[44].mxu1 %v11153_v58 }
 0x153   :  { %10689 = vmatprep.mubr.bf16.mxu1 %v11154_v59 }
 0x15a   :  { %10690 = vmatmul.mubr.bf16.gmra.mrb[48].mxu1 %v11155_v60 }
 0x15b   :  { %10693 = vmatprep.mubr.bf16.mxu1 %v11156_v61 }
 0x162   :  { %10694 = vmatmul.mubr.bf16.gmra.mrb[52].mxu1 %v11157_v62  ;;  %v11189_v62 = vld [vmem:[%s15804_s4 + $0x98] sm:$0xff]  }
 0x163   :  { %10697 = vmatprep.mubr.bf16.mxu1 %v11158_v63 }
 0x16a   :  { %10698 = vmatmul.mubr.bf16.gmra.mrb[56].mxu1 %v11159_v0  ;;  %v11190_v0 = vld [vmem:[%s15804_s4 + $0xa0] sm:$0xff]  }
 0x16b   :  { %10701 = vmatprep.mubr.bf16.mxu1 %v11160_v1 }
 0x172   :  { %10702 = vmatmul.mubr.bf16.gmra.mrb[60].mxu1 %v11161_v3 }
 0x173   :  { %10705 = vmatprep.mubr.bf16.mxu1 %v11162_v5 }
 0x17a   :  { %10706 = vmatmul.mubr.bf16.gmra.mrb[64].mxu1 %v11163_v8  ;;  %v11192_v8 = vld [vmem:[%s15804_s4 + $0xb0] sm:$0xff]  }
 0x17b   :  { %10709 = vmatprep.mubr.bf16.mxu1 %v11164_v9 }
 0x182   :  { %10710 = vmatmul.mubr.bf16.gmra.mrb[68].mxu1 %v11165_v11 }
 0x183   :  { %10713 = vmatprep.mubr.bf16.mxu1 %v11167_v12 }
 0x18a   :  { %10714 = vmatmul.mubr.bf16.gmra.mrb[72].mxu1 %v11168_v14 }
 0x18b   :  { %10717 = vmatprep.mubr.bf16.mxu1 %v11174_v15  ;;  %v11193_v15 = vld [vmem:[%s15804_s4 + $0xb8] sm:$0xff]  }
 0x192   :  { %10718 = vmatmul.mubr.bf16.gmra.mrb[76].mxu1 %v11176_v16 }
 0x1ed   :  { %v10659_v18 = vpop.f32.mrb[16].mxu1 }
 0x1ee   :  { %v631_v19 = vpop.f32.mrb[17].mxu1 }
 0x1ef   :  { %v10660_v20 = vpop.f32.mrb[18].mxu1 }
 0x1f0   :  { %v887_v21 = vpack.c.bf16 %v10660_v20, %v10659_v18  ;;  %v634_v22 = vpop.f32.mrb[19].mxu1  ;;  %v11194_v18 = vld [vmem:[%s15804_s4 + $0xc0] sm:$0xff]  }
 0x1f1   :  { %v886_v23 = vpack.c.bf16 %v634_v22, %v631_v19 }
 0x1f3   :  { %10741 = vmatprep.mubr.msk.bf16.mxu0 %vm155_vm0, %v886_v23 }
 0x1f4   :  { %10742 = vmatmul.mubr.msk.bf16.vlgmr.msra.gmra.mrb[0].mxu0 %vm155_vm0, %v887_v21 }
 0x1f5   :  { %10746 = vmatpush3.bf16.msra.mxu0 %v11175_v6  ;;  %v10663_v25 = vpop.f32.mrb[20].mxu1  ;;  %v11191_v6 = vld [vmem:[%s15804_s4 + $0xa8] sm:$0xff]  }
 0x1f6   :  { %v647_v26 = vpop.f32.mrb[21].mxu1  ;;  %10747 = vmatprep.subr.bf16.mxu0 %v11178_v24 }
 0x1f7   :  { %v10664_v29 = vpop.f32.mrb[22].mxu1 }
 0x1f8   :  { %v889_v30 = vpack.c.bf16 %v10664_v29, %v10663_v25  ;;  %v650_v31 = vpop.f32.mrb[23].mxu1 }
 0x1f9   :  { %v888_v32 = vpack.c.bf16 %v650_v31, %v647_v26  ;;  %10748 = vmatpush3.bf16.msra.mxu0 %v11178_v24  ;;  %v11195_v24 = vld [vmem:[%s15804_s4 + $0xc8] sm:$0xff]   ;;  %v11196_v26 = vld [vmem:[%s15804_s4 + $0xd0] sm:$0xff]  }
 0x1fa   :  { %10749 = vmatprep.subr.bf16.mxu0 %v11180_v28 }
 0x1fb   :  { %10729 = vmatprep.mubr.msk.bf16.mxu1 %vm155_vm0, %v888_v32 }
 0x1fc   :  { %10730 = vmatmul.mubr.msk.bf16.vlgmr.msra.gmra.mrb[80].mxu1 %vm155_vm0, %v889_v30 }
 0x1fd   :  { %10750 = vmatpush3.bf16.msra.mxu0 %v11180_v28  ;;  %v10667_v34 = vpop.f32.mrb[24].mxu1 }
 0x1fe   :  { %v663_v35 = vpop.f32.mrb[25].mxu1  ;;  %10751 = vmatprep.subr.bf16.mxu0 %v11181_v33 }
 0x1ff   :  { %v10668_v37 = vpop.f32.mrb[26].mxu1 }
 0x200   :  { %v891_v38 = vpack.c.bf16 %v10668_v37, %v10667_v34  ;;  %v666_v13 = vpop.f32.mrb[27].mxu1 }
 0x201   :  { %v890_v39 = vpack.c.bf16 %v666_v13, %v663_v35  ;;  %10752 = vmatpush3.bf16.msra.mxu0 %v11181_v33  ;;  %v11197_v33 = vld [vmem:[%s15804_s4 + $0xd8] sm:$0xff]   ;;  %v11198_v35 = vld [vmem:[%s15804_s4 + $0xe0] sm:$0xff]  }
 0x202   :  { %10757 = vmatprep.subr.bf16.mxu0 %v11182_v36 }
 0x203   :  { %10753 = vmatprep.mubr.msk.bf16.mxu0 %vm155_vm0, %v890_v39 }
 0x204   :  { %10754 = vmatmul.mubr.msk.bf16.vlgmr.msra.gmra.mrb[0].mxu0 %vm155_vm0, %v891_v38 }
 0x205   :  { %10758 = vmatpush3.bf16.msra.mxu0 %v11182_v36  ;;  %v10671_v41 = vpop.f32.mrb[28].mxu1 }
 0x206   :  { %10759 = vmatprep.subr.bf16.mxu0 %v11183_v40  ;;  %v679_v42 = vpop.f32.mrb[29].mxu1 }
 0x207   :  { %v10672_v44 = vpop.f32.mrb[30].mxu1 }
 0x208   :  { %v893_v17 = vpack.c.bf16 %v10672_v44, %v10671_v41  ;;  %v682_v45 = vpop.f32.mrb[31].mxu1 }
 0x209   :  { %10760 = vmatpush3.bf16.msra.mxu0 %v11183_v40  ;;  %v892_v27 = vpack.c.bf16 %v682_v45, %v679_v42  ;;  %v11199_v40 = vld [vmem:[%s15804_s4 + $0xe8] sm:$0xff]   ;;  %v11200_v42 = vld [vmem:[%s15804_s4 + $0xf0] sm:$0xff]  }
 0x20a   :  { %10761 = vmatprep.subr.bf16.mxu0 %v11184_v43 }
 0x20b   :  { %10765 = vmatprep.mubr.msk.bf16.mxu0 %vm155_vm0, %v892_v27 }
 0x20d   :  { %10762 = vmatpush3.bf16.msra.mxu0 %v11184_v43  ;;  %v10675_v47 = vpop.f32.mrb[32].mxu1 }
 0x20e   :  { %10763 = vmatprep.subr.bf16.mxu0 %v11185_v46  ;;  %v695_v49 = vpop.f32.mrb[33].mxu1 }
 0x20f   :  { %v10676_v50 = vpop.f32.mrb[34].mxu1 }
 0x210   :  { %v895_v51 = vpack.c.bf16 %v10676_v50, %v10675_v47  ;;  %v698_v52 = vpop.f32.mrb[35].mxu1 }
 0x211   :  { %10764 = vmatpush3.bf16.msra.mxu0 %v11185_v46  ;;  %v894_v53 = vpack.c.bf16 %v698_v52, %v695_v49  ;;  %v11201_v46 = vld [vmem:[%s15804_s4 + $0xf8] sm:$0xff]  }
 0x212   :  { %10769 = vmatprep.subr.bf16.mxu0 %v11186_v48 }
 0x214   :  { %10766 = vmatmul.mubr.msk.bf16.vlgmr.msra.gmra.mrb[0].mxu0 %vm155_vm0, %v893_v17 }
 0x215   :  { %10770 = vmatpush3.bf16.msra.mxu0 %v11186_v48  ;;  %10777 = vmatprep.mubr.msk.bf16.mxu0 %vm155_vm0, %v894_v53  ;;  %v10679_v55 = vpop.f32.mrb[36].mxu1  ;;  %v11202_v48 = vld [vmem:[%s15804_s4 + $0x100] sm:$0xff]  }
 0x216   :  { %10771 = vmatprep.subr.bf16.mxu0 %v11187_v54  ;;  %v711_v57 = vpop.f32.mrb[37].mxu1 }
 0x217   :  { %v10680_v58 = vpop.f32.mrb[38].mxu1 }
 0x218   :  { %v897_v59 = vpack.c.bf16 %v10680_v58, %v10679_v55  ;;  %v714_v60 = vpop.f32.mrb[39].mxu1 }
 0x219   :  { %10772 = vmatpush3.bf16.msra.mxu0 %v11187_v54  ;;  %v896_v61 = vpack.c.bf16 %v714_v60, %v711_v57  ;;  %v11203_v54 = vld [vmem:[%s15804_s4 + $0x108] sm:$0xff]  }
 0x21a   :  { %10773 = vmatprep.subr.bf16.mxu0 %v11188_v56 }
 0x21d   :  { %10774 = vmatpush3.bf16.msra.mxu0 %v11188_v56  ;;  %v12776_v63 = vpop.f32.mrb[40].mxu1  ;;  %v11204_v56 = vld [vmem:[%s15804_s4 + $0x110] sm:$0xff]  }
 0x21e   :  { %10775 = vmatprep.subr.bf16.mxu0 %v11189_v62  ;;  %v727_v1 = vpop.f32.mrb[41].mxu1 }
 0x21f   :  { %v10684_v2 = vpop.f32.mrb[42].mxu1 }
 0x220   :  { %v899_v3 = vpack.c.bf16 %v10684_v2, %v12776_v63  ;;  %v730_v4 = vpop.f32.mrb[43].mxu1 }
 0x221   :  { %10776 = vmatpush3.bf16.msra.mxu0 %v11189_v62  ;;  %v898_v5 = vpack.c.bf16 %v730_v4, %v727_v1  ;;  %v11205_v62 = vld [vmem:[%s15804_s4 + $0x118] sm:$0xff]  }
 0x222   :  { %10781 = vmatprep.subr.bf16.mxu0 %v11190_v0 }
 0x224   :  { %10778 = vmatmul.mubr.msk.bf16.vlgmr.msra.gmra.mrb[0].mxu0 %vm155_vm0, %v895_v51 }
 0x225   :  { %10782 = vmatpush3.bf16.msra.mxu0 %v11190_v0  ;;  %10789 = vmatprep.mubr.msk.bf16.mxu0 %vm155_vm0, %v896_v61  ;;  %v12787_v7 = vpop.f32.mrb[44].mxu1  ;;  %v11206_v0 = vld [vmem:[%s15804_s4 + $0x120] sm:$0xff]  }
 0x226   :  { %10783 = vmatprep.subr.bf16.mxu0 %v11191_v6  ;;  %v743_v9 = vpop.f32.mrb[45].mxu1 }
 0x227   :  { %v12792_v10 = vpop.f32.mrb[46].mxu1 }
 0x228   :  { %v901_v11 = vpack.c.bf16 %v12792_v10, %v12787_v7  ;;  %v746_v12 = vpop.f32.mrb[47].mxu1 }
 0x229   :  { %10784 = vmatpush3.bf16.msra.mxu0 %v11191_v6  ;;  %v900_v14 = vpack.c.bf16 %v746_v12, %v743_v9  ;;  %v11207_v6 = vld [vmem:[%s15804_s4 + $0x128] sm:$0xff]  }
 0x22a   :  { %10785 = vmatprep.subr.bf16.mxu0 %v11192_v8 }
 0x22d   :  { %10786 = vmatpush3.bf16.msra.mxu0 %v11192_v8  ;;  %v12799_v16 = vpop.f32.mrb[48].mxu1  ;;  %v11208_v8 = vld [vmem:[%s15804_s4 + $0x130] sm:$0xff]  }
 0x22e   :  { %10787 = vmatprep.subr.bf16.mxu0 %v11193_v15  ;;  %v12804_v19 = vpop.f32.mrb[49].mxu1 }
 0x22f   :  { %v12806_v20 = vpop.f32.mrb[50].mxu1 }
 0x230   :  { %v903_v21 = vpack.c.bf16 %v12806_v20, %v12799_v16  ;;  %v762_v22 = vpop.f32.mrb[51].mxu1  ;;  %v11210_v16 = vld [vmem:[%s15804_s4 + $0x140] sm:$0xff]   ;;  %v11213_v20 = vld [vmem:[%s15804_s4 + $0x158] sm:$0xff]  }
 0x231   :  { %10788 = vmatpush3.bf16.msra.mxu0 %v11193_v15  ;;  %v902_v23 = vpack.c.bf16 %v762_v22, %v12804_v19  ;;  %v11209_v15 = vld [vmem:[%s15804_s4 + $0x138] sm:$0xff]   ;;  %v11212_v19 = vld [vmem:[%s15804_s4 + $0x150] sm:$0xff]   ;;  %v11215_v22 = vld [vmem:[%s15804_s4 + $0x168] sm:$0xff]  }
 0x232   :  { %10793 = vmatprep.subr.bf16.mxu0 %v11194_v18 }
 0x234   :  { %10790 = vmatmul.mubr.msk.bf16.vlgmr.msra.gmra.mrb[0].mxu0 %vm155_vm0, %v897_v59 }
 0x235   :  { %10794 = vmatpush3.bf16.msra.mxu0 %v11194_v18  ;;  %10801 = vmatprep.mubr.msk.bf16.mxu0 %vm155_vm0, %v898_v5  ;;  %v12816_v25 = vpop.f32.mrb[52].mxu1  ;;  %v11211_v18 = vld [vmem:[%s15804_s4 + $0x148] sm:$0xff]  }
 0x236   :  { %10795 = vmatprep.subr.bf16.mxu0 %v11195_v24  ;;  %v12821_v28 = vpop.f32.mrb[53].mxu1 }
 0x237   :  { %v12823_v29 = vpop.f32.mrb[54].mxu1 }
 0x238   :  { %v905_v30 = vpack.c.bf16 %v12823_v29, %v12816_v25  ;;  %v12827_v31 = vpop.f32.mrb[55].mxu1  ;;  %v11218_v25 = vld [vmem:[%s15804_s4 + $0x180] sm:$0xff]   ;;  %v11221_v29 = vld [vmem:[%s15804_s4 + $0x198] sm:$0xff]  }
 0x239   :  { %10796 = vmatpush3.bf16.msra.mxu0 %v11195_v24  ;;  %v904_v32 = vpack.c.bf16 %v12827_v31, %v12821_v28  ;;  %v11217_v24 = vld [vmem:[%s15804_s4 + $0x178] sm:$0xff]   ;;  %v11220_v28 = vld [vmem:[%s15804_s4 + $0x190] sm:$0xff]   ;;  %v11223_v31 = vld [vmem:[%s15804_s4 + $0x1a8] sm:$0xff]  }
 0x23a   :  { %10797 = vmatprep.subr.bf16.mxu0 %v11196_v26 }
 0x23d   :  { %10798 = vmatpush3.bf16.msra.mxu0 %v11196_v26  ;;  %v12834_v34 = vpop.f32.mrb[56].mxu1  ;;  %v11219_v26 = vld [vmem:[%s15804_s4 + $0x188] sm:$0xff]  }
 0x23e   :  { %10799 = vmatprep.subr.bf16.mxu0 %v11197_v33  ;;  %v12839_v36 = vpop.f32.mrb[57].mxu1 }
 0x23f   :  { %v12841_v37 = vpop.f32.mrb[58].mxu1 }
 0x240   :  { %v907_v38 = vpack.c.bf16 %v12841_v37, %v12834_v34  ;;  %v12845_v13 = vpop.f32.mrb[59].mxu1  ;;  %v11226_v34 = vld [vmem:[%s15804_s4 + $0x1c0] sm:$0xff]   ;;  %v11229_v37 = vld [vmem:[%s15804_s4 + $0x1d8] sm:$0xff]  }
 0x241   :  { %10800 = vmatpush3.bf16.msra.mxu0 %v11197_v33  ;;  %v906_v39 = vpack.c.bf16 %v12845_v13, %v12839_v36  ;;  %v11225_v33 = vld [vmem:[%s15804_s4 + $0x1b8] sm:$0xff]   ;;  %v11228_v36 = vld [vmem:[%s15804_s4 + $0x1d0] sm:$0xff]   ;;  %v11231_v13 = vld [vmem:[%s15804_s4 + $0x1e8] sm:$0xff]  }
 0x242   :  { %10805 = vmatprep.subr.bf16.mxu0 %v11198_v35 }
 0x244   :  { %10802 = vmatmul.mubr.msk.bf16.vlgmr.msra.gmra.mrb[0].mxu0 %vm155_vm0, %v899_v3 }
 0x245   :  { %10806 = vmatpush3.bf16.msra.mxu0 %v11198_v35  ;;  %10813 = vmatprep.mubr.msk.bf16.mxu0 %vm155_vm0, %v900_v14  ;;  %v12854_v41 = vpop.f32.mrb[60].mxu1  ;;  %v11227_v35 = vld [vmem:[%s15804_s4 + $0x1c8] sm:$0xff]  }
 0x246   :  { %10807 = vmatprep.subr.bf16.mxu0 %v11199_v40  ;;  %v12859_v43 = vpop.f32.mrb[61].mxu1 }
 0x247   :  { %v12861_v44 = vpop.f32.mrb[62].mxu1 }
 0x248   :  { %v909_v17 = vpack.c.bf16 %v12861_v44, %v12854_v41  ;;  %v12865_v45 = vpop.f32.mrb[63].mxu1 }
 0x249   :  { %10808 = vmatpush3.bf16.msra.mxu0 %v11199_v40  ;;  %v908_v27 = vpack.c.bf16 %v12865_v45, %v12859_v43  ;;  %v11233_v40 = vld [vmem:[%s15804_s4 + $0x1f8] sm:$0xff]   ;;  %v9626_v45 = vld [vmem:[%s15807_s5] ss:$0 sm:$0xff] }
 0x24a   :  { %10809 = vmatprep.subr.bf16.mxu0 %v11200_v42 }
 0x24d   :  { %10810 = vmatpush3.bf16.msra.mxu0 %v11200_v42  ;;  %v12872_v47 = vpop.f32.mrb[64].mxu1 }
 0x24e   :  { %10811 = vmatprep.subr.bf16.mxu0 %v11201_v46  ;;  %v12877_v49 = vpop.f32.mrb[65].mxu1 }
 0x24f   :  { %v12879_v50 = vpop.f32.mrb[66].mxu1 }
 0x250   :  { %v911_v51 = vpack.c.bf16 %v12879_v50, %v12872_v47  ;;  %v12883_v52 = vpop.f32.mrb[67].mxu1 }
 0x251   :  { %10812 = vmatpush3.bf16.msra.mxu0 %v11201_v46  ;;  %v910_v53 = vpack.c.bf16 %v12883_v52, %v12877_v49 }
 0x252   :  { %10817 = vmatprep.subr.bf16.mxu0 %v11202_v48 }
 0x254   :  { %10814 = vmatmul.mubr.msk.bf16.vlgmr.msra.gmra.mrb[0].mxu0 %vm155_vm0, %v901_v11 }
 0x255   :  { %10818 = vmatpush3.bf16.msra.mxu0 %v11202_v48  ;;  %10825 = vmatprep.mubr.msk.bf16.mxu0 %vm155_vm0, %v902_v23  ;;  %v12895_v55 = vpop.f32.mrb[68].mxu1  ;;  %v11216_v23 = vld [vmem:[%s15804_s4 + $0x170] sm:$0xff]   ;;  %v9627_v48 = vld [vmem:[%s15807_s5 + $0x1] ss:$0 sm:$0xff] }
 0x256   :  { %10819 = vmatprep.subr.bf16.mxu0 %v11203_v54  ;;  %v12900_v57 = vpop.f32.mrb[69].mxu1 }
 0x257   :  { %v12902_v58 = vpop.f32.mrb[70].mxu1 }
 0x258   :  { %v913_v59 = vpack.c.bf16 %v12902_v58, %v12895_v55  ;;  %v12906_v60 = vpop.f32.mrb[71].mxu1 }
 0x259   :  { %10820 = vmatpush3.bf16.msra.mxu0 %v11203_v54  ;;  %v912_v61 = vpack.c.bf16 %v12906_v60, %v12900_v57 }
 0x25a   :  { %10821 = vmatprep.subr.bf16.mxu0 %v11204_v56 }
 0x25d   :  { %10822 = vmatpush3.bf16.msra.mxu0 %v11204_v56  ;;  %v12913_v63 = vpop.f32.mrb[72].mxu1 }
 0x25e   :  { %10823 = vmatprep.subr.bf16.mxu0 %v11205_v62  ;;  %v12918_v1 = vpop.f32.mrb[73].mxu1 }
 0x25f   :  { %v12920_v2 = vpop.f32.mrb[74].mxu1 }
 0x260   :  { %v915_v3 = vpack.c.bf16 %v12920_v2, %v12913_v63  ;;  %v12924_v4 = vpop.f32.mrb[75].mxu1 }
 0x261   :  { %10824 = vmatpush3.bf16.msra.mxu0 %v11205_v62  ;;  %v914_v5 = vpack.c.bf16 %v12924_v4, %v12918_v1 }
 0x262   :  { %10829 = vmatprep.subr.bf16.mxu0 %v11206_v0 }
 0x264   :  { %10826 = vmatmul.mubr.msk.bf16.vlgmr.msra.gmra.mrb[0].mxu0 %vm155_vm0, %v903_v21  ;;  %v11214_v21 = vld [vmem:[%s15804_s4 + $0x160] sm:$0xff]  }
 0x265   :  { %10830 = vmatpush3.bf16.msra.mxu0 %v11206_v0  ;;  %10837 = vmatprep.mubr.msk.bf16.mxu0 %vm155_vm0, %v904_v32  ;;  %v12939_v7 = vpop.f32.mrb[76].mxu1  ;;  %v11224_v32 = vld [vmem:[%s15804_s4 + $0x1b0] sm:$0xff]   ;;  %v9628_v0 = vld [vmem:[%s15807_s5 + $0x2] ss:$0 sm:$0xff] }
 0x266   :  { %10831 = vmatprep.subr.bf16.mxu0 %v11207_v6  ;;  %v12944_v9 = vpop.f32.mrb[77].mxu1 }
 0x267   :  { %v12946_v10 = vpop.f32.mrb[78].mxu1 }
 0x268   :  { %v917_v11 = vpack.c.bf16 %v12946_v10, %v12939_v7  ;;  %v12950_v12 = vpop.f32.mrb[79].mxu1  ;;  %v11235_v10 = vld [vmem:[%s15805_s6 + $0x8] sm:$0xff]  }
 0x269   :  { %10832 = vmatpush3.bf16.msra.mxu0 %v11207_v6  ;;  %v916_v14 = vpack.c.bf16 %v12950_v12, %v12944_v9  ;;  %v11242_v9 = vld [vmem:[%s15806_s7 + $0x84] ss:$8 sps:$4 sm:$0xff]   ;;  %v11240_v12 = vld [vmem:[%s15806_s7 + $0x80] ss:$8 sps:$4 sm:$0xff]  }
 0x26a   :  { %10833 = vmatprep.subr.bf16.mxu0 %v11208_v8 }
 0x26d   :  { %10834 = vmatpush3.bf16.msra.mxu0 %v11208_v8 }
 0x26e   :  { %10835 = vmatprep.subr.bf16.mxu0 %v11209_v15 }
 0x271   :  { %10836 = vmatpush3.bf16.msra.mxu0 %v11209_v15  ;;  %v11243_v15 = vld [vmem:[%s15806_s7 + $0x90] ss:$8 sps:$4 sm:$0xff]  }
 0x272   :  { %10841 = vmatprep.subr.bf16.mxu0 %v11210_v16 }
 0x274   :  { %10838 = vmatmul.mubr.msk.bf16.vlgmr.msra.gmra.mrb[0].mxu0 %vm155_vm0, %v905_v30  ;;  %v11222_v30 = vld [vmem:[%s15804_s4 + $0x1a0] sm:$0xff]  }
 0x275   :  { %10842 = vmatpush3.bf16.msra.mxu0 %v11210_v16  ;;  %10849 = vmatprep.mubr.msk.bf16.mxu0 %vm155_vm0, %v906_v39  ;;  %v11232_v39 = vld [vmem:[%s15804_s4 + $0x1f0] sm:$0xff]   ;;  %v11249_v16 = vld [vmem:[%s15806_s7 + $0xa4] ss:$8 sps:$4 sm:$0xff]  }
 0x276   :  { %10843 = vmatprep.subr.bf16.mxu0 %v11211_v18 }
 0x279   :  { %10844 = vmatpush3.bf16.msra.mxu0 %v11211_v18  ;;  %v11237_v18 = vld [vmem:[%s15805_s6 + $0x18] sm:$0xff]  }
 0x27a   :  { %10845 = vmatprep.subr.bf16.mxu0 %v11212_v19 }
 0x27d   :  { %10846 = vmatpush3.bf16.msra.mxu0 %v11212_v19  ;;  %v11238_v19 = vld [vmem:[%s15805_s6 + $0x20] sm:$0xff]  }
 0x27e   :  { %10847 = vmatprep.subr.bf16.mxu0 %v11213_v20 }
 0x281   :  { %10848 = vmatpush3.bf16.msra.mxu0 %v11213_v20  ;;  %v11247_v20 = vld [vmem:[%s15806_s7 + $0xa0] ss:$8 sps:$4 sm:$0xff]  }
 0x282   :  { %10853 = vmatprep.subr.bf16.mxu0 %v11214_v21 }
 0x284   :  { %10850 = vmatmul.mubr.msk.bf16.vlgmr.msra.gmra.mrb[0].mxu0 %vm155_vm0, %v907_v38  ;;  %v11230_v38 = vld [vmem:[%s15804_s4 + $0x1e0] sm:$0xff]  }
 0x285   :  { %10854 = vmatpush3.bf16.msra.mxu0 %v11214_v21  ;;  %10861 = vmatprep.mubr.msk.bf16.mxu0 %vm155_vm0, %v908_v27  ;;  %v11254_v21 = vld [vmem:[%s15806_s7 + $0xb4] ss:$8 sps:$4 sm:$0xff]  }
 0x286   :  { %10855 = vmatprep.subr.bf16.mxu0 %v11215_v22 }
 0x289   :  { %10856 = vmatpush3.bf16.msra.mxu0 %v11215_v22  ;;  %v11252_v22 = vld [vmem:[%s15806_s7 + $0xb0] ss:$8 sps:$4 sm:$0xff]  }
 0x28a   :  { %10857 = vmatprep.subr.bf16.mxu0 %v11216_v23 }
 0x28d   :  { %10858 = vmatpush3.bf16.msra.mxu0 %v11216_v23  ;;  %v11259_v23 = vld [vmem:[%s15806_s7 + $0xc4] ss:$8 sps:$4 sm:$0xff]  }
 0x28e   :  { %10859 = vmatprep.subr.bf16.mxu0 %v11217_v24 }
 0x291   :  { %10860 = vmatpush3.bf16.msra.mxu0 %v11217_v24  ;;  %v11239_v24 = vld [vmem:[%s15805_s6 + $0x28] sm:$0xff]  }
 0x292   :  { %10865 = vmatprep.subr.bf16.mxu0 %v11218_v25 }
 0x294   :  { %10862 = vmatmul.mubr.msk.bf16.vlgmr.msra.gmra.mrb[0].mxu0 %vm155_vm0, %v909_v17  ;;  %v11234_v17 = vld [vmem:[%s15805_s6] sm:$0xff]  }
 0x295   :  { %10866 = vmatpush3.bf16.msra.mxu0 %v11218_v25  ;;  %10873 = vmatprep.mubr.msk.bf16.mxu0 %vm155_vm0, %v910_v53  ;;  %v11246_v25 = vld [vmem:[%s15805_s6 + $0x30] sm:$0xff]  }
 0x296   :  { %10867 = vmatprep.subr.bf16.mxu0 %v11219_v26  ;;  %10917 = vmatprep.mubr.msk.bf16.mxu1 %vm2511_vm1, %v11234_v17 }
 0x299   :  { %10868 = vmatpush3.bf16.msra.mxu0 %v11219_v26  ;;  %v11257_v26 = vld [vmem:[%s15806_s7 + $0xc0] ss:$8 sps:$4 sm:$0xff]  }
 0x29a   :  { %10869 = vmatprep.subr.bf16.mxu0 %v11220_v28 }
 0x29d   :  { %10870 = vmatpush3.bf16.msra.mxu0 %v11220_v28  ;;  %v11264_v28 = vld [vmem:[%s15806_s7 + $0xd4] ss:$8 sps:$4 sm:$0xff]  }
 0x29e   :  { %10871 = vmatprep.subr.bf16.mxu0 %v11221_v29 }
 0x2a1   :  { %10872 = vmatpush3.bf16.msra.mxu0 %v11221_v29  ;;  %v11262_v29 = vld [vmem:[%s15806_s7 + $0xd0] ss:$8 sps:$4 sm:$0xff]  }
 0x2a2   :  { %10877 = vmatprep.subr.bf16.mxu0 %v11222_v30 }
 0x2a4   :  { %10874 = vmatmul.mubr.msk.bf16.vlgmr.msra.gmra.mrb[0].mxu0 %vm155_vm0, %v911_v51 }
 0x2a5   :  { %10878 = vmatpush3.bf16.msra.mxu0 %v11222_v30  ;;  %10885 = vmatprep.mubr.msk.bf16.mxu0 %vm155_vm0, %v912_v61  ;;  %v11269_v30 = vld [vmem:[%s15806_s7 + $0xe4] ss:$8 sps:$4 sm:$0xff]  }
 0x2a6   :  { %10879 = vmatprep.subr.bf16.mxu0 %v11223_v31 }
 0x2a9   :  { %10880 = vmatpush3.bf16.msra.mxu0 %v11223_v31  ;;  %v11250_v31 = vld [vmem:[%s15805_s6 + $0x38] sm:$0xff]  }
 0x2aa   :  { %10881 = vmatprep.subr.bf16.mxu0 %v11224_v32 }
 0x2ad   :  { %10882 = vmatpush3.bf16.msra.mxu0 %v11224_v32  ;;  %v11251_v32 = vld [vmem:[%s15805_s6 + $0x40] sm:$0xff]  }
 0x2ae   :  { %10883 = vmatprep.subr.bf16.mxu0 %v11225_v33 }
 0x2b1   :  { %10884 = vmatpush3.bf16.msra.mxu0 %v11225_v33  ;;  %v11267_v33 = vld [vmem:[%s15806_s7 + $0xe0] ss:$8 sps:$4 sm:$0xff]  }
 0x2b2   :  { %10889 = vmatprep.subr.bf16.mxu0 %v11226_v34 }
 0x2b4   :  { %10886 = vmatmul.mubr.msk.bf16.vlgmr.msra.gmra.mrb[0].mxu0 %vm155_vm0, %v913_v59 }
 0x2b5   :  { %10890 = vmatpush3.bf16.msra.mxu0 %v11226_v34  ;;  %10897 = vmatprep.mubr.msk.bf16.mxu0 %vm155_vm0, %v914_v5  ;;  %v11255_v34 = vld [vmem:[%s15805_s6 + $0x48] sm:$0xff]  }
 0x2b6   :  { %10891 = vmatprep.subr.bf16.mxu0 %v11227_v35 }
 0x2b9   :  { %10892 = vmatpush3.bf16.msra.mxu0 %v11227_v35  ;;  %v11256_v35 = vld [vmem:[%s15805_s6 + $0x50] sm:$0xff]  }
 0x2ba   :  { %10893 = vmatprep.subr.bf16.mxu0 %v11228_v36 }
 0x2bd   :  { %10894 = vmatpush3.bf16.msra.mxu0 %v11228_v36  ;;  %v11260_v36 = vld [vmem:[%s15805_s6 + $0x58] sm:$0xff]  }
 0x2be   :  { %10895 = vmatprep.subr.bf16.mxu0 %v11229_v37 }
 0x2c1   :  { %10896 = vmatpush3.bf16.msra.mxu0 %v11229_v37  ;;  %v11261_v37 = vld [vmem:[%s15805_s6 + $0x60] sm:$0xff]  }
 0x2c2   :  { %10901 = vmatprep.subr.bf16.mxu0 %v11230_v38 }
 0x2c4   :  { %10898 = vmatmul.mubr.msk.bf16.vlgmr.msra.gmra.mrb[0].mxu0 %vm155_vm0, %v915_v3 }
 0x2c5   :  { %10902 = vmatpush3.bf16.msra.mxu0 %v11230_v38  ;;  %10909 = vmatprep.mubr.msk.bf16.mxu0 %vm155_vm0, %v916_v14  ;;  %v11245_v14 = vld [vmem:[%s15806_s7 + $0x94] ss:$8 sps:$4 sm:$0xff]   ;;  %v11265_v38 = vld [vmem:[%s15805_s6 + $0x68] sm:$0xff]  }
 0x2c6   :  { %10903 = vmatprep.subr.bf16.mxu0 %v11231_v13 }
 0x2c9   :  { %10904 = vmatpush3.bf16.msra.mxu0 %v11231_v13  ;;  %v11266_v13 = vld [vmem:[%s15805_s6 + $0x70] sm:$0xff]  }
 0x2ca   :  { %10905 = vmatprep.subr.bf16.mxu0 %v11232_v39 }
 0x2cd   :  { %10906 = vmatpush3.bf16.msra.mxu0 %v11232_v39  ;;  %v11270_v39 = vld [vmem:[%s15805_s6 + $0x78] sm:$0xff]  }
 0x2ce   :  { %10907 = vmatprep.subr.bf16.mxu0 %v11233_v40 }
 0x2cf   :  { %v10731_v41 = vpop.f32.mrb[80].mxu1 }
 0x2d0   :  { %v998_v42 = vpop.f32.mrb[81].mxu1 }
 0x2d1   :  { %10908 = vmatpush3.bf16.msra.mxu0 %v11233_v40  ;;  %v10732_v43 = vpop.f32.mrb[82].mxu1  ;;  %v11273_v40 = vld [vmem:[%s15806_s7 + $0xf4] ss:$8 sps:$4 sm:$0xff]  }
 0x2d2   :  { %v1001_v44 = vpop.f32.mrb[83].mxu1 }
 0x2d4   :  { %10910 = vmatmul.mubr.msk.bf16.vlgmr.msra.gmra.mrb[0].mxu0 %vm155_vm0, %v917_v11  ;;  %v11236_v11 = vld [vmem:[%s15805_s6 + $0x10] sm:$0xff]  }
 0x3a7   :  { %v10911_v27 = vpop.f32.mrb[0].mxu0 }
 0x3a8   :  { %v10949_v46 = vadd.f32 %v10911_v27, %v10731_v41  ;;  %v2347_v47 = vpop.f32.mrb[1].mxu0  ;;  %v11271_v41 = vld [vmem:[%s15806_s7 + $0xf0] ss:$8 sps:$4 sm:$0xff]   ;;  %v11274_v27 = vld [vmem:[%s15806_s7] ss:$8 sps:$4 sm:$0xff]  }
 0x3a9   :  { %v10950_v49 = vadd.f32 %v2347_v47, %v998_v42  ;;  %v10912_v50 = vpop.f32.mrb[2].mxu0  ;;  %v11276_v42 = vld [vmem:[%s15806_s7 + $0x4] ss:$8 sps:$4 sm:$0xff]  }
 0x3aa   :  { %v2375_v51 = vadd.f32 %v10949_v46, %v9626_v45  ;;  %v10951_v52 = vadd.f32 %v10912_v50, %v10732_v43  ;;  %v2350_v53 = vpop.f32.mrb[3].mxu0  ;;  %v12408_v43 = vmov 0   ;;  %v11277_v50 = vld [vmem:[%s15806_s7 + $0x10] ss:$8 sps:$4 sm:$0xff]  }
 0x3ab   :  { %v2373_v54 = vadd.f32 %v10950_v49, %v9626_v45  ;;  %v10952_v55 = vadd.f32 %v2350_v53, %v1001_v44  ;;  %5146 = vmatprep.mubr.bf16.mxu0 %v12408_v43 }
 0x3ac   :  { %v2379_v56 = vmax.f32 %v2375_v51, 0.0  ;;  %v2376_v57 = vadd.f32 %v10951_v52, %v9626_v45  ;;  %v11282_v51 = vld [vmem:[%s15806_s7 + $0x24] ss:$8 sps:$4 sm:$0xff]  }
 0x3ad   :  { %v2377_v58 = vmax.f32 %v2373_v54, 0.0  ;;  %v2374_v59 = vadd.f32 %v10952_v55, %v9626_v45  ;;  %v11280_v54 = vld [vmem:[%s15806_s7 + $0x20] ss:$8 sps:$4 sm:$0xff]  }
 0x3ae   :  { %v2387_v60 = vmul.f32 %v9627_v48, %v2379_v56  ;;  %v2380_v61 = vmax.f32 %v2376_v57, 0.0  ;;  %v11285_v56 = vld [vmem:[%s15806_s7 + $0x34] ss:$8 sps:$4 sm:$0xff]  }
 0x3af   :  { %v2385_v62 = vmul.f32 %v9627_v48, %v2377_v58  ;;  %v2378_v63 = vmax.f32 %v2374_v59, 0.0 }
 0x3b0   :  { %v2388_v1 = vmul.f32 %v9627_v48, %v2380_v61  ;;  %v2395_v3 = vadd.f32 %v9628_v0, %v2387_v60  ;;  %v11283_v60 = vld [vmem:[%s15806_s7 + $0x30] ss:$8 sps:$4 sm:$0xff]   ;;  %v11288_v61 = vld [vmem:[%s15806_s7 + $0x44] ss:$8 sps:$4 sm:$0xff]  }
 0x3b1   :  { %v2386_v2 = vmul.f32 %v9627_v48, %v2378_v63  ;;  %v2393_v5 = vadd.f32 %v9628_v0, %v2385_v62  ;;  %v11279_v48 = vld [vmem:[%s15806_s7 + $0x14] ss:$8 sps:$4 sm:$0xff]  }
 0x3b2   :  { %v2396_v4 = vadd.f32 %v9628_v0, %v2388_v1 }
 0x3b3   :  { %v2394_v6 = vadd.f32 %v9628_v0, %v2386_v2  ;;  %v11286_v0 = vld [vmem:[%s15806_s7 + $0x40] ss:$8 sps:$4 sm:$0xff]   ;;  %v11291_v2 = vld [vmem:[%s15806_s7 + $0x54] ss:$8 sps:$4 sm:$0xff]  }
 0x3b4   :  { %v2430_v7 = vpack.c.bf16 %v2396_v4, %v2395_v3 }
 0x3b5   :  { %v2429_v8 = vpack.c.bf16 %v2394_v6, %v2393_v5  ;;  %v11289_v6 = vld [vmem:[%s15806_s7 + $0x50] ss:$8 sps:$4 sm:$0xff]  }
 0x3b7   :  { %10913 = vmatprep.subr.bf16.mxu1 %v2429_v8 }
 0x3b8   :  { %10914 = vmatpush3.bf16.msra.mxu1 %v2429_v8  ;;  %v11292_v8 = vld [vmem:[%s15806_s7 + $0x60] ss:$8 sps:$4 sm:$0xff]  }
 0x3b9   :  { %10915 = vmatprep.subr.bf16.mxu1 %v2430_v7 }
 0x3bc   :  { %10916 = vmatpush3.bf16.msra.mxu1 %v2430_v7  ;;  %v11294_v7 = vld [vmem:[%s15806_s7 + $0x64] ss:$8 sps:$4 sm:$0xff]  }
 0x3bd   :  { %2849 = vmatprep.subr.bf16.mxu1 %v11242_v9  ;;  %v11297_v9 = vld [vmem:[%s15806_s7 + $0x74] ss:$8 sps:$4 sm:$0xff]  }
 0x3bf   :  { %10918 = vmatmul.mubr.msk.bf16.vlgmr.msra.gmra.mrb[84].mxu1 %vm2511_vm1, %v11235_v10  ;;  %v11295_v10 = vld [vmem:[%s15806_s7 + $0x70] ss:$8 sps:$4 sm:$0xff]  }
 0x3c0   :  { %10921 = vmatprep.mubr.msk.bf16.mxu1 %vm2511_vm1, %v11236_v11  ;;  %2850 = vmatpush1.bf16.msra.mxu1 %v11240_v12  ;;  %v11300_v11 = vld [vmem:[%s15806_s7 + $0x104] ss:$8 sps:$4 sm:$0xff]   ;;  %v11298_v12 = vld [vmem:[%s15806_s7 + $0x100] ss:$8 sps:$4 sm:$0xff]  }
 0x3c1   :  { %2851 = vmatprep.subr.bf16.mxu1 %v11245_v14  ;;  %v11303_v14 = vld [vmem:[%s15806_s7 + $0x114] ss:$8 sps:$4 sm:$0xff]  }
 0x3c4   :  { %2852 = vmatpush1.bf16.msra.mxu1 %v11243_v15  ;;  %v11301_v15 = vld [vmem:[%s15806_s7 + $0x110] ss:$8 sps:$4 sm:$0xff]  }
 0x3c5   :  { %2853 = vmatprep.subr.bf16.mxu1 %v11249_v16  ;;  %v11306_v16 = vld [vmem:[%s15806_s7 + $0x124] ss:$8 sps:$4 sm:$0xff]  }
 0x3c7   :  { %10922 = vmatmul.mubr.msk.bf16.gmra.mrb[88].mxu1 %vm2511_vm1, %v11237_v18  ;;  %v11304_v18 = vld [vmem:[%s15806_s7 + $0x120] ss:$8 sps:$4 sm:$0xff]  }
 0x3c8   :  { %10925 = vmatprep.mubr.msk.bf16.mxu1 %vm2511_vm1, %v11238_v19  ;;  %2854 = vmatpush1.bf16.msra.mxu1 %v11247_v20  ;;  %v11309_v19 = vld [vmem:[%s15806_s7 + $0x134] ss:$8 sps:$4 sm:$0xff]  }
 0x3c9   :  { %2855 = vmatprep.subr.bf16.mxu1 %v11254_v21  ;;  %v11307_v21 = vld [vmem:[%s15806_s7 + $0x130] ss:$8 sps:$4 sm:$0xff]  }
 0x3cc   :  { %2856 = vmatpush1.bf16.msra.mxu1 %v11252_v22 }
 0x3cd   :  { %2857 = vmatprep.subr.bf16.mxu1 %v11259_v23  ;;  %v11312_v23 = vld [vmem:[%s15806_s7 + $0x144] ss:$8 sps:$4 sm:$0xff]  }
 0x3cf   :  { %10926 = vmatmul.mubr.msk.bf16.gmra.mrb[92].mxu1 %vm2511_vm1, %v11239_v24 }
 0x3d0   :  { %10929 = vmatprep.mubr.msk.bf16.mxu1 %vm2511_vm1, %v11246_v25  ;;  %2858 = vmatpush1.bf16.msra.mxu1 %v11257_v26 }
 0x3d1   :  { %2859 = vmatprep.subr.bf16.mxu1 %v11264_v28 }
 0x3d4   :  { %2860 = vmatpush1.bf16.msra.mxu1 %v11262_v29  ;;  %v11310_v29 = vld [vmem:[%s15806_s7 + $0x140] ss:$8 sps:$4 sm:$0xff]  }
 0x3d5   :  { %2861 = vmatprep.subr.bf16.mxu1 %v11269_v30  ;;  %v11315_v30 = vld [vmem:[%s15806_s7 + $0x154] ss:$8 sps:$4 sm:$0xff]  }
 0x3d7   :  { %10930 = vmatmul.mubr.msk.bf16.gmra.mrb[96].mxu1 %vm2511_vm1, %v11250_v31 }
 0x3d8   :  { %10933 = vmatprep.mubr.msk.bf16.mxu1 %vm2511_vm1, %v11251_v32  ;;  %2862 = vmatpush1.bf16.msra.mxu1 %v11267_v33  ;;  %v11313_v32 = vld [vmem:[%s15806_s7 + $0x150] ss:$8 sps:$4 sm:$0xff]  }
 0x3d9   :  { %2863 = vmatprep.subr.bf16.mxu1 %v11273_v40 }
 0x3dc   :  { %2864 = vmatpush1.bf16.msra.mxu1 %v11271_v41  ;;  %v11319_v41 = vld [vmem:[%s15806_s7 + $0x170] ss:$8 sps:$4 sm:$0xff]  }
 0x3dd   :  { %2972 = vmatprep.subr.bf16.mxu1 %v11276_v42 }
 0x3df   :  { %10934 = vmatmul.mubr.msk.bf16.gmra.mrb[100].mxu1 %vm2511_vm1, %v11255_v34  ;;  %v11318_v34 = vld [vmem:[%s15806_s7 + $0x164] ss:$8 sps:$4 sm:$0xff]  }
 0x3e0   :  { %10937 = vmatprep.mubr.msk.bf16.mxu1 %vm2511_vm1, %v11256_v35 }
 0x3e7   :  { %10938 = vmatmul.mubr.msk.bf16.gmra.mrb[104].mxu1 %vm2511_vm1, %v11260_v36 }
 0x3e8   :  { %10941 = vmatprep.mubr.msk.bf16.mxu1 %vm2511_vm1, %v11261_v37 }
 0x3ef   :  { %10942 = vmatmul.mubr.msk.bf16.gmra.mrb[108].mxu1 %vm2511_vm1, %v11265_v38 }
 0x3f0   :  { %10945 = vmatprep.mubr.msk.bf16.mxu1 %vm2511_vm1, %v11266_v13  ;;  %v11316_v13 = vld [vmem:[%s15806_s7 + $0x160] ss:$8 sps:$4 sm:$0xff]  }
 0x3f7   :  { %10946 = vmatmul.mubr.msk.bf16.gmra.mrb[112].mxu1 %vm2511_vm1, %v11270_v39  ;;  %v11321_v39 = vld [vmem:[%s15806_s7 + $0x174] ss:$8 sps:$4 sm:$0xff]  }
 0x3f8   :  { %2881 = vmatprep.mubr.bf16.mxu1 %v12408_v43 }
 0x492   :  { %v10919_v44 = vpop.f32.mrb[84].mxu1 }
 0x493   :  { %v2594_v17 = vpop.f32.mrb[85].mxu1 }
 0x494   :  { %v10920_v45 = vpop.f32.mrb[86].mxu1 }
 0x495   :  { %v2722_v46 = vpack.c.bf16 %v10920_v45, %v10919_v44  ;;  %v2597_v47 = vpop.f32.mrb[87].mxu1  ;;  %v11324_v44 = vld [vmem:[%s15806_s7 + $0x184] ss:$8 sps:$4 sm:$0xff]  }
 0x496   :  { %v2721_v49 = vpack.c.bf16 %v2597_v47, %v2594_v17  ;;  %v11322_v47 = vld [vmem:[%s15806_s7 + $0x180] ss:$8 sps:$4 sm:$0xff]  }
 0x497   :  { %2882 = vmatmul.mubr.bf16.vlgmr.msra.gmra.mrb[116].mxu1 %v2722_v46 }
 0x498   :  { %2973 = vmatpush1.bf16.msra.mxu1 %v11274_v27  ;;  %3004 = vmatprep.mubr.bf16.mxu1 %v12408_v43 }
 0x499   :  { %2974 = vmatprep.subr.bf16.mxu1 %v11279_v48  ;;  %v11327_v48 = vld [vmem:[%s15806_s7 + $0x194] ss:$8 sps:$4 sm:$0xff]  }
 0x49a   :  { %v13220_v52 = vpop.f32.mrb[88].mxu1 }
 0x49b   :  { %v13222_v53 = vpop.f32.mrb[89].mxu1 }
 0x49c   :  { %2975 = vmatpush1.bf16.msra.mxu1 %v11277_v50  ;;  %v13227_v55 = vpop.f32.mrb[90].mxu1  ;;  %v11325_v50 = vld [vmem:[%s15806_s7 + $0x190] ss:$8 sps:$4 sm:$0xff]  }
 0x49d   :  { %2976 = vmatprep.subr.bf16.mxu1 %v11282_v51  ;;  %v2724_v57 = vpack.c.bf16 %v13227_v55, %v13220_v52  ;;  %v13234_v58 = vpop.f32.mrb[91].mxu1  ;;  %v11357_v52 = vld [vmem:[%s15806_s7 + $0x234] ss:$8 sps:$4 sm:$0xff]   ;;  %v11355_v55 = vld [vmem:[%s15806_s7 + $0x230] ss:$8 sps:$4 sm:$0xff]  }
 0x49e   :  { %v2723_v59 = vpack.c.bf16 %v13234_v58, %v13222_v53 }
 0x4a0   :  { %2977 = vmatpush1.bf16.msra.mxu1 %v11280_v54  ;;  %v11330_v54 = vld [vmem:[%s15806_s7 + $0x1a4] ss:$8 sps:$4 sm:$0xff]  }
 0x4a1   :  { %2978 = vmatprep.subr.bf16.mxu1 %v11285_v56 }
 0x4a2   :  { %v13244_v62 = vpop.f32.mrb[92].mxu1 }
 0x4a3   :  { %v13246_v63 = vpop.f32.mrb[93].mxu1 }
 0x4a4   :  { %2979 = vmatpush1.bf16.msra.mxu1 %v11283_v60  ;;  %v13251_v1 = vpop.f32.mrb[94].mxu1  ;;  %v11328_v60 = vld [vmem:[%s15806_s7 + $0x1a0] ss:$8 sps:$4 sm:$0xff]  }
 0x4a5   :  { %2980 = vmatprep.subr.bf16.mxu1 %v11288_v61  ;;  %v2726_v3 = vpack.c.bf16 %v13251_v1, %v13244_v62  ;;  %v13258_v4 = vpop.f32.mrb[95].mxu1  ;;  %v11333_v61 = vld [vmem:[%s15806_s7 + $0x1b4] ss:$8 sps:$4 sm:$0xff]   ;;  %v11403_v1 = vld [vmem:[%s15806_s7 + $0x330] ss:$8 sps:$4 sm:$0xff]  }
 0x4a6   :  { %v2725_v5 = vpack.c.bf16 %v13258_v4, %v13246_v63  ;;  %v11381_v63 = vld [vmem:[%s15806_s7 + $0x2b4] ss:$8 sps:$4 sm:$0xff]   ;;  %v11379_v4 = vld [vmem:[%s15806_s7 + $0x2b0] ss:$8 sps:$4 sm:$0xff]  }
 0x4a7   :  { %v11405_v62 = vld [vmem:[%s15806_s7 + $0x334] ss:$8 sps:$4 sm:$0xff]  }
 0x4a8   :  { %2981 = vmatpush1.bf16.msra.mxu1 %v11286_v0 }
 0x4a9   :  { %2982 = vmatprep.subr.bf16.mxu1 %v11291_v2  ;;  %v11331_v2 = vld [vmem:[%s15806_s7 + $0x1b0] ss:$8 sps:$4 sm:$0xff]  }
 0x4aa   :  { %v13299_v20 = vpop.f32.mrb[96].mxu1 }
 0x4ab   :  { %v13304_v22 = vpop.f32.mrb[97].mxu1 }
 0x4ac   :  { %2983 = vmatpush1.bf16.msra.mxu1 %v11289_v6  ;;  %v13309_v24 = vpop.f32.mrb[98].mxu1 }
 0x4ad   :  { %2984 = vmatprep.subr.bf16.mxu1 %v11294_v7  ;;  %v2728_v25 = vpack.c.bf16 %v13309_v24, %v13299_v20  ;;  %v13313_v26 = vpop.f32.mrb[99].mxu1  ;;  %v11336_v7 = vld [vmem:[%s15806_s7 + $0x1c4] ss:$8 sps:$4 sm:$0xff]   ;;  %v11453_v20 = vld [vmem:[%s15806_s7 + $0x434] ss:$8 sps:$4 sm:$0xff]  }
 0x4ae   :  { %v2727_v28 = vpack.c.bf16 %v13313_v26, %v13304_v22  ;;  %v11429_v22 = vld [vmem:[%s15806_s7 + $0x3b4] ss:$8 sps:$4 sm:$0xff]   ;;  %v11427_v26 = vld [vmem:[%s15806_s7 + $0x3b0] ss:$8 sps:$4 sm:$0xff]  }
 0x4af   :  { %v11451_v24 = vld [vmem:[%s15806_s7 + $0x430] ss:$8 sps:$4 sm:$0xff]  }
 0x4b0   :  { %2985 = vmatpush1.bf16.msra.mxu1 %v11292_v8 }
 0x4b1   :  { %2986 = vmatprep.subr.bf16.mxu1 %v11297_v9 }
 0x4b2   :  { %v13323_v31 = vpop.f32.mrb[100].mxu1 }
 0x4b3   :  { %v13328_v33 = vpop.f32.mrb[101].mxu1 }
 0x4b4   :  { %2987 = vmatpush1.bf16.msra.mxu1 %v11295_v10  ;;  %v13333_v35 = vpop.f32.mrb[102].mxu1 }
 0x4b5   :  { %3111 = vmatprep.subr.bf16.mxu1 %v11300_v11  ;;  %v2730_v36 = vpack.c.bf16 %v13333_v35, %v13323_v31  ;;  %v13337_v37 = vpop.f32.mrb[103].mxu1  ;;  %v11501_v31 = vld [vmem:[%s15806_s7 + $0x534] ss:$8 sps:$4 sm:$0xff]   ;;  %v11499_v35 = vld [vmem:[%s15806_s7 + $0x530] ss:$8 sps:$4 sm:$0xff]  }
 0x4b6   :  { %v2729_v38 = vpack.c.bf16 %v13337_v37, %v13328_v33  ;;  %v11477_v33 = vld [vmem:[%s15806_s7 + $0x4b4] ss:$8 sps:$4 sm:$0xff]   ;;  %v11475_v37 = vld [vmem:[%s15806_s7 + $0x4b0] ss:$8 sps:$4 sm:$0xff]  }
 0x4b7   :  { %3005 = vmatmul.mubr.bf16.vlgmr.msra.gmra.mrb[116].mxu1 %v2721_v49 }
 0x4b8   :  { %3112 = vmatpush1.bf16.msra.mxu1 %v11298_v12  ;;  %3143 = vmatprep.mubr.bf16.mxu1 %v12408_v43  ;;  %v11334_v12 = vld [vmem:[%s15806_s7 + $0x1c0] ss:$8 sps:$4 sm:$0xff]  }
 0x4b9   :  { %3113 = vmatprep.subr.bf16.mxu1 %v11303_v14  ;;  %v11339_v14 = vld [vmem:[%s15806_s7 + $0x1d4] ss:$8 sps:$4 sm:$0xff]  }
 0x4ba   :  { %v13347_v40 = vpop.f32.mrb[104].mxu1 }
 0x4bb   :  { %v13352_v42 = vpop.f32.mrb[105].mxu1 }
 0x4bc   :  { %3114 = vmatpush1.bf16.msra.mxu1 %v11301_v15  ;;  %v13357_v17 = vpop.f32.mrb[106].mxu1  ;;  %v11337_v15 = vld [vmem:[%s15806_s7 + $0x1d0] ss:$8 sps:$4 sm:$0xff]  }
 0x4bd   :  { %3115 = vmatprep.subr.bf16.mxu1 %v11306_v16  ;;  %v2732_v45 = vpack.c.bf16 %v13357_v17, %v13347_v40  ;;  %v13361_v27 = vpop.f32.mrb[107].mxu1  ;;  %v11342_v16 = vld [vmem:[%s15806_s7 + $0x1e4] ss:$8 sps:$4 sm:$0xff]   ;;  %v11549_v40 = vld [vmem:[%s15806_s7 + $0x634] ss:$8 sps:$4 sm:$0xff]  }
 0x4be   :  { %v2731_v46 = vpack.c.bf16 %v13361_v27, %v13352_v42  ;;  %v11525_v42 = vld [vmem:[%s15806_s7 + $0x5b4] ss:$8 sps:$4 sm:$0xff]   ;;  %v11523_v27 = vld [vmem:[%s15806_s7 + $0x5b0] ss:$8 sps:$4 sm:$0xff]  }
 0x4bf   :  { %v11547_v17 = vld [vmem:[%s15806_s7 + $0x630] ss:$8 sps:$4 sm:$0xff]  }
 0x4c0   :  { %3116 = vmatpush1.bf16.msra.mxu1 %v11304_v18  ;;  %v11340_v18 = vld [vmem:[%s15806_s7 + $0x1e0] ss:$8 sps:$4 sm:$0xff]  }
 0x4c1   :  { %3117 = vmatprep.subr.bf16.mxu1 %v11309_v19  ;;  %v11345_v19 = vld [vmem:[%s15806_s7 + $0x1f4] ss:$8 sps:$4 sm:$0xff]  }
 0x4c2   :  { %v13374_v49 = vpop.f32.mrb[108].mxu1 }
 0x4c3   :  { %v13380_v51 = vpop.f32.mrb[109].mxu1 }
 0x4c4   :  { %3118 = vmatpush1.bf16.msra.mxu1 %v11307_v21  ;;  %v13385_v56 = vpop.f32.mrb[110].mxu1  ;;  %v11343_v21 = vld [vmem:[%s15806_s7 + $0x1f0] ss:$8 sps:$4 sm:$0xff]  }
 0x4c5   :  { %3119 = vmatprep.subr.bf16.mxu1 %v11312_v23  ;;  %v2734_v53 = vpack.c.bf16 %v13385_v56, %v13374_v49  ;;  %v13389_v58 = vpop.f32.mrb[111].mxu1  ;;  %v11348_v23 = vld [vmem:[%s15806_s7 + $0x204] ss:$8 sps:$4 sm:$0xff]   ;;  %v11597_v49 = vld [vmem:[%s15806_s7 + $0x734] ss:$8 sps:$4 sm:$0xff]  }
 0x4c6   :  { %v11595_v56 = vld [vmem:[%s15806_s7 + $0x730] ss:$8 sps:$4 sm:$0xff]  }
 0x4c8   :  { %3120 = vmatpush1.bf16.msra.mxu1 %v11310_v29  ;;  %v11346_v29 = vld [vmem:[%s15806_s7 + $0x200] ss:$8 sps:$4 sm:$0xff]  }
 0x4c9   :  { %3121 = vmatprep.subr.bf16.mxu1 %v11315_v30  ;;  %v11351_v30 = vld [vmem:[%s15806_s7 + $0x214] ss:$8 sps:$4 sm:$0xff]  }
 0x4ca   :  { %v13399_v0 = vpop.f32.mrb[112].mxu1 }
 0x4cb   :  { %v13404_v6 = vpop.f32.mrb[113].mxu1 }
 0x4cc   :  { %3122 = vmatpush1.bf16.msra.mxu1 %v11313_v32  ;;  %v13409_v8 = vpop.f32.mrb[114].mxu1  ;;  %v11349_v32 = vld [vmem:[%s15806_s7 + $0x210] ss:$8 sps:$4 sm:$0xff]  }
 0x4cd   :  { %3123 = vmatprep.subr.bf16.mxu1 %v11318_v34  ;;  %v2736_v9 = vpack.c.bf16 %v13409_v8, %v13399_v0  ;;  %v13413_v10 = vpop.f32.mrb[115].mxu1  ;;  %v11354_v34 = vld [vmem:[%s15806_s7 + $0x224] ss:$8 sps:$4 sm:$0xff]   ;;  %v9917_v0 = vld [vmem:[%s15810_s8 + $0x1] ss:$8 sm:$0x3] }
 0x4ce   :  { %v2735_v11 = vpack.c.bf16 %v13413_v10, %v13404_v6  ;;  %v11621_v6 = vld [vmem:[%s15806_s7 + $0x7b4] ss:$8 sps:$4 sm:$0xff]   ;;  %v11619_v10 = vld [vmem:[%s15806_s7 + $0x7b0] ss:$8 sps:$4 sm:$0xff]  }
 0x4d0   :  { %3124 = vmatpush1.bf16.msra.mxu1 %v11316_v13  ;;  %v11352_v13 = vld [vmem:[%s15806_s7 + $0x220] ss:$8 sps:$4 sm:$0xff]  }
 0x4d1   :  { %3125 = vmatprep.subr.bf16.mxu1 %v11321_v39  ;;  %v11358_v39 = vld [vmem:[%s15806_s7 + $0x240] ss:$8 sps:$4 sm:$0xff]  }
 0x4d4   :  { %3126 = vmatpush1.bf16.msra.mxu1 %v11319_v41  ;;  %v11363_v41 = vld [vmem:[%s15806_s7 + $0x254] ss:$8 sps:$4 sm:$0xff]  }
 0x4d5   :  { %3254 = vmatprep.subr.bf16.mxu1 %v11324_v44  ;;  %v11361_v44 = vld [vmem:[%s15806_s7 + $0x250] ss:$8 sps:$4 sm:$0xff]  }
 0x4d7   :  { %3144 = vmatmul.mubr.bf16.vlgmr.msra.gmra.mrb[116].mxu1 %v2723_v59  ;;  %v2733_v59 = vpack.c.bf16 %v13389_v58, %v13380_v51  ;;  %v11573_v51 = vld [vmem:[%s15806_s7 + $0x6b4] ss:$8 sps:$4 sm:$0xff]   ;;  %v11571_v58 = vld [vmem:[%s15806_s7 + $0x6b0] ss:$8 sps:$4 sm:$0xff]  }
 0x4d8   :  { %3255 = vmatpush1.bf16.msra.mxu1 %v11322_v47  ;;  %3286 = vmatprep.mubr.bf16.mxu1 %v12408_v43  ;;  %v11366_v47 = vld [vmem:[%s15806_s7 + $0x264] ss:$8 sps:$4 sm:$0xff]  }
 0x4d9   :  { %3256 = vmatprep.subr.bf16.mxu1 %v11327_v48  ;;  %v11364_v48 = vld [vmem:[%s15806_s7 + $0x260] ss:$8 sps:$4 sm:$0xff]  }
 0x4dc   :  { %3257 = vmatpush1.bf16.msra.mxu1 %v11325_v50  ;;  %v11369_v50 = vld [vmem:[%s15806_s7 + $0x274] ss:$8 sps:$4 sm:$0xff]  }
 0x4dd   :  { %3258 = vmatprep.subr.bf16.mxu1 %v11330_v54  ;;  %v11367_v54 = vld [vmem:[%s15806_s7 + $0x270] ss:$8 sps:$4 sm:$0xff]  }
 0x4e0   :  { %3259 = vmatpush1.bf16.msra.mxu1 %v11328_v60  ;;  %v11372_v60 = vld [vmem:[%s15806_s7 + $0x284] ss:$8 sps:$4 sm:$0xff]  }
 0x4e1   :  { %3260 = vmatprep.subr.bf16.mxu1 %v11333_v61  ;;  %v11370_v61 = vld [vmem:[%s15806_s7 + $0x280] ss:$8 sps:$4 sm:$0xff]  }
 0x4e4   :  { %3261 = vmatpush1.bf16.msra.mxu1 %v11331_v2  ;;  %v11375_v2 = vld [vmem:[%s15806_s7 + $0x294] ss:$8 sps:$4 sm:$0xff]  }
 0x4e5   :  { %3262 = vmatprep.subr.bf16.mxu1 %v11336_v7  ;;  %v11373_v7 = vld [vmem:[%s15806_s7 + $0x290] ss:$8 sps:$4 sm:$0xff]  }
 0x4e8   :  { %3263 = vmatpush1.bf16.msra.mxu1 %v11334_v12  ;;  %v11378_v12 = vld [vmem:[%s15806_s7 + $0x2a4] ss:$8 sps:$4 sm:$0xff]  }
 0x4e9   :  { %3264 = vmatprep.subr.bf16.mxu1 %v11339_v14  ;;  %v11376_v14 = vld [vmem:[%s15806_s7 + $0x2a0] ss:$8 sps:$4 sm:$0xff]  }
 0x4ec   :  { %3265 = vmatpush1.bf16.msra.mxu1 %v11337_v15  ;;  %v11382_v15 = vld [vmem:[%s15806_s7 + $0x2c0] ss:$8 sps:$4 sm:$0xff]  }
 0x4ed   :  { %3266 = vmatprep.subr.bf16.mxu1 %v11342_v16  ;;  %v11387_v16 = vld [vmem:[%s15806_s7 + $0x2d4] ss:$8 sps:$4 sm:$0xff]  }
 0x4f0   :  { %3267 = vmatpush1.bf16.msra.mxu1 %v11340_v18  ;;  %v11385_v18 = vld [vmem:[%s15806_s7 + $0x2d0] ss:$8 sps:$4 sm:$0xff]  }
 0x4f1   :  { %3268 = vmatprep.subr.bf16.mxu1 %v11345_v19  ;;  %v11390_v19 = vld [vmem:[%s15806_s7 + $0x2e4] ss:$8 sps:$4 sm:$0xff]  }
 0x4f4   :  { %3269 = vmatpush1.bf16.msra.mxu1 %v11343_v21  ;;  %v11388_v21 = vld [vmem:[%s15806_s7 + $0x2e0] ss:$8 sps:$4 sm:$0xff]  }
 0x4f5   :  { %3397 = vmatprep.subr.bf16.mxu1 %v11348_v23  ;;  %v11393_v23 = vld [vmem:[%s15806_s7 + $0x2f4] ss:$8 sps:$4 sm:$0xff]  }
 0x4f7   :  { %3287 = vmatmul.mubr.bf16.vlgmr.msra.gmra.mrb[116].mxu1 %v2724_v57  ;;  %v11360_v57 = vld [vmem:[%s15806_s7 + $0x244] ss:$8 sps:$4 sm:$0xff]  }
 0x4f8   :  { %3398 = vmatpush1.bf16.msra.mxu1 %v11346_v29  ;;  %3429 = vmatprep.mubr.bf16.mxu1 %v12408_v43  ;;  %v11391_v29 = vld [vmem:[%s15806_s7 + $0x2f0] ss:$8 sps:$4 sm:$0xff]  }
 0x4f9   :  { %3399 = vmatprep.subr.bf16.mxu1 %v11351_v30  ;;  %v11396_v30 = vld [vmem:[%s15806_s7 + $0x304] ss:$8 sps:$4 sm:$0xff]  }
 0x4fc   :  { %3400 = vmatpush1.bf16.msra.mxu1 %v11349_v32  ;;  %v11394_v32 = vld [vmem:[%s15806_s7 + $0x300] ss:$8 sps:$4 sm:$0xff]  }
 0x4fd   :  { %3401 = vmatprep.subr.bf16.mxu1 %v11354_v34  ;;  %v11399_v34 = vld [vmem:[%s15806_s7 + $0x314] ss:$8 sps:$4 sm:$0xff]  }
 0x500   :  { %3402 = vmatpush1.bf16.msra.mxu1 %v11352_v13  ;;  %v11397_v13 = vld [vmem:[%s15806_s7 + $0x310] ss:$8 sps:$4 sm:$0xff]  }
 0x501   :  { %3403 = vmatprep.subr.bf16.mxu1 %v11357_v52  ;;  %v11402_v52 = vld [vmem:[%s15806_s7 + $0x324] ss:$8 sps:$4 sm:$0xff]  }
 0x504   :  { %3404 = vmatpush1.bf16.msra.mxu1 %v11355_v55  ;;  %v11400_v55 = vld [vmem:[%s15806_s7 + $0x320] ss:$8 sps:$4 sm:$0xff]  }
 0x505   :  { %3405 = vmatprep.subr.bf16.mxu1 %v11360_v57  ;;  %v11406_v57 = vld [vmem:[%s15806_s7 + $0x340] ss:$8 sps:$4 sm:$0xff]  }
 0x508   :  { %3406 = vmatpush1.bf16.msra.mxu1 %v11358_v39  ;;  %v11411_v39 = vld [vmem:[%s15806_s7 + $0x354] ss:$8 sps:$4 sm:$0xff]  }
 0x509   :  { %3407 = vmatprep.subr.bf16.mxu1 %v11363_v41  ;;  %v11409_v41 = vld [vmem:[%s15806_s7 + $0x350] ss:$8 sps:$4 sm:$0xff]  }
 0x50c   :  { %3408 = vmatpush1.bf16.msra.mxu1 %v11361_v44  ;;  %v11414_v44 = vld [vmem:[%s15806_s7 + $0x364] ss:$8 sps:$4 sm:$0xff]  }
 0x50d   :  { %3409 = vmatprep.subr.bf16.mxu1 %v11366_v47  ;;  %v11412_v47 = vld [vmem:[%s15806_s7 + $0x360] ss:$8 sps:$4 sm:$0xff]  }
 0x510   :  { %3410 = vmatpush1.bf16.msra.mxu1 %v11364_v48  ;;  %v11417_v48 = vld [vmem:[%s15806_s7 + $0x374] ss:$8 sps:$4 sm:$0xff]  }
 0x511   :  { %3411 = vmatprep.subr.bf16.mxu1 %v11369_v50  ;;  %v11415_v50 = vld [vmem:[%s15806_s7 + $0x370] ss:$8 sps:$4 sm:$0xff]  }
 0x514   :  { %3412 = vmatpush1.bf16.msra.mxu1 %v11367_v54  ;;  %v11420_v54 = vld [vmem:[%s15806_s7 + $0x384] ss:$8 sps:$4 sm:$0xff]  }
 0x515   :  { %3540 = vmatprep.subr.bf16.mxu1 %v11372_v60  ;;  %v11418_v60 = vld [vmem:[%s15806_s7 + $0x380] ss:$8 sps:$4 sm:$0xff]  }
 0x517   :  { %3430 = vmatmul.mubr.bf16.vlgmr.msra.gmra.mrb[116].mxu1 %v2725_v5  ;;  %v11384_v5 = vld [vmem:[%s15806_s7 + $0x2c4] ss:$8 sps:$4 sm:$0xff]  }
 0x518   :  { %3541 = vmatpush1.bf16.msra.mxu1 %v11370_v61  ;;  %3572 = vmatprep.mubr.bf16.mxu1 %v12408_v43  ;;  %v11423_v61 = vld [vmem:[%s15806_s7 + $0x394] ss:$8 sps:$4 sm:$0xff]  }
 0x519   :  { %3542 = vmatprep.subr.bf16.mxu1 %v11375_v2  ;;  %v11421_v2 = vld [vmem:[%s15806_s7 + $0x390] ss:$8 sps:$4 sm:$0xff]  }
 0x51c   :  { %3543 = vmatpush1.bf16.msra.mxu1 %v11373_v7  ;;  %v11426_v7 = vld [vmem:[%s15806_s7 + $0x3a4] ss:$8 sps:$4 sm:$0xff]  }
 0x51d   :  { %3544 = vmatprep.subr.bf16.mxu1 %v11378_v12  ;;  %v11424_v12 = vld [vmem:[%s15806_s7 + $0x3a0] ss:$8 sps:$4 sm:$0xff]  }
 0x520   :  { %3545 = vmatpush1.bf16.msra.mxu1 %v11376_v14  ;;  %v11430_v14 = vld [vmem:[%s15806_s7 + $0x3c0] ss:$8 sps:$4 sm:$0xff]  }
 0x521   :  { %3546 = vmatprep.subr.bf16.mxu1 %v11381_v63  ;;  %v11435_v63 = vld [vmem:[%s15806_s7 + $0x3d4] ss:$8 sps:$4 sm:$0xff]  }
 0x524   :  { %3547 = vmatpush1.bf16.msra.mxu1 %v11379_v4  ;;  %v11433_v4 = vld [vmem:[%s15806_s7 + $0x3d0] ss:$8 sps:$4 sm:$0xff]  }
 0x525   :  { %3548 = vmatprep.subr.bf16.mxu1 %v11384_v5  ;;  %v11438_v5 = vld [vmem:[%s15806_s7 + $0x3e4] ss:$8 sps:$4 sm:$0xff]  }
 0x528   :  { %3549 = vmatpush1.bf16.msra.mxu1 %v11382_v15  ;;  %v11436_v15 = vld [vmem:[%s15806_s7 + $0x3e0] ss:$8 sps:$4 sm:$0xff]  }
 0x529   :  { %3550 = vmatprep.subr.bf16.mxu1 %v11387_v16  ;;  %v11441_v16 = vld [vmem:[%s15806_s7 + $0x3f4] ss:$8 sps:$4 sm:$0xff]  }
 0x52c   :  { %3551 = vmatpush1.bf16.msra.mxu1 %v11385_v18  ;;  %v11439_v18 = vld [vmem:[%s15806_s7 + $0x3f0] ss:$8 sps:$4 sm:$0xff]  }
 0x52d   :  { %3552 = vmatprep.subr.bf16.mxu1 %v11390_v19  ;;  %v11444_v19 = vld [vmem:[%s15806_s7 + $0x404] ss:$8 sps:$4 sm:$0xff]  }
 0x530   :  { %3553 = vmatpush1.bf16.msra.mxu1 %v11388_v21  ;;  %v11442_v21 = vld [vmem:[%s15806_s7 + $0x400] ss:$8 sps:$4 sm:$0xff]  }
 0x531   :  { %3554 = vmatprep.subr.bf16.mxu1 %v11393_v23  ;;  %v11447_v23 = vld [vmem:[%s15806_s7 + $0x414] ss:$8 sps:$4 sm:$0xff]  }
 0x534   :  { %3555 = vmatpush1.bf16.msra.mxu1 %v11391_v29  ;;  %v11445_v29 = vld [vmem:[%s15806_s7 + $0x410] ss:$8 sps:$4 sm:$0xff]  }
 0x535   :  { %3683 = vmatprep.subr.bf16.mxu1 %v11396_v30  ;;  %v11450_v30 = vld [vmem:[%s15806_s7 + $0x424] ss:$8 sps:$4 sm:$0xff]  }
 0x537   :  { %3573 = vmatmul.mubr.bf16.vlgmr.msra.gmra.mrb[116].mxu1 %v2726_v3  ;;  %v11408_v3 = vld [vmem:[%s15806_s7 + $0x344] ss:$8 sps:$4 sm:$0xff]  }
 0x538   :  { %3684 = vmatpush1.bf16.msra.mxu1 %v11394_v32  ;;  %3715 = vmatprep.mubr.bf16.mxu1 %v12408_v43  ;;  %v11448_v32 = vld [vmem:[%s15806_s7 + $0x420] ss:$8 sps:$4 sm:$0xff]  }
 0x539   :  { %3685 = vmatprep.subr.bf16.mxu1 %v11399_v34  ;;  %v11454_v34 = vld [vmem:[%s15806_s7 + $0x440] ss:$8 sps:$4 sm:$0xff]  }
 0x53c   :  { %3686 = vmatpush1.bf16.msra.mxu1 %v11397_v13  ;;  %v11459_v13 = vld [vmem:[%s15806_s7 + $0x454] ss:$8 sps:$4 sm:$0xff]  }
 0x53d   :  { %3687 = vmatprep.subr.bf16.mxu1 %v11402_v52  ;;  %v11457_v52 = vld [vmem:[%s15806_s7 + $0x450] ss:$8 sps:$4 sm:$0xff]  }
 0x540   :  { %3688 = vmatpush1.bf16.msra.mxu1 %v11400_v55  ;;  %v11462_v55 = vld [vmem:[%s15806_s7 + $0x464] ss:$8 sps:$4 sm:$0xff]  }
 0x541   :  { %3689 = vmatprep.subr.bf16.mxu1 %v11405_v62  ;;  %v11460_v62 = vld [vmem:[%s15806_s7 + $0x460] ss:$8 sps:$4 sm:$0xff]  }
 0x544   :  { %3690 = vmatpush1.bf16.msra.mxu1 %v11403_v1  ;;  %v11465_v1 = vld [vmem:[%s15806_s7 + $0x474] ss:$8 sps:$4 sm:$0xff]  }
 0x545   :  { %3691 = vmatprep.subr.bf16.mxu1 %v11408_v3  ;;  %v11463_v3 = vld [vmem:[%s15806_s7 + $0x470] ss:$8 sps:$4 sm:$0xff]  }
 0x548   :  { %3692 = vmatpush1.bf16.msra.mxu1 %v11406_v57  ;;  %v11468_v57 = vld [vmem:[%s15806_s7 + $0x484] ss:$8 sps:$4 sm:$0xff]  }
 0x549   :  { %3693 = vmatprep.subr.bf16.mxu1 %v11411_v39  ;;  %v11466_v39 = vld [vmem:[%s15806_s7 + $0x480] ss:$8 sps:$4 sm:$0xff]  }
 0x54c   :  { %3694 = vmatpush1.bf16.msra.mxu1 %v11409_v41  ;;  %v11471_v41 = vld [vmem:[%s15806_s7 + $0x494] ss:$8 sps:$4 sm:$0xff]  }
 0x54d   :  { %3695 = vmatprep.subr.bf16.mxu1 %v11414_v44  ;;  %v11469_v44 = vld [vmem:[%s15806_s7 + $0x490] ss:$8 sps:$4 sm:$0xff]  }
 0x550   :  { %3696 = vmatpush1.bf16.msra.mxu1 %v11412_v47  ;;  %v11474_v47 = vld [vmem:[%s15806_s7 + $0x4a4] ss:$8 sps:$4 sm:$0xff]  }
 0x551   :  { %3697 = vmatprep.subr.bf16.mxu1 %v11417_v48  ;;  %v11472_v48 = vld [vmem:[%s15806_s7 + $0x4a0] ss:$8 sps:$4 sm:$0xff]  }
 0x554   :  { %3698 = vmatpush1.bf16.msra.mxu1 %v11415_v50  ;;  %v11478_v50 = vld [vmem:[%s15806_s7 + $0x4c0] ss:$8 sps:$4 sm:$0xff]  }
 0x555   :  { %3826 = vmatprep.subr.bf16.mxu1 %v11420_v54  ;;  %v11483_v54 = vld [vmem:[%s15806_s7 + $0x4d4] ss:$8 sps:$4 sm:$0xff]  }
 0x557   :  { %3716 = vmatmul.mubr.bf16.vlgmr.msra.gmra.mrb[116].mxu1 %v2727_v28  ;;  %v11432_v28 = vld [vmem:[%s15806_s7 + $0x3c4] ss:$8 sps:$4 sm:$0xff]  }
 0x558   :  { %3827 = vmatpush1.bf16.msra.mxu1 %v11418_v60  ;;  %3858 = vmatprep.mubr.bf16.mxu1 %v12408_v43  ;;  %v11481_v60 = vld [vmem:[%s15806_s7 + $0x4d0] ss:$8 sps:$4 sm:$0xff]  }
 0x559   :  { %3828 = vmatprep.subr.bf16.mxu1 %v11423_v61  ;;  %v11486_v61 = vld [vmem:[%s15806_s7 + $0x4e4] ss:$8 sps:$4 sm:$0xff]  }
 0x55c   :  { %3829 = vmatpush1.bf16.msra.mxu1 %v11421_v2  ;;  %v11484_v2 = vld [vmem:[%s15806_s7 + $0x4e0] ss:$8 sps:$4 sm:$0xff]  }
 0x55d   :  { %3830 = vmatprep.subr.bf16.mxu1 %v11426_v7  ;;  %v11489_v7 = vld [vmem:[%s15806_s7 + $0x4f4] ss:$8 sps:$4 sm:$0xff]  }
 0x560   :  { %3831 = vmatpush1.bf16.msra.mxu1 %v11424_v12  ;;  %v11487_v12 = vld [vmem:[%s15806_s7 + $0x4f0] ss:$8 sps:$4 sm:$0xff]  }
 0x561   :  { %3832 = vmatprep.subr.bf16.mxu1 %v11429_v22  ;;  %v11492_v22 = vld [vmem:[%s15806_s7 + $0x504] ss:$8 sps:$4 sm:$0xff]  }
 0x564   :  { %3833 = vmatpush1.bf16.msra.mxu1 %v11427_v26  ;;  %v11490_v26 = vld [vmem:[%s15806_s7 + $0x500] ss:$8 sps:$4 sm:$0xff]  }
 0x565   :  { %3834 = vmatprep.subr.bf16.mxu1 %v11432_v28  ;;  %v11495_v28 = vld [vmem:[%s15806_s7 + $0x514] ss:$8 sps:$4 sm:$0xff]  }
 0x568   :  { %3835 = vmatpush1.bf16.msra.mxu1 %v11430_v14  ;;  %v11493_v14 = vld [vmem:[%s15806_s7 + $0x510] ss:$8 sps:$4 sm:$0xff]  }
 0x569   :  { %3836 = vmatprep.subr.bf16.mxu1 %v11435_v63  ;;  %v11498_v63 = vld [vmem:[%s15806_s7 + $0x524] ss:$8 sps:$4 sm:$0xff]  }
 0x56c   :  { %3837 = vmatpush1.bf16.msra.mxu1 %v11433_v4  ;;  %v11496_v4 = vld [vmem:[%s15806_s7 + $0x520] ss:$8 sps:$4 sm:$0xff]  }
 0x56d   :  { %3838 = vmatprep.subr.bf16.mxu1 %v11438_v5  ;;  %v11502_v5 = vld [vmem:[%s15806_s7 + $0x540] ss:$8 sps:$4 sm:$0xff]  }
 0x570   :  { %3839 = vmatpush1.bf16.msra.mxu1 %v11436_v15  ;;  %v11507_v15 = vld [vmem:[%s15806_s7 + $0x554] ss:$8 sps:$4 sm:$0xff]  }
 0x571   :  { %3840 = vmatprep.subr.bf16.mxu1 %v11441_v16  ;;  %v11505_v16 = vld [vmem:[%s15806_s7 + $0x550] ss:$8 sps:$4 sm:$0xff]  }
 0x574   :  { %3841 = vmatpush1.bf16.msra.mxu1 %v11439_v18  ;;  %v11510_v18 = vld [vmem:[%s15806_s7 + $0x564] ss:$8 sps:$4 sm:$0xff]  }
 0x575   :  { %3969 = vmatprep.subr.bf16.mxu1 %v11444_v19  ;;  %v11508_v19 = vld [vmem:[%s15806_s7 + $0x560] ss:$8 sps:$4 sm:$0xff]  }
 0x577   :  { %3859 = vmatmul.mubr.bf16.vlgmr.msra.gmra.mrb[116].mxu1 %v2728_v25  ;;  %v11456_v25 = vld [vmem:[%s15806_s7 + $0x444] ss:$8 sps:$4 sm:$0xff]  }
 0x578   :  { %3970 = vmatpush1.bf16.msra.mxu1 %v11442_v21  ;;  %4001 = vmatprep.mubr.bf16.mxu1 %v12408_v43  ;;  %v11513_v21 = vld [vmem:[%s15806_s7 + $0x574] ss:$8 sps:$4 sm:$0xff]  }
 0x579   :  { %3971 = vmatprep.subr.bf16.mxu1 %v11447_v23  ;;  %v11511_v23 = vld [vmem:[%s15806_s7 + $0x570] ss:$8 sps:$4 sm:$0xff]  }
 0x57c   :  { %3972 = vmatpush1.bf16.msra.mxu1 %v11445_v29  ;;  %v11516_v29 = vld [vmem:[%s15806_s7 + $0x584] ss:$8 sps:$4 sm:$0xff]  }
 0x57d   :  { %3973 = vmatprep.subr.bf16.mxu1 %v11450_v30  ;;  %v11514_v30 = vld [vmem:[%s15806_s7 + $0x580] ss:$8 sps:$4 sm:$0xff]  }
 0x580   :  { %3974 = vmatpush1.bf16.msra.mxu1 %v11448_v32  ;;  %v11519_v32 = vld [vmem:[%s15806_s7 + $0x594] ss:$8 sps:$4 sm:$0xff]  }
 0x581   :  { %3975 = vmatprep.subr.bf16.mxu1 %v11453_v20  ;;  %v11517_v20 = vld [vmem:[%s15806_s7 + $0x590] ss:$8 sps:$4 sm:$0xff]  }
 0x584   :  { %3976 = vmatpush1.bf16.msra.mxu1 %v11451_v24  ;;  %v11522_v24 = vld [vmem:[%s15806_s7 + $0x5a4] ss:$8 sps:$4 sm:$0xff]  }
 0x585   :  { %3977 = vmatprep.subr.bf16.mxu1 %v11456_v25  ;;  %v11520_v25 = vld [vmem:[%s15806_s7 + $0x5a0] ss:$8 sps:$4 sm:$0xff]  }
 0x588   :  { %3978 = vmatpush1.bf16.msra.mxu1 %v11454_v34  ;;  %v11526_v34 = vld [vmem:[%s15806_s7 + $0x5c0] ss:$8 sps:$4 sm:$0xff]  }
 0x589   :  { %3979 = vmatprep.subr.bf16.mxu1 %v11459_v13  ;;  %v11531_v13 = vld [vmem:[%s15806_s7 + $0x5d4] ss:$8 sps:$4 sm:$0xff]  }
 0x58c   :  { %3980 = vmatpush1.bf16.msra.mxu1 %v11457_v52  ;;  %v11529_v52 = vld [vmem:[%s15806_s7 + $0x5d0] ss:$8 sps:$4 sm:$0xff]  }
 0x58d   :  { %3981 = vmatprep.subr.bf16.mxu1 %v11462_v55  ;;  %v11534_v55 = vld [vmem:[%s15806_s7 + $0x5e4] ss:$8 sps:$4 sm:$0xff]  }
 0x590   :  { %3982 = vmatpush1.bf16.msra.mxu1 %v11460_v62  ;;  %v11532_v62 = vld [vmem:[%s15806_s7 + $0x5e0] ss:$8 sps:$4 sm:$0xff]  }
 0x591   :  { %3983 = vmatprep.subr.bf16.mxu1 %v11465_v1  ;;  %v11537_v1 = vld [vmem:[%s15806_s7 + $0x5f4] ss:$8 sps:$4 sm:$0xff]  }
 0x594   :  { %3984 = vmatpush1.bf16.msra.mxu1 %v11463_v3  ;;  %v11535_v3 = vld [vmem:[%s15806_s7 + $0x5f0] ss:$8 sps:$4 sm:$0xff]  }
 0x595   :  { %4112 = vmatprep.subr.bf16.mxu1 %v11468_v57  ;;  %v11540_v57 = vld [vmem:[%s15806_s7 + $0x604] ss:$8 sps:$4 sm:$0xff]  }
 0x597   :  { %4002 = vmatmul.mubr.bf16.vlgmr.msra.gmra.mrb[116].mxu1 %v2729_v38  ;;  %v11480_v38 = vld [vmem:[%s15806_s7 + $0x4c4] ss:$8 sps:$4 sm:$0xff]  }
 0x598   :  { %4113 = vmatpush1.bf16.msra.mxu1 %v11466_v39  ;;  %4144 = vmatprep.mubr.bf16.mxu1 %v12408_v43  ;;  %v11538_v39 = vld [vmem:[%s15806_s7 + $0x600] ss:$8 sps:$4 sm:$0xff]  }
 0x599   :  { %4114 = vmatprep.subr.bf16.mxu1 %v11471_v41  ;;  %v11543_v41 = vld [vmem:[%s15806_s7 + $0x614] ss:$8 sps:$4 sm:$0xff]  }
 0x59c   :  { %4115 = vmatpush1.bf16.msra.mxu1 %v11469_v44  ;;  %v11541_v44 = vld [vmem:[%s15806_s7 + $0x610] ss:$8 sps:$4 sm:$0xff]  }
 0x59d   :  { %4116 = vmatprep.subr.bf16.mxu1 %v11474_v47  ;;  %v11546_v47 = vld [vmem:[%s15806_s7 + $0x624] ss:$8 sps:$4 sm:$0xff]  }
 0x5a0   :  { %4117 = vmatpush1.bf16.msra.mxu1 %v11472_v48  ;;  %v11544_v48 = vld [vmem:[%s15806_s7 + $0x620] ss:$8 sps:$4 sm:$0xff]  }
 0x5a1   :  { %4118 = vmatprep.subr.bf16.mxu1 %v11477_v33  ;;  %v11550_v33 = vld [vmem:[%s15806_s7 + $0x640] ss:$8 sps:$4 sm:$0xff]  }
 0x5a4   :  { %4119 = vmatpush1.bf16.msra.mxu1 %v11475_v37  ;;  %v11555_v37 = vld [vmem:[%s15806_s7 + $0x654] ss:$8 sps:$4 sm:$0xff]  }
 0x5a5   :  { %4120 = vmatprep.subr.bf16.mxu1 %v11480_v38  ;;  %v11553_v38 = vld [vmem:[%s15806_s7 + $0x650] ss:$8 sps:$4 sm:$0xff]  }
 0x5a8   :  { %4121 = vmatpush1.bf16.msra.mxu1 %v11478_v50  ;;  %v11558_v50 = vld [vmem:[%s15806_s7 + $0x664] ss:$8 sps:$4 sm:$0xff]  }
 0x5a9   :  { %4122 = vmatprep.subr.bf16.mxu1 %v11483_v54  ;;  %v11556_v54 = vld [vmem:[%s15806_s7 + $0x660] ss:$8 sps:$4 sm:$0xff]  }
 0x5ac   :  { %4123 = vmatpush1.bf16.msra.mxu1 %v11481_v60  ;;  %v11561_v60 = vld [vmem:[%s15806_s7 + $0x674] ss:$8 sps:$4 sm:$0xff]  }
 0x5ad   :  { %4124 = vmatprep.subr.bf16.mxu1 %v11486_v61  ;;  %v11559_v61 = vld [vmem:[%s15806_s7 + $0x670] ss:$8 sps:$4 sm:$0xff]  }
 0x5b0   :  { %4125 = vmatpush1.bf16.msra.mxu1 %v11484_v2  ;;  %v11564_v2 = vld [vmem:[%s15806_s7 + $0x684] ss:$8 sps:$4 sm:$0xff]  }
 0x5b1   :  { %4126 = vmatprep.subr.bf16.mxu1 %v11489_v7  ;;  %v11562_v7 = vld [vmem:[%s15806_s7 + $0x680] ss:$8 sps:$4 sm:$0xff]  }
 0x5b4   :  { %4127 = vmatpush1.bf16.msra.mxu1 %v11487_v12  ;;  %v11567_v12 = vld [vmem:[%s15806_s7 + $0x694] ss:$8 sps:$4 sm:$0xff]  }
 0x5b5   :  { %4255 = vmatprep.subr.bf16.mxu1 %v11492_v22  ;;  %v11565_v22 = vld [vmem:[%s15806_s7 + $0x690] ss:$8 sps:$4 sm:$0xff]  }
 0x5b7   :  { %4145 = vmatmul.mubr.bf16.vlgmr.msra.gmra.mrb[116].mxu1 %v2730_v36  ;;  %v11504_v36 = vld [vmem:[%s15806_s7 + $0x544] ss:$8 sps:$4 sm:$0xff]  }
 0x5b8   :  { %4256 = vmatpush1.bf16.msra.mxu1 %v11490_v26  ;;  %4287 = vmatprep.mubr.bf16.mxu1 %v12408_v43  ;;  %v11570_v26 = vld [vmem:[%s15806_s7 + $0x6a4] ss:$8 sps:$4 sm:$0xff]  }
 0x5b9   :  { %4257 = vmatprep.subr.bf16.mxu1 %v11495_v28  ;;  %v11568_v28 = vld [vmem:[%s15806_s7 + $0x6a0] ss:$8 sps:$4 sm:$0xff]  }
 0x5bc   :  { %4258 = vmatpush1.bf16.msra.mxu1 %v11493_v14  ;;  %v11574_v14 = vld [vmem:[%s15806_s7 + $0x6c0] ss:$8 sps:$4 sm:$0xff]  }
 0x5bd   :  { %4259 = vmatprep.subr.bf16.mxu1 %v11498_v63  ;;  %v11579_v63 = vld [vmem:[%s15806_s7 + $0x6d4] ss:$8 sps:$4 sm:$0xff]  }
 0x5c0   :  { %4260 = vmatpush1.bf16.msra.mxu1 %v11496_v4  ;;  %v11577_v4 = vld [vmem:[%s15806_s7 + $0x6d0] ss:$8 sps:$4 sm:$0xff]  }
 0x5c1   :  { %4261 = vmatprep.subr.bf16.mxu1 %v11501_v31  ;;  %v11582_v31 = vld [vmem:[%s15806_s7 + $0x6e4] ss:$8 sps:$4 sm:$0xff]  }
 0x5c4   :  { %4262 = vmatpush1.bf16.msra.mxu1 %v11499_v35  ;;  %v11580_v35 = vld [vmem:[%s15806_s7 + $0x6e0] ss:$8 sps:$4 sm:$0xff]  }
 0x5c5   :  { %4263 = vmatprep.subr.bf16.mxu1 %v11504_v36  ;;  %v11585_v36 = vld [vmem:[%s15806_s7 + $0x6f4] ss:$8 sps:$4 sm:$0xff]  }
 0x5c8   :  { %4264 = vmatpush1.bf16.msra.mxu1 %v11502_v5  ;;  %v11583_v5 = vld [vmem:[%s15806_s7 + $0x6f0] ss:$8 sps:$4 sm:$0xff]  }
 0x5c9   :  { %4265 = vmatprep.subr.bf16.mxu1 %v11507_v15  ;;  %v11588_v15 = vld [vmem:[%s15806_s7 + $0x704] ss:$8 sps:$4 sm:$0xff]  }
 0x5cc   :  { %4266 = vmatpush1.bf16.msra.mxu1 %v11505_v16  ;;  %v11586_v16 = vld [vmem:[%s15806_s7 + $0x700] ss:$8 sps:$4 sm:$0xff]  }
 0x5cd   :  { %4267 = vmatprep.subr.bf16.mxu1 %v11510_v18  ;;  %v11591_v18 = vld [vmem:[%s15806_s7 + $0x714] ss:$8 sps:$4 sm:$0xff]  }
 0x5d0   :  { %4268 = vmatpush1.bf16.msra.mxu1 %v11508_v19  ;;  %v11589_v19 = vld [vmem:[%s15806_s7 + $0x710] ss:$8 sps:$4 sm:$0xff]  }
 0x5d1   :  { %4269 = vmatprep.subr.bf16.mxu1 %v11513_v21  ;;  %v11594_v21 = vld [vmem:[%s15806_s7 + $0x724] ss:$8 sps:$4 sm:$0xff]  }
 0x5d4   :  { %4270 = vmatpush1.bf16.msra.mxu1 %v11511_v23  ;;  %v11592_v23 = vld [vmem:[%s15806_s7 + $0x720] ss:$8 sps:$4 sm:$0xff]  }
 0x5d5   :  { %4398 = vmatprep.subr.bf16.mxu1 %v11516_v29  ;;  %v11598_v29 = vld [vmem:[%s15806_s7 + $0x740] ss:$8 sps:$4 sm:$0xff]  }
 0x5d7   :  { %4288 = vmatmul.mubr.bf16.vlgmr.msra.gmra.mrb[116].mxu1 %v2731_v46  ;;  %v11528_v46 = vld [vmem:[%s15806_s7 + $0x5c4] ss:$8 sps:$4 sm:$0xff]  }
 0x5d8   :  { %4399 = vmatpush1.bf16.msra.mxu1 %v11514_v30  ;;  %4430 = vmatprep.mubr.bf16.mxu1 %v12408_v43  ;;  %v11603_v30 = vld [vmem:[%s15806_s7 + $0x754] ss:$8 sps:$4 sm:$0xff]  }
 0x5d9   :  { %4400 = vmatprep.subr.bf16.mxu1 %v11519_v32  ;;  %v11601_v32 = vld [vmem:[%s15806_s7 + $0x750] ss:$8 sps:$4 sm:$0xff]  }
 0x5dc   :  { %4401 = vmatpush1.bf16.msra.mxu1 %v11517_v20  ;;  %v11606_v20 = vld [vmem:[%s15806_s7 + $0x764] ss:$8 sps:$4 sm:$0xff]  }
 0x5dd   :  { %4402 = vmatprep.subr.bf16.mxu1 %v11522_v24  ;;  %v11604_v24 = vld [vmem:[%s15806_s7 + $0x760] ss:$8 sps:$4 sm:$0xff]  }
 0x5e0   :  { %4403 = vmatpush1.bf16.msra.mxu1 %v11520_v25  ;;  %v11609_v25 = vld [vmem:[%s15806_s7 + $0x774] ss:$8 sps:$4 sm:$0xff]  }
 0x5e1   :  { %4404 = vmatprep.subr.bf16.mxu1 %v11525_v42  ;;  %v11607_v42 = vld [vmem:[%s15806_s7 + $0x770] ss:$8 sps:$4 sm:$0xff]  }
 0x5e4   :  { %4405 = vmatpush1.bf16.msra.mxu1 %v11523_v27  ;;  %v11612_v27 = vld [vmem:[%s15806_s7 + $0x784] ss:$8 sps:$4 sm:$0xff]  }
 0x5e5   :  { %4406 = vmatprep.subr.bf16.mxu1 %v11528_v46  ;;  %v11610_v46 = vld [vmem:[%s15806_s7 + $0x780] ss:$8 sps:$4 sm:$0xff]  }
 0x5e8   :  { %4407 = vmatpush1.bf16.msra.mxu1 %v11526_v34  ;;  %v11615_v34 = vld [vmem:[%s15806_s7 + $0x794] ss:$8 sps:$4 sm:$0xff]  }
 0x5e9   :  { %4408 = vmatprep.subr.bf16.mxu1 %v11531_v13  ;;  %v11613_v13 = vld [vmem:[%s15806_s7 + $0x790] ss:$8 sps:$4 sm:$0xff]  }
 0x5ec   :  { %4409 = vmatpush1.bf16.msra.mxu1 %v11529_v52  ;;  %v11618_v52 = vld [vmem:[%s15806_s7 + $0x7a4] ss:$8 sps:$4 sm:$0xff]  }
 0x5ed   :  { %4410 = vmatprep.subr.bf16.mxu1 %v11534_v55  ;;  %v11616_v55 = vld [vmem:[%s15806_s7 + $0x7a0] ss:$8 sps:$4 sm:$0xff]  }
 0x5f0   :  { %4411 = vmatpush1.bf16.msra.mxu1 %v11532_v62  ;;  %v11622_v62 = vld [vmem:[%s15806_s7 + $0x7c0] ss:$8 sps:$4 sm:$0xff]  }
 0x5f1   :  { %4412 = vmatprep.subr.bf16.mxu1 %v11537_v1  ;;  %v11627_v1 = vld [vmem:[%s15806_s7 + $0x7d4] ss:$8 sps:$4 sm:$0xff]  }
 0x5f4   :  { %4413 = vmatpush1.bf16.msra.mxu1 %v11535_v3  ;;  %v11625_v3 = vld [vmem:[%s15806_s7 + $0x7d0] ss:$8 sps:$4 sm:$0xff]  }
 0x5f5   :  { %4541 = vmatprep.subr.bf16.mxu1 %v11540_v57  ;;  %v11630_v57 = vld [vmem:[%s15806_s7 + $0x7e4] ss:$8 sps:$4 sm:$0xff]  }
 0x5f7   :  { %4431 = vmatmul.mubr.bf16.vlgmr.msra.gmra.mrb[116].mxu1 %v2732_v45  ;;  %v11552_v45 = vld [vmem:[%s15806_s7 + $0x644] ss:$8 sps:$4 sm:$0xff]  }
 0x5f8   :  { %4542 = vmatpush1.bf16.msra.mxu1 %v11538_v39  ;;  %4573 = vmatprep.mubr.bf16.mxu1 %v12408_v43  ;;  %v11628_v39 = vld [vmem:[%s15806_s7 + $0x7e0] ss:$8 sps:$4 sm:$0xff]  }
 0x5f9   :  { %4543 = vmatprep.subr.bf16.mxu1 %v11543_v41  ;;  %v11633_v41 = vld [vmem:[%s15806_s7 + $0x7f4] ss:$8 sps:$4 sm:$0xff]  }
 0x5fc   :  { %4544 = vmatpush1.bf16.msra.mxu1 %v11541_v44  ;;  %v11631_v44 = vld [vmem:[%s15806_s7 + $0x7f0] ss:$8 sps:$4 sm:$0xff]  }
 0x5fd   :  { %4545 = vmatprep.subr.bf16.mxu1 %v11546_v47  ;;  %v5023_v47 = vlaneseq }
 0x600   :  { %4546 = vmatpush1.bf16.msra.mxu1 %v11544_v48  ;;  %v14066_v48 = vshrl.u32 %v5023_v47, 7  ;;  %v11673_v47 = vld [vmem:[%s15809_s10 + $0x380] ss:$16 sps:$4 sm:$0xff]  }
 0x601   :  { %4547 = vmatprep.subr.bf16.mxu1 %v11549_v40 }
 0x602   :  { %v14069_v40 = vsub.s32 0, %v14066_v48 }
 0x604   :  { %4548 = vmatpush1.bf16.msra.mxu1 %v11547_v17  ;;  %v5017_v17 = vld [vmem:[%s15810_s8] ss:$8 sm:$0x3] }
 0x605   :  { %4549 = vmatprep.subr.bf16.mxu1 %v11552_v45  ;;  %v14075_v45 = vsub.s32 1, %v14066_v48 }
 0x607   :  { %v5030_v8 = vrot.slane %v5017_v17, %v14075_v45 }
 0x608   :  { %4550 = vmatpush1.bf16.msra.mxu1 %v11550_v33  ;;  %v5026_v33 = vrot.slane %v5017_v17, %v14069_v40  ;;  %v11678_v17 = vld [vmem:[%s15809_s10 + $0x3a4] ss:$16 sps:$4 sm:$0xff]  }
 0x609   :  { %4551 = vmatprep.subr.bf16.mxu1 %v11555_v37 }
 0x60c   :  { %4552 = vmatpush1.bf16.msra.mxu1 %v11553_v38  ;;  %v5045_v38 = vrot.slane %v9917_v0, %v14069_v40 }
 0x60d   :  { %4553 = vmatprep.subr.bf16.mxu1 %v11558_v50 }
 0x610   :  { %4554 = vmatpush1.bf16.msra.mxu1 %v11556_v54  ;;  %v9918_v54 = vld [vmem:[%s15810_s8 + $0x2] ss:$8 sm:$0x3] }
 0x611   :  { %4555 = vmatprep.subr.bf16.mxu1 %v11561_v60 }
 0x614   :  { %4556 = vmatpush1.bf16.msra.mxu1 %v11559_v61  ;;  %v5049_v61 = vrot.slane %v9917_v0, %v14075_v45  ;;  %v11679_v0 = vld [vmem:[%s15808_s9 + $0x18] sm:$0xff]  }
 0x615   :  { %4684 = vmatprep.subr.bf16.mxu1 %v11564_v2 }
 0x617   :  { %4574 = vmatmul.mubr.bf16.vlgmr.msra.gmra.mrb[116].mxu1 %v2733_v59  ;;  %v11576_v59 = vld [vmem:[%s15806_s7 + $0x6c4] ss:$8 sps:$4 sm:$0xff]  }
 0x618   :  { %4685 = vmatpush1.bf16.msra.mxu1 %v11562_v7  ;;  %4716 = vmatprep.mubr.bf16.mxu1 %v12408_v43 }
 0x619   :  { %4686 = vmatprep.subr.bf16.mxu1 %v11567_v12 }
 0x61c   :  { %4687 = vmatpush1.bf16.msra.mxu1 %v11565_v22 }
 0x61d   :  { %4688 = vmatprep.subr.bf16.mxu1 %v11570_v26 }
 0x620   :  { %4689 = vmatpush1.bf16.msra.mxu1 %v11568_v28 }
 0x621   :  { %4690 = vmatprep.subr.bf16.mxu1 %v11573_v51 }
 0x624   :  { %4691 = vmatpush1.bf16.msra.mxu1 %v11571_v58  ;;  %v5060_v58 = vrot.slane %v9918_v54, %v14069_v40 }
 0x625   :  { %4692 = vmatprep.subr.bf16.mxu1 %v11576_v59 }
 0x628   :  { %4693 = vmatpush1.bf16.msra.mxu1 %v11574_v14 }
 0x629   :  { %4694 = vmatprep.subr.bf16.mxu1 %v11579_v63  ;;  %v5064_v63 = vrot.slane %v9918_v54, %v14075_v45 }
 0x62c   :  { %4695 = vmatpush1.bf16.msra.mxu1 %v11577_v4 }
 0x62d   :  { %4696 = vmatprep.subr.bf16.mxu1 %v11582_v31 }
 0x630   :  { %4697 = vmatpush1.bf16.msra.mxu1 %v11580_v35 }
 0x631   :  { %4698 = vmatprep.subr.bf16.mxu1 %v11585_v36 }
 0x634   :  { %4699 = vmatpush1.bf16.msra.mxu1 %v11583_v5 }
 0x635   :  { %4827 = vmatprep.subr.bf16.mxu1 %v11588_v15 }
 0x637   :  { %4717 = vmatmul.mubr.bf16.vlgmr.msra.gmra.mrb[116].mxu1 %v2734_v53  ;;  %v11600_v53 = vld [vmem:[%s15806_s7 + $0x744] ss:$8 sps:$4 sm:$0xff]  }
 0x638   :  { %4828 = vmatpush1.bf16.msra.mxu1 %v11586_v16  ;;  %4859 = vmatprep.mubr.bf16.mxu1 %v12408_v43 }
 0x639   :  { %4829 = vmatprep.subr.bf16.mxu1 %v11591_v18 }
 0x63c   :  { %4830 = vmatpush1.bf16.msra.mxu1 %v11589_v19 }
 0x63d   :  { %4831 = vmatprep.subr.bf16.mxu1 %v11594_v21  ;;  %v11638_v21 = vld [vmem:[%s15809_s10 + $0x204] ss:$16 sps:$4 sm:$0xff]  }
 0x640   :  { %4832 = vmatpush1.bf16.msra.mxu1 %v11592_v23  ;;  %v11634_v23 = vld [vmem:[%s15808_s9] sm:$0xff]  }
 0x641   :  { %4833 = vmatprep.subr.bf16.mxu1 %v11597_v49  ;;  %v11636_v49 = vld [vmem:[%s15809_s10 + $0x200] ss:$16 sps:$4 sm:$0xff]  }
 0x644   :  { %4834 = vmatpush1.bf16.msra.mxu1 %v11595_v56  ;;  %v11641_v56 = vld [vmem:[%s15809_s10 + $0x224] ss:$16 sps:$4 sm:$0xff]  }
 0x645   :  { %4835 = vmatprep.subr.bf16.mxu1 %v11600_v53  ;;  %v11639_v53 = vld [vmem:[%s15809_s10 + $0x220] ss:$16 sps:$4 sm:$0xff]  }
 0x648   :  { %4836 = vmatpush1.bf16.msra.mxu1 %v11598_v29  ;;  %v11644_v29 = vld [vmem:[%s15809_s10 + $0x244] ss:$16 sps:$4 sm:$0xff]  }
 0x649   :  { %4837 = vmatprep.subr.bf16.mxu1 %v11603_v30  ;;  %v11635_v30 = vld [vmem:[%s15808_s9 + $0x8] sm:$0xff]  }
 0x64c   :  { %4838 = vmatpush1.bf16.msra.mxu1 %v11601_v32  ;;  %v11642_v32 = vld [vmem:[%s15809_s10 + $0x240] ss:$16 sps:$4 sm:$0xff]  }
 0x64d   :  { %4839 = vmatprep.subr.bf16.mxu1 %v11606_v20  ;;  %v11647_v20 = vld [vmem:[%s15809_s10 + $0x264] ss:$16 sps:$4 sm:$0xff]  }
 0x650   :  { %4840 = vmatpush1.bf16.msra.mxu1 %v11604_v24  ;;  %v11645_v24 = vld [vmem:[%s15809_s10 + $0x260] ss:$16 sps:$4 sm:$0xff]  }
 0x651   :  { %4841 = vmatprep.subr.bf16.mxu1 %v11609_v25  ;;  %v11650_v25 = vld [vmem:[%s15809_s10 + $0x284] ss:$16 sps:$4 sm:$0xff]  }
 0x654   :  { %4842 = vmatpush1.bf16.msra.mxu1 %v11607_v42  ;;  %v11672_v42 = vld [vmem:[%s15808_s9 + $0x10] sm:$0xff]  }
 0x655   :  { %4970 = vmatprep.subr.bf16.mxu1 %v11612_v27  ;;  %v11648_v27 = vld [vmem:[%s15809_s10 + $0x280] ss:$16 sps:$4 sm:$0xff]  }
 0x657   :  { %4860 = vmatmul.mubr.bf16.vlgmr.msra.gmra.mrb[116].mxu1 %v2735_v11  ;;  %v11624_v11 = vld [vmem:[%s15806_s7 + $0x7c4] ss:$8 sps:$4 sm:$0xff]  }
 0x658   :  { %4971 = vmatpush1.bf16.msra.mxu1 %v11610_v46  ;;  %5002 = vmatprep.mubr.bf16.mxu1 %v12408_v43  ;;  %v11653_v46 = vld [vmem:[%s15809_s10 + $0x2a4] ss:$16 sps:$4 sm:$0xff]  }
 0x659   :  { %4972 = vmatprep.subr.bf16.mxu1 %v11615_v34  ;;  %v11651_v34 = vld [vmem:[%s15809_s10 + $0x2a0] ss:$16 sps:$4 sm:$0xff]  }
 0x65c   :  { %4973 = vmatpush1.bf16.msra.mxu1 %v11613_v13  ;;  %v11656_v13 = vld [vmem:[%s15809_s10 + $0x2c4] ss:$16 sps:$4 sm:$0xff]  }
 0x65d   :  { %4974 = vmatprep.subr.bf16.mxu1 %v11618_v52  ;;  %v11654_v52 = vld [vmem:[%s15809_s10 + $0x2c0] ss:$16 sps:$4 sm:$0xff]  }
 0x660   :  { %4975 = vmatpush1.bf16.msra.mxu1 %v11616_v55  ;;  %v11659_v55 = vld [vmem:[%s15809_s10 + $0x2e4] ss:$16 sps:$4 sm:$0xff]  }
 0x661   :  { %4976 = vmatprep.subr.bf16.mxu1 %v11621_v6  ;;  %v11657_v6 = vld [vmem:[%s15809_s10 + $0x2e0] ss:$16 sps:$4 sm:$0xff]  }
 0x664   :  { %4977 = vmatpush1.bf16.msra.mxu1 %v11619_v10  ;;  %v11662_v10 = vld [vmem:[%s15809_s10 + $0x304] ss:$16 sps:$4 sm:$0xff]  }
 0x665   :  { %4978 = vmatprep.subr.bf16.mxu1 %v11624_v11  ;;  %v11660_v11 = vld [vmem:[%s15809_s10 + $0x300] ss:$16 sps:$4 sm:$0xff]  }
 0x668   :  { %4979 = vmatpush1.bf16.msra.mxu1 %v11622_v62  ;;  %v11665_v62 = vld [vmem:[%s15809_s10 + $0x324] ss:$16 sps:$4 sm:$0xff]  }
 0x669   :  { %4980 = vmatprep.subr.bf16.mxu1 %v11627_v1  ;;  %v11663_v1 = vld [vmem:[%s15809_s10 + $0x320] ss:$16 sps:$4 sm:$0xff]  }
 0x66c   :  { %4981 = vmatpush1.bf16.msra.mxu1 %v11625_v3  ;;  %v11668_v3 = vld [vmem:[%s15809_s10 + $0x344] ss:$16 sps:$4 sm:$0xff]  }
 0x66d   :  { %4982 = vmatprep.subr.bf16.mxu1 %v11630_v57  ;;  %v11666_v57 = vld [vmem:[%s15809_s10 + $0x340] ss:$16 sps:$4 sm:$0xff]  }
 0x670   :  { %4983 = vmatpush1.bf16.msra.mxu1 %v11628_v39  ;;  %v11671_v39 = vld [vmem:[%s15809_s10 + $0x364] ss:$16 sps:$4 sm:$0xff]  }
 0x671   :  { %4984 = vmatprep.subr.bf16.mxu1 %v11633_v41  ;;  %v11669_v41 = vld [vmem:[%s15809_s10 + $0x360] ss:$16 sps:$4 sm:$0xff]  }
 0x674   :  { %4985 = vmatpush1.bf16.msra.mxu1 %v11631_v44  ;;  %v11675_v44 = vld [vmem:[%s15809_s10 + $0x384] ss:$16 sps:$4 sm:$0xff]  }
 0x677   :  { %5003 = vmatmul.mubr.bf16.vlgmr.msra.gmra.mrb[116].mxu1 %v2736_v9 }
 0x678   :  { %7237 = vmatprep.mubr.bf16.mxu1 %v12408_v43 }
 0x74a   :  { %v5004_v9 = vpop.f32.mrb[116].mxu1 }
 0x74b   :  { %v5033_v37 = vadd.f32 %v5026_v33, %v5004_v9  ;;  %v5006_v50 = vpop.f32.mrb[117].mxu1  ;;  %v11682_v9 = vld [vmem:[%s15809_s10 + $0x3c4] ss:$16 sps:$4 sm:$0xff]  }
 0x74c   :  { %v5034_v60 = vadd.f32 %v5030_v8, %v5006_v50  ;;  %v5008_v2 = vpop.f32.mrb[118].mxu1  ;;  %v11688_v50 = vld [vmem:[%s15809_s10 + $0x20c] ss:$16 sps:$4 sm:$0xff]  }
 0x74d   :  { %v5037_v7 = vmax.f32 %v5033_v37, 0.0  ;;  %v5035_v12 = vadd.f32 %v5026_v33, %v5008_v2  ;;  %v5010_v22 = vpop.f32.mrb[119].mxu1  ;;  %v11676_v33 = vld [vmem:[%s15809_s10 + $0x3a0] ss:$16 sps:$4 sm:$0xff]   ;;  %v11685_v37 = vld [vmem:[%s15809_s10 + $0x3e4] ss:$16 sps:$4 sm:$0xff]  }
 0x74e   :  { %v5038_v26 = vmax.f32 %v5034_v60, 0.0  ;;  %v5036_v28 = vadd.f32 %v5030_v8, %v5010_v22  ;;  %v11680_v8 = vld [vmem:[%s15809_s10 + $0x3c0] ss:$16 sps:$4 sm:$0xff]  }
 0x74f   :  { %v5052_v51 = vmul.f32 %v5045_v38, %v5037_v7  ;;  %v5039_v59 = vmax.f32 %v5035_v12, 0.0 }
 0x750   :  { %v5053_v14 = vmul.f32 %v5049_v61, %v5038_v26  ;;  %v5040_v4 = vmax.f32 %v5036_v28, 0.0 }
 0x751   :  { %v5054_v31 = vmul.f32 %v5045_v38, %v5039_v59  ;;  %v5067_v36 = vadd.f32 %v5060_v58, %v5052_v51  ;;  %v11683_v38 = vld [vmem:[%s15809_s10 + $0x3e0] ss:$16 sps:$4 sm:$0xff]  }
 0x752   :  { %v5055_v35 = vmul.f32 %v5049_v61, %v5040_v4  ;;  %v5068_v15 = vadd.f32 %v5064_v63, %v5053_v14  ;;  %v11686_v14 = vld [vmem:[%s15809_s10 + $0x208] ss:$16 sps:$4 sm:$0xff]  }
 0x753   :  { %v5069_v5 = vadd.f32 %v5060_v58, %v5054_v31  ;;  %v11689_v4 = vld [vmem:[%s15809_s10 + $0x228] ss:$16 sps:$4 sm:$0xff]   ;;  %v11694_v31 = vld [vmem:[%s15809_s10 + $0x24c] ss:$16 sps:$4 sm:$0xff]  }
 0x754   :  { %v5070_v16 = vadd.f32 %v5064_v63, %v5055_v35  ;;  %v11691_v63 = vld [vmem:[%s15809_s10 + $0x22c] ss:$16 sps:$4 sm:$0xff]   ;;  %v11692_v35 = vld [vmem:[%s15809_s10 + $0x248] ss:$16 sps:$4 sm:$0xff]  }
 0x755   :  { %v5079_v18 = vpack.c.bf16 %v5069_v5, %v5067_v36  ;;  %v11697_v36 = vld [vmem:[%s15809_s10 + $0x26c] ss:$16 sps:$4 sm:$0xff]   ;;  %v11695_v5 = vld [vmem:[%s15809_s10 + $0x268] ss:$16 sps:$4 sm:$0xff]  }
 0x756   :  { %v5080_v19 = vpack.c.bf16 %v5070_v16, %v5068_v15  ;;  %v11700_v15 = vld [vmem:[%s15809_s10 + $0x28c] ss:$16 sps:$4 sm:$0xff]   ;;  %v11698_v16 = vld [vmem:[%s15809_s10 + $0x288] ss:$16 sps:$4 sm:$0xff]  }
 0x758   :  { %5114 = vmatprep.subr.bf16.mxu0 %v5080_v19  ;;  %v11701_v19 = vld [vmem:[%s15809_s10 + $0x2a8] ss:$16 sps:$4 sm:$0xff]  }
 0x759   :  { %5115 = vmatpush1.bf16.msra.mxu0 %v5079_v18  ;;  %v11703_v18 = vld [vmem:[%s15809_s10 + $0x2ac] ss:$16 sps:$4 sm:$0xff]  }
 0x75a   :  { %5643 = vmatprep.subr.bf16.mxu0 %v11638_v21  ;;  %v11706_v21 = vld [vmem:[%s15809_s10 + $0x2cc] ss:$16 sps:$4 sm:$0xff]  }
 0x75c   :  { %9923 = vmatmul.mubr.msk.bf16.vlgmr.msra.gmra.mrb[4].mxu0 %vm5101_vm2, %v11634_v23  ;;  %v11704_v23 = vld [vmem:[%s15809_s10 + $0x2c8] ss:$16 sps:$4 sm:$0xff]  }
 0x75d   :  { %5156 = vmatprep.mubr.bf16.mxu0 %v12408_v43  ;;  %5644 = vmatpush1.bf16.msra.mxu0 %v11636_v49  ;;  %v11709_v49 = vld [vmem:[%s15809_s10 + $0x2ec] ss:$16 sps:$4 sm:$0xff]  }
 0x75e   :  { %5645 = vmatprep.subr.bf16.mxu0 %v11641_v56  ;;  %v11707_v56 = vld [vmem:[%s15809_s10 + $0x2e8] ss:$16 sps:$4 sm:$0xff]  }
 0x761   :  { %5646 = vmatpush1.bf16.msra.mxu0 %v11639_v53  ;;  %v11712_v53 = vld [vmem:[%s15809_s10 + $0x30c] ss:$16 sps:$4 sm:$0xff]  }
 0x762   :  { %5647 = vmatprep.subr.bf16.mxu0 %v11644_v29  ;;  %v11710_v29 = vld [vmem:[%s15809_s10 + $0x308] ss:$16 sps:$4 sm:$0xff]  }
 0x764   :  { %9924 = vmatmul.mubr.msk.bf16.gmra.mrb[8].mxu0 %vm5101_vm2, %v11635_v30  ;;  %v11715_v30 = vld [vmem:[%s15809_s10 + $0x32c] ss:$16 sps:$4 sm:$0xff]  }
 0x765   :  { %5648 = vmatpush1.bf16.msra.mxu0 %v11642_v32  ;;  %5166 = vmatprep.mubr.bf16.mxu0 %v12408_v43  ;;  %v11713_v32 = vld [vmem:[%s15809_s10 + $0x328] ss:$16 sps:$4 sm:$0xff]  }
 0x766   :  { %5649 = vmatprep.subr.bf16.mxu0 %v11647_v20  ;;  %v11718_v20 = vld [vmem:[%s15809_s10 + $0x34c] ss:$16 sps:$4 sm:$0xff]  }
 0x769   :  { %5650 = vmatpush1.bf16.msra.mxu0 %v11645_v24  ;;  %v11716_v24 = vld [vmem:[%s15809_s10 + $0x348] ss:$16 sps:$4 sm:$0xff]  }
 0x76a   :  { %5651 = vmatprep.subr.bf16.mxu0 %v11650_v25  ;;  %v11721_v25 = vld [vmem:[%s15809_s10 + $0x36c] ss:$16 sps:$4 sm:$0xff]  }
 0x76c   :  { %9925 = vmatmul.mubr.msk.bf16.gmra.mrb[12].mxu0 %vm5101_vm2, %v11672_v42  ;;  %v11719_v42 = vld [vmem:[%s15809_s10 + $0x368] ss:$16 sps:$4 sm:$0xff]  }
 0x76d   :  { %5652 = vmatpush1.bf16.msra.mxu0 %v11648_v27  ;;  %5176 = vmatprep.mubr.bf16.mxu0 %v12408_v43  ;;  %v11724_v27 = vld [vmem:[%s15809_s10 + $0x38c] ss:$16 sps:$4 sm:$0xff]  }
 0x76e   :  { %5653 = vmatprep.subr.bf16.mxu0 %v11653_v46  ;;  %v11722_v46 = vld [vmem:[%s15809_s10 + $0x388] ss:$16 sps:$4 sm:$0xff]  }
 0x771   :  { %5654 = vmatpush1.bf16.msra.mxu0 %v11651_v34  ;;  %v11727_v34 = vld [vmem:[%s15809_s10 + $0x3ac] ss:$16 sps:$4 sm:$0xff]  }
 0x772   :  { %5655 = vmatprep.subr.bf16.mxu0 %v11656_v13  ;;  %v11725_v13 = vld [vmem:[%s15809_s10 + $0x3a8] ss:$16 sps:$4 sm:$0xff]  }
 0x774   :  { %9926 = vmatmul.mubr.msk.bf16.gmra.mrb[16].mxu0 %vm5101_vm2, %v11679_v0  ;;  %v11740_v0 = vld [vmem:[%s15809_s10 + $0x40] ss:$16 sps:$4 sm:$0xff]  }
 0x775   :  { %5656 = vmatpush1.bf16.msra.mxu0 %v11654_v52  ;;  %v11730_v52 = vld [vmem:[%s15809_s10 + $0x3cc] ss:$16 sps:$4 sm:$0xff]  }
 0x776   :  { %5657 = vmatprep.subr.bf16.mxu0 %v11659_v55  ;;  %v11728_v55 = vld [vmem:[%s15809_s10 + $0x3c8] ss:$16 sps:$4 sm:$0xff]  }
 0x779   :  { %5658 = vmatpush1.bf16.msra.mxu0 %v11657_v6  ;;  %v11733_v6 = vld [vmem:[%s15809_s10 + $0x3ec] ss:$16 sps:$4 sm:$0xff]  }
 0x77a   :  { %5659 = vmatprep.subr.bf16.mxu0 %v11662_v10  ;;  %v11731_v10 = vld [vmem:[%s15809_s10 + $0x3e8] ss:$16 sps:$4 sm:$0xff]  }
 0x77d   :  { %5660 = vmatpush1.bf16.msra.mxu0 %v11660_v11  ;;  %v11736_v11 = vld [vmem:[%s15809_s10 + $0x4] ss:$16 sps:$4 sm:$0xff]  }
 0x77e   :  { %5661 = vmatprep.subr.bf16.mxu0 %v11665_v62  ;;  %v11734_v62 = vld [vmem:[%s15809_s10] ss:$16 sps:$4 sm:$0xff]  }
 0x781   :  { %5662 = vmatpush1.bf16.msra.mxu0 %v11663_v1  ;;  %v11739_v1 = vld [vmem:[%s15809_s10 + $0x24] ss:$16 sps:$4 sm:$0xff]  }
 0x782   :  { %5663 = vmatprep.subr.bf16.mxu0 %v11668_v3 }
 0x785   :  { %5664 = vmatpush1.bf16.msra.mxu0 %v11666_v57  ;;  %v11737_v57 = vld [vmem:[%s15809_s10 + $0x20] ss:$16 sps:$4 sm:$0xff]  }
 0x786   :  { %5665 = vmatprep.subr.bf16.mxu0 %v11671_v39 }
 0x789   :  { %5666 = vmatpush1.bf16.msra.mxu0 %v11669_v41  ;;  %v11742_v41 = vld [vmem:[%s15809_s10 + $0x44] ss:$16 sps:$4 sm:$0xff]  }
 0x78a   :  { %5667 = vmatprep.subr.bf16.mxu0 %v11675_v44 }
 0x78d   :  { %5668 = vmatpush1.bf16.msra.mxu0 %v11673_v47 }
 0x78e   :  { %5669 = vmatprep.subr.bf16.mxu0 %v11678_v17 }
 0x791   :  { %5670 = vmatpush1.bf16.msra.mxu0 %v11676_v33 }
 0x792   :  { %5671 = vmatprep.subr.bf16.mxu0 %v11682_v9 }
 0x795   :  { %5672 = vmatpush1.bf16.msra.mxu0 %v11680_v8  ;;  %v11745_v8 = vld [vmem:[%s15809_s10 + $0x64] ss:$16 sps:$4 sm:$0xff]  }
 0x796   :  { %5673 = vmatprep.subr.bf16.mxu0 %v11685_v37  ;;  %v11743_v37 = vld [vmem:[%s15809_s10 + $0x60] ss:$16 sps:$4 sm:$0xff]  }
 0x799   :  { %5674 = vmatpush1.bf16.msra.mxu0 %v11683_v38 }
 0x79a   :  { %5686 = vmatprep.subr.bf16.mxu0 %v11688_v50  ;;  %v11748_v50 = vld [vmem:[%s15809_s10 + $0x84] ss:$16 sps:$4 sm:$0xff]  }
 0x82f   :  { %v5148_v54 = vpop.f32.mrb[4].mxu0 }
 0x830   :  { %v5150_v60 = vpop.f32.mrb[5].mxu0 }
 0x831   :  { %v5152_v61 = vpop.f32.mrb[6].mxu0 }
 0x832   :  { %v14207_v2 = vpack.c.bf16 %v5152_v61, %v5148_v54  ;;  %v5154_v7 = vpop.f32.mrb[7].mxu0 }
 0x833   :  { %v14209_v12 = vpack.c.bf16 %v5154_v7, %v5150_v60 }
 0x837   :  { %v5158_v22 = vpop.f32.mrb[8].mxu0 }
 0x838   :  { %v5160_v26 = vpop.f32.mrb[9].mxu0 }
 0x839   :  { %v5162_v28 = vpop.f32.mrb[10].mxu0 }
 0x83a   :  { %v14211_v51 = vpack.c.bf16 %v5162_v28, %v5158_v22  ;;  %v5164_v58 = vpop.f32.mrb[11].mxu0  ;;  %v11746_v22 = vld [vmem:[%s15809_s10 + $0x80] ss:$16 sps:$4 sm:$0xff]  }
 0x83b   :  { %v5190_v59 = vpack.c.bf16 %v5164_v58, %v5160_v26  ;;  %v11751_v26 = vld [vmem:[%s15809_s10 + $0xa4] ss:$16 sps:$4 sm:$0xff]   ;;  %v11749_v28 = vld [vmem:[%s15809_s10 + $0xa0] ss:$16 sps:$4 sm:$0xff]  }
 0x83c   :  { %v11752_v58 = vld [vmem:[%s15809_s10 + $0xc0] ss:$16 sps:$4 sm:$0xff]  }
 0x83d   :  { %5675 = vmatprep.mubr.bf16.mxu0 %v5190_v59 }
 0x83e   :  { %5676 = vmatmul.mubr.bf16.vlgmr.msra.gmra.mrb[20].mxu0 %v14211_v51 }
 0x83f   :  { %5687 = vmatpush1.bf16.msra.mxu0 %v11686_v14  ;;  %5718 = vmatprep.mubr.bf16.mxu0 %v5190_v59  ;;  %v5168_v3 = vpop.f32.mrb[12].mxu0  ;;  %v11757_v59 = vld [vmem:[%s15809_s10 + $0xe4] ss:$16 sps:$4 sm:$0xff]   ;;  %v11755_v14 = vld [vmem:[%s15809_s10 + $0xe0] ss:$16 sps:$4 sm:$0xff]  }
 0x840   :  { %5688 = vmatprep.subr.bf16.mxu0 %v11691_v63  ;;  %v5170_v39 = vpop.f32.mrb[13].mxu0  ;;  %v11760_v63 = vld [vmem:[%s15809_s10 + $0x104] ss:$16 sps:$4 sm:$0xff]  }
 0x841   :  { %v5172_v44 = vpop.f32.mrb[14].mxu0 }
 0x842   :  { %v14324_v47 = vpack.c.bf16 %v5172_v44, %v5168_v3  ;;  %v5174_v17 = vpop.f32.mrb[15].mxu0  ;;  %v11811_v3 = vld [vmem:[%s15809_s10 + $0x12c] ss:$16 sps:$4 sm:$0xff]  }
 0x843   :  { %5689 = vmatpush1.bf16.msra.mxu0 %v11689_v4  ;;  %v14326_v33 = vpack.c.bf16 %v5174_v17, %v5170_v39  ;;  %v11758_v4 = vld [vmem:[%s15809_s10 + $0x100] ss:$16 sps:$4 sm:$0xff]   ;;  %v11814_v39 = vld [vmem:[%s15809_s10 + $0x14c] ss:$16 sps:$4 sm:$0xff]   ;;  %v11815_v17 = vld [vmem:[%s15809_s10 + $0x168] ss:$16 sps:$4 sm:$0xff]  }
 0x844   :  { %5690 = vmatprep.subr.bf16.mxu0 %v11694_v31  ;;  %v11763_v31 = vld [vmem:[%s15809_s10 + $0x124] ss:$16 sps:$4 sm:$0xff]   ;;  %v11817_v44 = vld [vmem:[%s15809_s10 + $0x16c] ss:$16 sps:$4 sm:$0xff]  }
 0x847   :  { %5691 = vmatpush1.bf16.msra.mxu0 %v11692_v35  ;;  %v5178_v9 = vpop.f32.mrb[16].mxu0  ;;  %v11761_v35 = vld [vmem:[%s15809_s10 + $0x120] ss:$16 sps:$4 sm:$0xff]  }
 0x848   :  { %5692 = vmatprep.subr.bf16.mxu0 %v11697_v36  ;;  %v5180_v38 = vpop.f32.mrb[17].mxu0  ;;  %v11766_v36 = vld [vmem:[%s15809_s10 + $0x144] ss:$16 sps:$4 sm:$0xff]  }
 0x849   :  { %v5182_v54 = vpop.f32.mrb[18].mxu0 }
 0x84a   :  { %v14340_v60 = vpack.c.bf16 %v5182_v54, %v5178_v9  ;;  %v5184_v61 = vpop.f32.mrb[19].mxu0  ;;  %v11823_v9 = vld [vmem:[%s15809_s10 + $0x1ac] ss:$16 sps:$4 sm:$0xff]  }
 0x84b   :  { %5693 = vmatpush1.bf16.msra.mxu0 %v11695_v5  ;;  %v14342_v7 = vpack.c.bf16 %v5184_v61, %v5180_v38  ;;  %v11764_v5 = vld [vmem:[%s15809_s10 + $0x140] ss:$16 sps:$4 sm:$0xff]   ;;  %v11826_v38 = vld [vmem:[%s15809_s10 + $0x1cc] ss:$16 sps:$4 sm:$0xff]   ;;  %v11827_v61 = vld [vmem:[%s15809_s10 + $0x1e8] ss:$16 sps:$4 sm:$0xff]  }
 0x84c   :  { %5694 = vmatprep.subr.bf16.mxu0 %v11700_v15  ;;  %v11769_v15 = vld [vmem:[%s15809_s10 + $0x164] ss:$16 sps:$4 sm:$0xff]   ;;  %v11829_v54 = vld [vmem:[%s15809_s10 + $0x1ec] ss:$16 sps:$4 sm:$0xff]  }
 0x84f   :  { %5695 = vmatpush1.bf16.msra.mxu0 %v11698_v16  ;;  %v11767_v16 = vld [vmem:[%s15809_s10 + $0x160] ss:$16 sps:$4 sm:$0xff]  }
 0x850   :  { %5696 = vmatprep.subr.bf16.mxu0 %v11703_v18  ;;  %v11772_v18 = vld [vmem:[%s15809_s10 + $0x184] ss:$16 sps:$4 sm:$0xff]  }
 0x853   :  { %5697 = vmatpush1.bf16.msra.mxu0 %v11701_v19  ;;  %v11770_v19 = vld [vmem:[%s15809_s10 + $0x180] ss:$16 sps:$4 sm:$0xff]  }
 0x854   :  { %5698 = vmatprep.subr.bf16.mxu0 %v11706_v21  ;;  %v11775_v21 = vld [vmem:[%s15809_s10 + $0x1a4] ss:$16 sps:$4 sm:$0xff]  }
 0x857   :  { %5699 = vmatpush1.bf16.msra.mxu0 %v11704_v23  ;;  %v11773_v23 = vld [vmem:[%s15809_s10 + $0x1a0] ss:$16 sps:$4 sm:$0xff]  }
 0x858   :  { %5700 = vmatprep.subr.bf16.mxu0 %v11709_v49  ;;  %v11778_v49 = vld [vmem:[%s15809_s10 + $0x1c4] ss:$16 sps:$4 sm:$0xff]  }
 0x85b   :  { %5701 = vmatpush1.bf16.msra.mxu0 %v11707_v56  ;;  %v11776_v56 = vld [vmem:[%s15809_s10 + $0x1c0] ss:$16 sps:$4 sm:$0xff]  }
 0x85c   :  { %5702 = vmatprep.subr.bf16.mxu0 %v11712_v53  ;;  %v11781_v53 = vld [vmem:[%s15809_s10 + $0x1e4] ss:$16 sps:$4 sm:$0xff]  }
 0x85f   :  { %5703 = vmatpush1.bf16.msra.mxu0 %v11710_v29  ;;  %v11779_v29 = vld [vmem:[%s15809_s10 + $0x1e0] ss:$16 sps:$4 sm:$0xff]  }
 0x860   :  { %5704 = vmatprep.subr.bf16.mxu0 %v11715_v30  ;;  %v11784_v30 = vld [vmem:[%s15809_s10 + $0xc] ss:$16 sps:$4 sm:$0xff]  }
 0x863   :  { %5705 = vmatpush1.bf16.msra.mxu0 %v11713_v32  ;;  %v11782_v32 = vld [vmem:[%s15809_s10 + $0x8] ss:$16 sps:$4 sm:$0xff]  }
 0x864   :  { %5706 = vmatprep.subr.bf16.mxu0 %v11718_v20  ;;  %v11787_v20 = vld [vmem:[%s15809_s10 + $0x2c] ss:$16 sps:$4 sm:$0xff]  }
 0x867   :  { %5707 = vmatpush1.bf16.msra.mxu0 %v11716_v24  ;;  %v11785_v24 = vld [vmem:[%s15809_s10 + $0x28] ss:$16 sps:$4 sm:$0xff]  }
 0x868   :  { %5708 = vmatprep.subr.bf16.mxu0 %v11721_v25  ;;  %v11790_v25 = vld [vmem:[%s15809_s10 + $0x4c] ss:$16 sps:$4 sm:$0xff]  }
 0x86b   :  { %5709 = vmatpush1.bf16.msra.mxu0 %v11719_v42  ;;  %v11788_v42 = vld [vmem:[%s15809_s10 + $0x48] ss:$16 sps:$4 sm:$0xff]  }
 0x86c   :  { %5710 = vmatprep.subr.bf16.mxu0 %v11724_v27  ;;  %v11793_v27 = vld [vmem:[%s15809_s10 + $0x6c] ss:$16 sps:$4 sm:$0xff]  }
 0x86f   :  { %5711 = vmatpush1.bf16.msra.mxu0 %v11722_v46  ;;  %v11796_v46 = vld [vmem:[%s15809_s10 + $0x8c] ss:$16 sps:$4 sm:$0xff]  }
 0x870   :  { %5712 = vmatprep.subr.bf16.mxu0 %v11727_v34  ;;  %v11794_v34 = vld [vmem:[%s15809_s10 + $0x88] ss:$16 sps:$4 sm:$0xff]  }
 0x873   :  { %5713 = vmatpush1.bf16.msra.mxu0 %v11725_v13  ;;  %v11799_v13 = vld [vmem:[%s15809_s10 + $0xac] ss:$16 sps:$4 sm:$0xff]  }
 0x874   :  { %5714 = vmatprep.subr.bf16.mxu0 %v11730_v52  ;;  %v11797_v52 = vld [vmem:[%s15809_s10 + $0xa8] ss:$16 sps:$4 sm:$0xff]  }
 0x877   :  { %5715 = vmatpush1.bf16.msra.mxu0 %v11728_v55  ;;  %v11802_v55 = vld [vmem:[%s15809_s10 + $0xcc] ss:$16 sps:$4 sm:$0xff]  }
 0x878   :  { %5716 = vmatprep.subr.bf16.mxu0 %v11733_v6  ;;  %v11800_v6 = vld [vmem:[%s15809_s10 + $0xc8] ss:$16 sps:$4 sm:$0xff]  }
 0x87b   :  { %5717 = vmatpush1.bf16.msra.mxu0 %v11731_v10  ;;  %v11805_v10 = vld [vmem:[%s15809_s10 + $0xec] ss:$16 sps:$4 sm:$0xff]  }
 0x87c   :  { %6049 = vmatprep.subr.bf16.mxu0 %v11736_v11  ;;  %v11803_v11 = vld [vmem:[%s15809_s10 + $0xe8] ss:$16 sps:$4 sm:$0xff]  }
 0x87e   :  { %5719 = vmatmul.mubr.bf16.vlgmr.msra.gmra.mrb[24].mxu0 %v14211_v51  ;;  %v11754_v51 = vld [vmem:[%s15809_s10 + $0xc4] ss:$16 sps:$4 sm:$0xff]  }
 0x87f   :  { %6050 = vmatpush1.bf16.msra.mxu0 %v11734_v62  ;;  %6081 = vmatprep.mubr.bf16.mxu0 %v14209_v12  ;;  %v11808_v62 = vld [vmem:[%s15809_s10 + $0x10c] ss:$16 sps:$4 sm:$0xff]  }
 0x880   :  { %6051 = vmatprep.subr.bf16.mxu0 %v11739_v1  ;;  %v11806_v1 = vld [vmem:[%s15809_s10 + $0x108] ss:$16 sps:$4 sm:$0xff]  }
 0x883   :  { %6052 = vmatpush1.bf16.msra.mxu0 %v11737_v57  ;;  %v11809_v57 = vld [vmem:[%s15809_s10 + $0x128] ss:$16 sps:$4 sm:$0xff]  }
 0x884   :  { %6053 = vmatprep.subr.bf16.mxu0 %v11742_v41  ;;  %v11812_v41 = vld [vmem:[%s15809_s10 + $0x148] ss:$16 sps:$4 sm:$0xff]  }
 0x887   :  { %6054 = vmatpush1.bf16.msra.mxu0 %v11740_v0  ;;  %v11820_v0 = vld [vmem:[%s15809_s10 + $0x18c] ss:$16 sps:$4 sm:$0xff]  }
 0x888   :  { %6055 = vmatprep.subr.bf16.mxu0 %v11745_v8  ;;  %v11818_v8 = vld [vmem:[%s15809_s10 + $0x188] ss:$16 sps:$4 sm:$0xff]  }
 0x88b   :  { %6056 = vmatpush1.bf16.msra.mxu0 %v11743_v37  ;;  %v11821_v37 = vld [vmem:[%s15809_s10 + $0x1a8] ss:$16 sps:$4 sm:$0xff]  }
 0x88c   :  { %6057 = vmatprep.subr.bf16.mxu0 %v11748_v50  ;;  %v11824_v50 = vld [vmem:[%s15809_s10 + $0x1c8] ss:$16 sps:$4 sm:$0xff]  }
 0x88f   :  { %6058 = vmatpush1.bf16.msra.mxu0 %v11746_v22  ;;  %v11832_v22 = vld [vmem:[%s15809_s10 + $0x404] ss:$16 sps:$4 sm:$0xff]  }
 0x890   :  { %6059 = vmatprep.subr.bf16.mxu0 %v11751_v26  ;;  %v11830_v26 = vld [vmem:[%s15809_s10 + $0x400] ss:$16 sps:$4 sm:$0xff]  }
 0x893   :  { %6060 = vmatpush1.bf16.msra.mxu0 %v11749_v28  ;;  %v11835_v28 = vld [vmem:[%s15809_s10 + $0x424] ss:$16 sps:$4 sm:$0xff]  }
 0x894   :  { %6061 = vmatprep.subr.bf16.mxu0 %v11754_v51  ;;  %v11833_v51 = vld [vmem:[%s15809_s10 + $0x420] ss:$16 sps:$4 sm:$0xff]  }
 0x897   :  { %6062 = vmatpush1.bf16.msra.mxu0 %v11752_v58  ;;  %v11838_v58 = vld [vmem:[%s15809_s10 + $0x444] ss:$16 sps:$4 sm:$0xff]  }
 0x898   :  { %6063 = vmatprep.subr.bf16.mxu0 %v11757_v59  ;;  %v11836_v59 = vld [vmem:[%s15809_s10 + $0x440] ss:$16 sps:$4 sm:$0xff]  }
 0x89b   :  { %6064 = vmatpush1.bf16.msra.mxu0 %v11755_v14  ;;  %v11839_v14 = vld [vmem:[%s15809_s10 + $0x460] ss:$16 sps:$4 sm:$0xff]  }
 0x89c   :  { %6065 = vmatprep.subr.bf16.mxu0 %v11760_v63  ;;  %v11844_v63 = vld [vmem:[%s15809_s10 + $0x484] ss:$16 sps:$4 sm:$0xff]  }
 0x89f   :  { %6066 = vmatpush1.bf16.msra.mxu0 %v11758_v4  ;;  %v11842_v4 = vld [vmem:[%s15809_s10 + $0x480] ss:$16 sps:$4 sm:$0xff]  }
 0x8a0   :  { %6067 = vmatprep.subr.bf16.mxu0 %v11763_v31  ;;  %v11847_v31 = vld [vmem:[%s15809_s10 + $0x4a4] ss:$16 sps:$4 sm:$0xff]  }
 0x8a3   :  { %6068 = vmatpush1.bf16.msra.mxu0 %v11761_v35  ;;  %v11845_v35 = vld [vmem:[%s15809_s10 + $0x4a0] ss:$16 sps:$4 sm:$0xff]  }
 0x8a4   :  { %6069 = vmatprep.subr.bf16.mxu0 %v11766_v36  ;;  %v11850_v36 = vld [vmem:[%s15809_s10 + $0x4c4] ss:$16 sps:$4 sm:$0xff]  }
 0x8a7   :  { %6070 = vmatpush1.bf16.msra.mxu0 %v11764_v5  ;;  %v11848_v5 = vld [vmem:[%s15809_s10 + $0x4c0] ss:$16 sps:$4 sm:$0xff]  }
 0x8a8   :  { %6071 = vmatprep.subr.bf16.mxu0 %v11769_v15  ;;  %v11853_v15 = vld [vmem:[%s15809_s10 + $0x4e4] ss:$16 sps:$4 sm:$0xff]  }
 0x8ab   :  { %6072 = vmatpush1.bf16.msra.mxu0 %v11767_v16  ;;  %v11851_v16 = vld [vmem:[%s15809_s10 + $0x4e0] ss:$16 sps:$4 sm:$0xff]  }
 0x8ac   :  { %6073 = vmatprep.subr.bf16.mxu0 %v11772_v18  ;;  %v11856_v18 = vld [vmem:[%s15809_s10 + $0x504] ss:$16 sps:$4 sm:$0xff]  }
 0x8af   :  { %6074 = vmatpush1.bf16.msra.mxu0 %v11770_v19  ;;  %v11854_v19 = vld [vmem:[%s15809_s10 + $0x500] ss:$16 sps:$4 sm:$0xff]  }
 0x8b0   :  { %6075 = vmatprep.subr.bf16.mxu0 %v11775_v21  ;;  %v11859_v21 = vld [vmem:[%s15809_s10 + $0x524] ss:$16 sps:$4 sm:$0xff]  }
 0x8b3   :  { %6076 = vmatpush1.bf16.msra.mxu0 %v11773_v23  ;;  %v11857_v23 = vld [vmem:[%s15809_s10 + $0x520] ss:$16 sps:$4 sm:$0xff]  }
 0x8b4   :  { %6077 = vmatprep.subr.bf16.mxu0 %v11778_v49  ;;  %v11862_v49 = vld [vmem:[%s15809_s10 + $0x544] ss:$16 sps:$4 sm:$0xff]  }
 0x8b7   :  { %6078 = vmatpush1.bf16.msra.mxu0 %v11776_v56  ;;  %v11860_v56 = vld [vmem:[%s15809_s10 + $0x540] ss:$16 sps:$4 sm:$0xff]  }
 0x8b8   :  { %6079 = vmatprep.subr.bf16.mxu0 %v11781_v53  ;;  %v11865_v53 = vld [vmem:[%s15809_s10 + $0x564] ss:$16 sps:$4 sm:$0xff]  }
 0x8bb   :  { %6080 = vmatpush1.bf16.msra.mxu0 %v11779_v29  ;;  %v11863_v29 = vld [vmem:[%s15809_s10 + $0x560] ss:$16 sps:$4 sm:$0xff]  }
 0x8bc   :  { %6092 = vmatprep.subr.bf16.mxu0 %v11784_v30  ;;  %v11868_v30 = vld [vmem:[%s15809_s10 + $0x584] ss:$16 sps:$4 sm:$0xff]  }
 0x8be   :  { %6082 = vmatmul.mubr.bf16.vlgmr.msra.gmra.mrb[20].mxu0 %v14207_v2 }
 0x8bf   :  { %6093 = vmatpush1.bf16.msra.mxu0 %v11782_v32  ;;  %6124 = vmatprep.mubr.bf16.mxu0 %v14209_v12  ;;  %v11791_v12 = vld [vmem:[%s15809_s10 + $0x68] ss:$16 sps:$4 sm:$0xff]   ;;  %v11866_v32 = vld [vmem:[%s15809_s10 + $0x580] ss:$16 sps:$4 sm:$0xff]  }
 0x8c0   :  { %6094 = vmatprep.subr.bf16.mxu0 %v11787_v20  ;;  %v11871_v20 = vld [vmem:[%s15809_s10 + $0x5a4] ss:$16 sps:$4 sm:$0xff]  }
 0x8c3   :  { %6095 = vmatpush1.bf16.msra.mxu0 %v11785_v24  ;;  %v11869_v24 = vld [vmem:[%s15809_s10 + $0x5a0] ss:$16 sps:$4 sm:$0xff]  }
 0x8c4   :  { %6096 = vmatprep.subr.bf16.mxu0 %v11790_v25  ;;  %v11874_v25 = vld [vmem:[%s15809_s10 + $0x5c4] ss:$16 sps:$4 sm:$0xff]  }
 0x8c7   :  { %6097 = vmatpush1.bf16.msra.mxu0 %v11788_v42  ;;  %v11872_v42 = vld [vmem:[%s15809_s10 + $0x5c0] ss:$16 sps:$4 sm:$0xff]  }
 0x8c8   :  { %6098 = vmatprep.subr.bf16.mxu0 %v11793_v27  ;;  %v11877_v27 = vld [vmem:[%s15809_s10 + $0x5e4] ss:$16 sps:$4 sm:$0xff]  }
 0x8cb   :  { %6099 = vmatpush1.bf16.msra.mxu0 %v11791_v12  ;;  %v11875_v12 = vld [vmem:[%s15809_s10 + $0x5e0] ss:$16 sps:$4 sm:$0xff]  }
 0x8cc   :  { %6100 = vmatprep.subr.bf16.mxu0 %v11796_v46  ;;  %v11880_v46 = vld [vmem:[%s15809_s10 + $0x40c] ss:$16 sps:$4 sm:$0xff]  }
 0x8cf   :  { %6101 = vmatpush1.bf16.msra.mxu0 %v11794_v34  ;;  %v11878_v34 = vld [vmem:[%s15809_s10 + $0x408] ss:$16 sps:$4 sm:$0xff]  }
 0x8d0   :  { %6102 = vmatprep.subr.bf16.mxu0 %v11799_v13  ;;  %v11883_v13 = vld [vmem:[%s15809_s10 + $0x42c] ss:$16 sps:$4 sm:$0xff]  }
 0x8d3   :  { %6103 = vmatpush1.bf16.msra.mxu0 %v11797_v52  ;;  %v11881_v52 = vld [vmem:[%s15809_s10 + $0x428] ss:$16 sps:$4 sm:$0xff]  }
 0x8d4   :  { %6104 = vmatprep.subr.bf16.mxu0 %v11802_v55  ;;  %v11886_v55 = vld [vmem:[%s15809_s10 + $0x44c] ss:$16 sps:$4 sm:$0xff]  }
 0x8d7   :  { %6105 = vmatpush1.bf16.msra.mxu0 %v11800_v6  ;;  %v11884_v6 = vld [vmem:[%s15809_s10 + $0x448] ss:$16 sps:$4 sm:$0xff]  }
 0x8d8   :  { %6106 = vmatprep.subr.bf16.mxu0 %v11805_v10  ;;  %v11889_v10 = vld [vmem:[%s15809_s10 + $0x46c] ss:$16 sps:$4 sm:$0xff]  }
 0x8db   :  { %6107 = vmatpush1.bf16.msra.mxu0 %v11803_v11  ;;  %v11892_v11 = vld [vmem:[%s15809_s10 + $0x48c] ss:$16 sps:$4 sm:$0xff]  }
 0x8dc   :  { %6108 = vmatprep.subr.bf16.mxu0 %v11808_v62  ;;  %v11890_v62 = vld [vmem:[%s15809_s10 + $0x488] ss:$16 sps:$4 sm:$0xff]  }
 0x8df   :  { %6109 = vmatpush1.bf16.msra.mxu0 %v11806_v1  ;;  %v11895_v1 = vld [vmem:[%s15809_s10 + $0x4ac] ss:$16 sps:$4 sm:$0xff]  }
 0x8e0   :  { %6110 = vmatprep.subr.bf16.mxu0 %v11811_v3  ;;  %v11893_v3 = vld [vmem:[%s15809_s10 + $0x4a8] ss:$16 sps:$4 sm:$0xff]  }
 0x8e3   :  { %6111 = vmatpush1.bf16.msra.mxu0 %v11809_v57  ;;  %v11898_v57 = vld [vmem:[%s15809_s10 + $0x4cc] ss:$16 sps:$4 sm:$0xff]  }
 0x8e4   :  { %6112 = vmatprep.subr.bf16.mxu0 %v11814_v39  ;;  %v11896_v39 = vld [vmem:[%s15809_s10 + $0x4c8] ss:$16 sps:$4 sm:$0xff]  }
 0x8e7   :  { %6113 = vmatpush1.bf16.msra.mxu0 %v11812_v41  ;;  %v11901_v41 = vld [vmem:[%s15809_s10 + $0x4ec] ss:$16 sps:$4 sm:$0xff]  }
 0x8e8   :  { %6114 = vmatprep.subr.bf16.mxu0 %v11817_v44  ;;  %v11899_v44 = vld [vmem:[%s15809_s10 + $0x4e8] ss:$16 sps:$4 sm:$0xff]  }
 0x8eb   :  { %6115 = vmatpush1.bf16.msra.mxu0 %v11815_v17  ;;  %v11904_v17 = vld [vmem:[%s15809_s10 + $0x50c] ss:$16 sps:$4 sm:$0xff]  }
 0x8ec   :  { %6116 = vmatprep.subr.bf16.mxu0 %v11820_v0  ;;  %v11902_v0 = vld [vmem:[%s15809_s10 + $0x508] ss:$16 sps:$4 sm:$0xff]  }
 0x8ef   :  { %6117 = vmatpush1.bf16.msra.mxu0 %v11818_v8  ;;  %v11907_v8 = vld [vmem:[%s15809_s10 + $0x52c] ss:$16 sps:$4 sm:$0xff]  }
 0x8f0   :  { %6118 = vmatprep.subr.bf16.mxu0 %v11823_v9  ;;  %v11905_v9 = vld [vmem:[%s15809_s10 + $0x528] ss:$16 sps:$4 sm:$0xff]  }
 0x8f3   :  { %6119 = vmatpush1.bf16.msra.mxu0 %v11821_v37  ;;  %v11910_v37 = vld [vmem:[%s15809_s10 + $0x54c] ss:$16 sps:$4 sm:$0xff]  }
 0x8f4   :  { %6120 = vmatprep.subr.bf16.mxu0 %v11826_v38  ;;  %v11908_v38 = vld [vmem:[%s15809_s10 + $0x548] ss:$16 sps:$4 sm:$0xff]  }
 0x8f7   :  { %6121 = vmatpush1.bf16.msra.mxu0 %v11824_v50  ;;  %v11913_v50 = vld [vmem:[%s15809_s10 + $0x56c] ss:$16 sps:$4 sm:$0xff]  }
 0x8f8   :  { %6122 = vmatprep.subr.bf16.mxu0 %v11829_v54  ;;  %v11911_v54 = vld [vmem:[%s15809_s10 + $0x568] ss:$16 sps:$4 sm:$0xff]  }
 0x8fb   :  { %6123 = vmatpush1.bf16.msra.mxu0 %v11827_v61  ;;  %v11916_v61 = vld [vmem:[%s15809_s10 + $0x58c] ss:$16 sps:$4 sm:$0xff]  }
 0x8fc   :  { %6519 = vmatprep.subr.bf16.mxu0 %v11832_v22  ;;  %v11914_v22 = vld [vmem:[%s15809_s10 + $0x588] ss:$16 sps:$4 sm:$0xff]  }
 0x8fe   :  { %6125 = vmatmul.mubr.bf16.vlgmr.msra.gmra.mrb[24].mxu0 %v14207_v2  ;;  %v11841_v2 = vld [vmem:[%s15809_s10 + $0x464] ss:$16 sps:$4 sm:$0xff]  }
 0x8ff   :  { %6520 = vmatpush1.bf16.msra.mxu0 %v11830_v26  ;;  %6551 = vmatprep.mubr.bf16.mxu0 %v14326_v33  ;;  %v11919_v26 = vld [vmem:[%s15809_s10 + $0x5ac] ss:$16 sps:$4 sm:$0xff]  }
 0x900   :  { %6521 = vmatprep.subr.bf16.mxu0 %v11835_v28  ;;  %v11917_v28 = vld [vmem:[%s15809_s10 + $0x5a8] ss:$16 sps:$4 sm:$0xff]  }
 0x903   :  { %6522 = vmatpush1.bf16.msra.mxu0 %v11833_v51  ;;  %v11922_v51 = vld [vmem:[%s15809_s10 + $0x5cc] ss:$16 sps:$4 sm:$0xff]  }
 0x904   :  { %6523 = vmatprep.subr.bf16.mxu0 %v11838_v58  ;;  %v11920_v58 = vld [vmem:[%s15809_s10 + $0x5c8] ss:$16 sps:$4 sm:$0xff]  }
 0x907   :  { %6524 = vmatpush1.bf16.msra.mxu0 %v11836_v59  ;;  %v11925_v59 = vld [vmem:[%s15809_s10 + $0x5ec] ss:$16 sps:$4 sm:$0xff]  }
 0x908   :  { %6525 = vmatprep.subr.bf16.mxu0 %v11841_v2  ;;  %v11923_v2 = vld [vmem:[%s15809_s10 + $0x5e8] ss:$16 sps:$4 sm:$0xff]  }
 0x90b   :  { %6526 = vmatpush1.bf16.msra.mxu0 %v11839_v14  ;;  %v11928_v14 = vld [vmem:[%s15809_s10 + $0x604] ss:$16 sps:$4 sm:$0xff]  }
 0x90c   :  { %6527 = vmatprep.subr.bf16.mxu0 %v11844_v63  ;;  %v11926_v63 = vld [vmem:[%s15809_s10 + $0x600] ss:$16 sps:$4 sm:$0xff]  }
 0x90f   :  { %6528 = vmatpush1.bf16.msra.mxu0 %v11842_v4  ;;  %v11931_v4 = vld [vmem:[%s15809_s10 + $0x624] ss:$16 sps:$4 sm:$0xff]  }
 0x910   :  { %6529 = vmatprep.subr.bf16.mxu0 %v11847_v31  ;;  %v11929_v31 = vld [vmem:[%s15809_s10 + $0x620] ss:$16 sps:$4 sm:$0xff]  }
 0x913   :  { %6530 = vmatpush1.bf16.msra.mxu0 %v11845_v35  ;;  %v11934_v35 = vld [vmem:[%s15809_s10 + $0x644] ss:$16 sps:$4 sm:$0xff]  }
 0x914   :  { %6531 = vmatprep.subr.bf16.mxu0 %v11850_v36  ;;  %v11932_v36 = vld [vmem:[%s15809_s10 + $0x640] ss:$16 sps:$4 sm:$0xff]  }
 0x917   :  { %6532 = vmatpush1.bf16.msra.mxu0 %v11848_v5  ;;  %v11935_v5 = vld [vmem:[%s15809_s10 + $0x660] ss:$16 sps:$4 sm:$0xff]  }
 0x918   :  { %6533 = vmatprep.subr.bf16.mxu0 %v11853_v15  ;;  %v11940_v15 = vld [vmem:[%s15809_s10 + $0x684] ss:$16 sps:$4 sm:$0xff]  }
 0x91b   :  { %6534 = vmatpush1.bf16.msra.mxu0 %v11851_v16  ;;  %v11938_v16 = vld [vmem:[%s15809_s10 + $0x680] ss:$16 sps:$4 sm:$0xff]  }
 0x91c   :  { %6535 = vmatprep.subr.bf16.mxu0 %v11856_v18  ;;  %v11943_v18 = vld [vmem:[%s15809_s10 + $0x6a4] ss:$16 sps:$4 sm:$0xff]  }
 0x91f   :  { %6536 = vmatpush1.bf16.msra.mxu0 %v11854_v19  ;;  %v11941_v19 = vld [vmem:[%s15809_s10 + $0x6a0] ss:$16 sps:$4 sm:$0xff]  }
 0x920   :  { %6537 = vmatprep.subr.bf16.mxu0 %v11859_v21  ;;  %v11946_v21 = vld [vmem:[%s15809_s10 + $0x6c4] ss:$16 sps:$4 sm:$0xff]  }
 0x923   :  { %6538 = vmatpush1.bf16.msra.mxu0 %v11857_v23  ;;  %v11944_v23 = vld [vmem:[%s15809_s10 + $0x6c0] ss:$16 sps:$4 sm:$0xff]  }
 0x924   :  { %6539 = vmatprep.subr.bf16.mxu0 %v11862_v49  ;;  %v11949_v49 = vld [vmem:[%s15809_s10 + $0x6e4] ss:$16 sps:$4 sm:$0xff]  }
 0x927   :  { %6540 = vmatpush1.bf16.msra.mxu0 %v11860_v56  ;;  %v11947_v56 = vld [vmem:[%s15809_s10 + $0x6e0] ss:$16 sps:$4 sm:$0xff]  }
 0x928   :  { %6541 = vmatprep.subr.bf16.mxu0 %v11865_v53  ;;  %v11952_v53 = vld [vmem:[%s15809_s10 + $0x704] ss:$16 sps:$4 sm:$0xff]  }
 0x92b   :  { %6542 = vmatpush1.bf16.msra.mxu0 %v11863_v29  ;;  %v11950_v29 = vld [vmem:[%s15809_s10 + $0x700] ss:$16 sps:$4 sm:$0xff]  }
 0x92c   :  { %6543 = vmatprep.subr.bf16.mxu0 %v11868_v30  ;;  %v11955_v30 = vld [vmem:[%s15809_s10 + $0x724] ss:$16 sps:$4 sm:$0xff]  }
 0x92f   :  { %6544 = vmatpush1.bf16.msra.mxu0 %v11866_v32  ;;  %v11953_v32 = vld [vmem:[%s15809_s10 + $0x720] ss:$16 sps:$4 sm:$0xff]  }
 0x930   :  { %6545 = vmatprep.subr.bf16.mxu0 %v11871_v20  ;;  %v11958_v20 = vld [vmem:[%s15809_s10 + $0x744] ss:$16 sps:$4 sm:$0xff]  }
 0x933   :  { %6546 = vmatpush1.bf16.msra.mxu0 %v11869_v24  ;;  %v11956_v24 = vld [vmem:[%s15809_s10 + $0x740] ss:$16 sps:$4 sm:$0xff]  }
 0x934   :  { %6547 = vmatprep.subr.bf16.mxu0 %v11874_v25  ;;  %v11961_v25 = vld [vmem:[%s15809_s10 + $0x764] ss:$16 sps:$4 sm:$0xff]  }
 0x937   :  { %6548 = vmatpush1.bf16.msra.mxu0 %v11872_v42  ;;  %v11959_v42 = vld [vmem:[%s15809_s10 + $0x760] ss:$16 sps:$4 sm:$0xff]  }
 0x938   :  { %6549 = vmatprep.subr.bf16.mxu0 %v11877_v27  ;;  %v11964_v27 = vld [vmem:[%s15809_s10 + $0x784] ss:$16 sps:$4 sm:$0xff]  }
 0x93b   :  { %6550 = vmatpush1.bf16.msra.mxu0 %v11875_v12  ;;  %v11962_v12 = vld [vmem:[%s15809_s10 + $0x780] ss:$16 sps:$4 sm:$0xff]  }
 0x93c   :  { %6562 = vmatprep.subr.bf16.mxu0 %v11880_v46  ;;  %v11967_v46 = vld [vmem:[%s15809_s10 + $0x7a4] ss:$16 sps:$4 sm:$0xff]  }
 0x93e   :  { %6552 = vmatmul.mubr.bf16.vlgmr.msra.gmra.mrb[20].mxu0 %v14324_v47 }
 0x93f   :  { %6563 = vmatpush1.bf16.msra.mxu0 %v11878_v34  ;;  %6594 = vmatprep.mubr.bf16.mxu0 %v14326_v33  ;;  %v11887_v33 = vld [vmem:[%s15809_s10 + $0x468] ss:$16 sps:$4 sm:$0xff]   ;;  %v11965_v34 = vld [vmem:[%s15809_s10 + $0x7a0] ss:$16 sps:$4 sm:$0xff]  }
 0x940   :  { %6564 = vmatprep.subr.bf16.mxu0 %v11883_v13  ;;  %v11970_v13 = vld [vmem:[%s15809_s10 + $0x7c4] ss:$16 sps:$4 sm:$0xff]  }
 0x943   :  { %6565 = vmatpush1.bf16.msra.mxu0 %v11881_v52  ;;  %v11968_v52 = vld [vmem:[%s15809_s10 + $0x7c0] ss:$16 sps:$4 sm:$0xff]  }
 0x944   :  { %6566 = vmatprep.subr.bf16.mxu0 %v11886_v55  ;;  %v11973_v55 = vld [vmem:[%s15809_s10 + $0x7e4] ss:$16 sps:$4 sm:$0xff]  }
 0x947   :  { %6567 = vmatpush1.bf16.msra.mxu0 %v11884_v6  ;;  %v11971_v6 = vld [vmem:[%s15809_s10 + $0x7e0] ss:$16 sps:$4 sm:$0xff]  }
 0x948   :  { %6568 = vmatprep.subr.bf16.mxu0 %v11889_v10  ;;  %v11976_v10 = vld [vmem:[%s15809_s10 + $0x60c] ss:$16 sps:$4 sm:$0xff]  }
 0x94b   :  { %6569 = vmatpush1.bf16.msra.mxu0 %v11887_v33  ;;  %v11974_v33 = vld [vmem:[%s15809_s10 + $0x608] ss:$16 sps:$4 sm:$0xff]  }
 0x94c   :  { %6570 = vmatprep.subr.bf16.mxu0 %v11892_v11  ;;  %v11979_v11 = vld [vmem:[%s15809_s10 + $0x62c] ss:$16 sps:$4 sm:$0xff]  }
 0x94f   :  { %6571 = vmatpush1.bf16.msra.mxu0 %v11890_v62  ;;  %v11977_v62 = vld [vmem:[%s15809_s10 + $0x628] ss:$16 sps:$4 sm:$0xff]  }
 0x950   :  { %6572 = vmatprep.subr.bf16.mxu0 %v11895_v1  ;;  %v11982_v1 = vld [vmem:[%s15809_s10 + $0x64c] ss:$16 sps:$4 sm:$0xff]  }
 0x953   :  { %6573 = vmatpush1.bf16.msra.mxu0 %v11893_v3  ;;  %v11980_v3 = vld [vmem:[%s15809_s10 + $0x648] ss:$16 sps:$4 sm:$0xff]  }
 0x954   :  { %6574 = vmatprep.subr.bf16.mxu0 %v11898_v57  ;;  %v11985_v57 = vld [vmem:[%s15809_s10 + $0x66c] ss:$16 sps:$4 sm:$0xff]  }
 0x957   :  { %6575 = vmatpush1.bf16.msra.mxu0 %v11896_v39  ;;  %v11988_v39 = vld [vmem:[%s15809_s10 + $0x68c] ss:$16 sps:$4 sm:$0xff]  }
 0x958   :  { %6576 = vmatprep.subr.bf16.mxu0 %v11901_v41  ;;  %v11986_v41 = vld [vmem:[%s15809_s10 + $0x688] ss:$16 sps:$4 sm:$0xff]  }
 0x95b   :  { %6577 = vmatpush1.bf16.msra.mxu0 %v11899_v44  ;;  %v11991_v44 = vld [vmem:[%s15809_s10 + $0x6ac] ss:$16 sps:$4 sm:$0xff]  }
 0x95c   :  { %6578 = vmatprep.subr.bf16.mxu0 %v11904_v17  ;;  %v11989_v17 = vld [vmem:[%s15809_s10 + $0x6a8] ss:$16 sps:$4 sm:$0xff]  }
 0x95f   :  { %6579 = vmatpush1.bf16.msra.mxu0 %v11902_v0  ;;  %v11994_v0 = vld [vmem:[%s15809_s10 + $0x6cc] ss:$16 sps:$4 sm:$0xff]  }
 0x960   :  { %6580 = vmatprep.subr.bf16.mxu0 %v11907_v8  ;;  %v11992_v8 = vld [vmem:[%s15809_s10 + $0x6c8] ss:$16 sps:$4 sm:$0xff]  }
 0x963   :  { %6581 = vmatpush1.bf16.msra.mxu0 %v11905_v9  ;;  %v11997_v9 = vld [vmem:[%s15809_s10 + $0x6ec] ss:$16 sps:$4 sm:$0xff]  }
 0x964   :  { %6582 = vmatprep.subr.bf16.mxu0 %v11910_v37  ;;  %v11995_v37 = vld [vmem:[%s15809_s10 + $0x6e8] ss:$16 sps:$4 sm:$0xff]  }
 0x967   :  { %6583 = vmatpush1.bf16.msra.mxu0 %v11908_v38  ;;  %v12000_v38 = vld [vmem:[%s15809_s10 + $0x70c] ss:$16 sps:$4 sm:$0xff]  }
 0x968   :  { %6584 = vmatprep.subr.bf16.mxu0 %v11913_v50  ;;  %v11998_v50 = vld [vmem:[%s15809_s10 + $0x708] ss:$16 sps:$4 sm:$0xff]  }
 0x96b   :  { %6585 = vmatpush1.bf16.msra.mxu0 %v11911_v54  ;;  %v12003_v54 = vld [vmem:[%s15809_s10 + $0x72c] ss:$16 sps:$4 sm:$0xff]  }
 0x96c   :  { %6586 = vmatprep.subr.bf16.mxu0 %v11916_v61  ;;  %v12001_v61 = vld [vmem:[%s15809_s10 + $0x728] ss:$16 sps:$4 sm:$0xff]  }
 0x96f   :  { %6587 = vmatpush1.bf16.msra.mxu0 %v11914_v22  ;;  %v12006_v22 = vld [vmem:[%s15809_s10 + $0x74c] ss:$16 sps:$4 sm:$0xff]  }
 0x970   :  { %6588 = vmatprep.subr.bf16.mxu0 %v11919_v26  ;;  %v12004_v26 = vld [vmem:[%s15809_s10 + $0x748] ss:$16 sps:$4 sm:$0xff]  }
 0x973   :  { %6589 = vmatpush1.bf16.msra.mxu0 %v11917_v28  ;;  %v12009_v28 = vld [vmem:[%s15809_s10 + $0x76c] ss:$16 sps:$4 sm:$0xff]  }
 0x974   :  { %6590 = vmatprep.subr.bf16.mxu0 %v11922_v51  ;;  %v12007_v51 = vld [vmem:[%s15809_s10 + $0x768] ss:$16 sps:$4 sm:$0xff]  }
 0x977   :  { %6591 = vmatpush1.bf16.msra.mxu0 %v11920_v58  ;;  %v12012_v58 = vld [vmem:[%s15809_s10 + $0x78c] ss:$16 sps:$4 sm:$0xff]  }
 0x978   :  { %6592 = vmatprep.subr.bf16.mxu0 %v11925_v59  ;;  %v12010_v59 = vld [vmem:[%s15809_s10 + $0x788] ss:$16 sps:$4 sm:$0xff]  }
 0x97b   :  { %6593 = vmatpush1.bf16.msra.mxu0 %v11923_v2  ;;  %v12015_v2 = vld [vmem:[%s15809_s10 + $0x7ac] ss:$16 sps:$4 sm:$0xff]  }
 0x97c   :  { %6997 = vmatprep.subr.bf16.mxu0 %v11928_v14  ;;  %v12013_v14 = vld [vmem:[%s15809_s10 + $0x7a8] ss:$16 sps:$4 sm:$0xff]  }
 0x97e   :  { %6595 = vmatmul.mubr.bf16.vlgmr.msra.gmra.mrb[24].mxu0 %v14324_v47  ;;  %v11937_v47 = vld [vmem:[%s15809_s10 + $0x664] ss:$16 sps:$4 sm:$0xff]  }
 0x97f   :  { %6998 = vmatpush1.bf16.msra.mxu0 %v11926_v63  ;;  %7029 = vmatprep.mubr.bf16.mxu0 %v14342_v7  ;;  %v12018_v63 = vld [vmem:[%s15809_s10 + $0x7cc] ss:$16 sps:$4 sm:$0xff]  }
 0x980   :  { %6999 = vmatprep.subr.bf16.mxu0 %v11931_v4  ;;  %v12016_v4 = vld [vmem:[%s15809_s10 + $0x7c8] ss:$16 sps:$4 sm:$0xff]  }
 0x983   :  { %7000 = vmatpush1.bf16.msra.mxu0 %v11929_v31  ;;  %v12021_v31 = vld [vmem:[%s15809_s10 + $0x7ec] ss:$16 sps:$4 sm:$0xff]  }
 0x984   :  { %7001 = vmatprep.subr.bf16.mxu0 %v11934_v35  ;;  %v12019_v35 = vld [vmem:[%s15809_s10 + $0x7e8] ss:$16 sps:$4 sm:$0xff]  }
 0x987   :  { %7002 = vmatpush1.bf16.msra.mxu0 %v11932_v36  ;;  %v12026_v36 = vld [vmem:[%s15812_s13 + $0x8] ss:$16 sps:$4 sm:$0xff]  }
 0x988   :  { %7003 = vmatprep.subr.bf16.mxu0 %v11937_v47  ;;  %v12028_v47 = vld [vmem:[%s15812_s13 + $0xc] ss:$16 sps:$4 sm:$0xff]  }
 0x98b   :  { %7004 = vmatpush1.bf16.msra.mxu0 %v11935_v5  ;;  %v12032_v5 = vld [vmem:[%s15812_s13 + $0x28] ss:$16 sps:$4 sm:$0xff]  }
 0x98c   :  { %7005 = vmatprep.subr.bf16.mxu0 %v11940_v15  ;;  %v12034_v15 = vld [vmem:[%s15812_s13 + $0x2c] ss:$16 sps:$4 sm:$0xff]  }
 0x98f   :  { %7006 = vmatpush1.bf16.msra.mxu0 %v11938_v16  ;;  %v12038_v16 = vld [vmem:[%s15812_s13 + $0x48] ss:$16 sps:$4 sm:$0xff]  }
 0x990   :  { %7007 = vmatprep.subr.bf16.mxu0 %v11943_v18  ;;  %v12046_v18 = vld [vmem:[%s15812_s13 + $0x6c] ss:$16 sps:$4 sm:$0xff]  }
 0x993   :  { %7008 = vmatpush1.bf16.msra.mxu0 %v11941_v19  ;;  %v12044_v19 = vld [vmem:[%s15812_s13 + $0x68] ss:$16 sps:$4 sm:$0xff]  }
 0x994   :  { %7009 = vmatprep.subr.bf16.mxu0 %v11946_v21  ;;  %v12052_v21 = vld [vmem:[%s15812_s13 + $0x8c] ss:$16 sps:$4 sm:$0xff]  }
 0x997   :  { %7010 = vmatpush1.bf16.msra.mxu0 %v11944_v23  ;;  %v12050_v23 = vld [vmem:[%s15812_s13 + $0x88] ss:$16 sps:$4 sm:$0xff]  }
 0x998   :  { %7011 = vmatprep.subr.bf16.mxu0 %v11949_v49  ;;  %v12058_v49 = vld [vmem:[%s15812_s13 + $0xac] ss:$16 sps:$4 sm:$0xff]  }
 0x99b   :  { %7012 = vmatpush1.bf16.msra.mxu0 %v11947_v56  ;;  %v12056_v56 = vld [vmem:[%s15812_s13 + $0xa8] ss:$16 sps:$4 sm:$0xff]  }
 0x99c   :  { %7013 = vmatprep.subr.bf16.mxu0 %v11952_v53  ;;  %v12064_v53 = vld [vmem:[%s15812_s13 + $0xcc] ss:$16 sps:$4 sm:$0xff]  }
 0x99f   :  { %7014 = vmatpush1.bf16.msra.mxu0 %v11950_v29  ;;  %v12062_v29 = vld [vmem:[%s15812_s13 + $0xc8] ss:$16 sps:$4 sm:$0xff]  }
 0x9a0   :  { %7015 = vmatprep.subr.bf16.mxu0 %v11955_v30  ;;  %v12070_v30 = vld [vmem:[%s15812_s13 + $0xec] ss:$16 sps:$4 sm:$0xff]  }
 0x9a3   :  { %7016 = vmatpush1.bf16.msra.mxu0 %v11953_v32  ;;  %v12068_v32 = vld [vmem:[%s15812_s13 + $0xe8] ss:$16 sps:$4 sm:$0xff]  }
 0x9a4   :  { %7017 = vmatprep.subr.bf16.mxu0 %v11958_v20  ;;  %v12076_v20 = vld [vmem:[%s15812_s13 + $0x10c] ss:$16 sps:$4 sm:$0xff]  }
 0x9a7   :  { %7018 = vmatpush1.bf16.msra.mxu0 %v11956_v24  ;;  %v12074_v24 = vld [vmem:[%s15812_s13 + $0x108] ss:$16 sps:$4 sm:$0xff]  }
 0x9a8   :  { %7019 = vmatprep.subr.bf16.mxu0 %v11961_v25  ;;  %v12082_v25 = vld [vmem:[%s15812_s13 + $0x12c] ss:$16 sps:$4 sm:$0xff]  }
 0x9ab   :  { %7020 = vmatpush1.bf16.msra.mxu0 %v11959_v42  ;;  %v14964_v42 = vld [vmem:[%s15813_s11] ss:$8 sm:$0xf] }
 0x9ac   :  { %7021 = vmatprep.subr.bf16.mxu0 %v11964_v27  ;;  %v12080_v27 = vld [vmem:[%s15812_s13 + $0x128] ss:$16 sps:$4 sm:$0xff]  }
 0x9af   :  { %7022 = vmatpush1.bf16.msra.mxu0 %v11962_v12  ;;  %v12088_v12 = vld [vmem:[%s15812_s13 + $0x14c] ss:$16 sps:$4 sm:$0xff]  }
 0x9b0   :  { %7023 = vmatprep.subr.bf16.mxu0 %v11967_v46  ;;  %v14975_v46 = vld [vmem:[%s15813_s11 + $0x1] ss:$8 sm:$0xf] }
 0x9b3   :  { %7024 = vmatpush1.bf16.msra.mxu0 %v11965_v34  ;;  %v12086_v34 = vld [vmem:[%s15812_s13 + $0x148] ss:$16 sps:$4 sm:$0xff]  }
 0x9b4   :  { %7025 = vmatprep.subr.bf16.mxu0 %v11970_v13  ;;  %v12094_v13 = vld [vmem:[%s15812_s13 + $0x16c] ss:$16 sps:$4 sm:$0xff]  }
 0x9b7   :  { %7026 = vmatpush1.bf16.msra.mxu0 %v11968_v52  ;;  %v7100_v52 = vrot.slane %v14964_v42, %v14069_v40 }
 0x9b8   :  { %7027 = vmatprep.subr.bf16.mxu0 %v11973_v55  ;;  %v7104_v55 = vrot.slane %v14964_v42, %v14075_v45 }
 0x9bb   :  { %7028 = vmatpush1.bf16.msra.mxu0 %v11971_v6 }
 0x9bc   :  { %7040 = vmatprep.subr.bf16.mxu0 %v11976_v10  ;;  %v14990_v10 = vld [vmem:[%s15813_s11 + $0x2] ss:$8 sm:$0xf] }
 0x9be   :  { %7030 = vmatmul.mubr.bf16.vlgmr.msra.gmra.mrb[20].mxu0 %v14340_v60 }
 0x9bf   :  { %7041 = vmatpush1.bf16.msra.mxu0 %v11974_v33  ;;  %7072 = vmatprep.mubr.bf16.mxu0 %v14342_v7  ;;  %v11983_v7 = vld [vmem:[%s15809_s10 + $0x668] ss:$16 sps:$4 sm:$0xff]  }
 0x9c0   :  { %7042 = vmatprep.subr.bf16.mxu0 %v11979_v11  ;;  %v12092_v33 = vld [vmem:[%s15812_s13 + $0x168] ss:$16 sps:$4 sm:$0xff]   ;;  %v12100_v11 = vld [vmem:[%s15812_s13 + $0x18c] ss:$16 sps:$4 sm:$0xff]  }
 0x9c3   :  { %7043 = vmatpush1.bf16.msra.mxu0 %v11977_v62 }
 0x9c4   :  { %7044 = vmatprep.subr.bf16.mxu0 %v11982_v1  ;;  %v7137_v1 = vrot.slane %v14975_v46, %v14069_v40 }
 0x9c7   :  { %7045 = vmatpush1.bf16.msra.mxu0 %v11980_v3 }
 0x9c8   :  { %7046 = vmatprep.subr.bf16.mxu0 %v11985_v57 }
 0x9cb   :  { %7047 = vmatpush1.bf16.msra.mxu0 %v11983_v7  ;;  %v7141_v7 = vrot.slane %v14975_v46, %v14075_v45 }
 0x9cc   :  { %7048 = vmatprep.subr.bf16.mxu0 %v11988_v39 }
 0x9cf   :  { %7049 = vmatpush1.bf16.msra.mxu0 %v11986_v41 }
 0x9d0   :  { %7050 = vmatprep.subr.bf16.mxu0 %v11991_v44 }
 0x9d3   :  { %7051 = vmatpush1.bf16.msra.mxu0 %v11989_v17 }
 0x9d4   :  { %7052 = vmatprep.subr.bf16.mxu0 %v11994_v0 }
 0x9d7   :  { %7053 = vmatpush1.bf16.msra.mxu0 %v11992_v8 }
 0x9d8   :  { %7054 = vmatprep.subr.bf16.mxu0 %v11997_v9  ;;  %v12098_v9 = vld [vmem:[%s15812_s13 + $0x188] ss:$16 sps:$4 sm:$0xff]  }
 0x9db   :  { %7055 = vmatpush1.bf16.msra.mxu0 %v11995_v37  ;;  %v12106_v37 = vld [vmem:[%s15812_s13 + $0x1ac] ss:$16 sps:$4 sm:$0xff]  }
 0x9dc   :  { %7056 = vmatprep.subr.bf16.mxu0 %v12000_v38 }
 0x9df   :  { %7057 = vmatpush1.bf16.msra.mxu0 %v11998_v50  ;;  %v7166_v50 = vrot.slane %v14990_v10, %v14069_v40 }
 0x9e0   :  { %7058 = vmatprep.subr.bf16.mxu0 %v12003_v54 }
 0x9e3   :  { %7059 = vmatpush1.bf16.msra.mxu0 %v12001_v61 }
 0x9e4   :  { %7060 = vmatprep.subr.bf16.mxu0 %v12006_v22  ;;  %v7170_v22 = vrot.slane %v14990_v10, %v14075_v45 }
 0x9e7   :  { %7061 = vmatpush1.bf16.msra.mxu0 %v12004_v26 }
 0x9e8   :  { %7062 = vmatprep.subr.bf16.mxu0 %v12009_v28 }
 0x9eb   :  { %7063 = vmatpush1.bf16.msra.mxu0 %v12007_v51 }
 0x9ec   :  { %7064 = vmatprep.subr.bf16.mxu0 %v12012_v58  ;;  %v12104_v58 = vld [vmem:[%s15812_s13 + $0x1a8] ss:$16 sps:$4 sm:$0xff]  }
 0x9ef   :  { %7065 = vmatpush1.bf16.msra.mxu0 %v12010_v59  ;;  %v12112_v59 = vld [vmem:[%s15812_s13 + $0x1cc] ss:$16 sps:$4 sm:$0xff]  }
 0x9f0   :  { %7066 = vmatprep.subr.bf16.mxu0 %v12015_v2 }
 0x9f3   :  { %7067 = vmatpush1.bf16.msra.mxu0 %v12013_v14 }
 0x9f4   :  { %7068 = vmatprep.subr.bf16.mxu0 %v12018_v63 }
 0x9f7   :  { %7069 = vmatpush1.bf16.msra.mxu0 %v12016_v4 }
 0x9f8   :  { %7070 = vmatprep.subr.bf16.mxu0 %v12021_v31  ;;  %v12110_v31 = vld [vmem:[%s15812_s13 + $0x1c8] ss:$16 sps:$4 sm:$0xff]  }
 0x9fb   :  { %7071 = vmatpush1.bf16.msra.mxu0 %v12019_v35 }
 0x9fc   :  { %8175 = vmatprep.subr.bf16.mxu0 %v12028_v47  ;;  %v12022_v47 = vld [vmem:[%s15811_s12] sm:$0xff]  }
 0x9fe   :  { %7073 = vmatmul.mubr.bf16.vlgmr.msra.gmra.mrb[24].mxu0 %v14340_v60  ;;  %v12040_v60 = vld [vmem:[%s15812_s13 + $0x4c] ss:$16 sps:$4 sm:$0xff]  }
 0x9ff   :  { %8176 = vmatpush1.bf16.msra.mxu0 %v12026_v36 }
 0xa00   :  { %8177 = vmatprep.subr.bf16.mxu0 %v12034_v15  ;;  %v15030_v15 = vsub.s32 3, %v14066_v48 }
 0xa03   :  { %8178 = vmatpush1.bf16.msra.mxu0 %v12032_v5  ;;  %v15027_v5 = vsub.s32 2, %v14066_v48 }
 0xa04   :  { %8179 = vmatprep.subr.bf16.mxu0 %v12040_v60 }
 0xa05   :  { %v7108_v60 = vrot.slane %v14964_v42, %v15027_v5 }
 0xa07   :  { %8180 = vmatpush1.bf16.msra.mxu0 %v12038_v16  ;;  %v7112_v16 = vrot.slane %v14964_v42, %v15030_v15 }
 0xa08   :  { %8181 = vmatprep.subr.bf16.mxu0 %v12046_v18 }
 0xa0b   :  { %8182 = vmatpush1.bf16.msra.mxu0 %v12044_v19 }
 0xa0c   :  { %8183 = vmatprep.subr.bf16.mxu0 %v12052_v21  ;;  %v7145_v21 = vrot.slane %v14975_v46, %v15027_v5 }
 0xa0f   :  { %8184 = vmatpush1.bf16.msra.mxu0 %v12050_v23 }
 0xa10   :  { %8185 = vmatprep.subr.bf16.mxu0 %v12058_v49 }
 0xa13   :  { %8186 = vmatpush1.bf16.msra.mxu0 %v12056_v56  ;;  %v7149_v56 = vrot.slane %v14975_v46, %v15030_v15 }
 0xa14   :  { %8187 = vmatprep.subr.bf16.mxu0 %v12064_v53 }
 0xa17   :  { %8188 = vmatpush1.bf16.msra.mxu0 %v12062_v29 }
 0xa18   :  { %8189 = vmatprep.subr.bf16.mxu0 %v12070_v30 }
 0xa1b   :  { %8190 = vmatpush1.bf16.msra.mxu0 %v12068_v32 }
 0xa1c   :  { %8191 = vmatprep.subr.bf16.mxu0 %v12076_v20 }
 0xa1f   :  { %8192 = vmatpush1.bf16.msra.mxu0 %v12074_v24 }
 0xa20   :  { %8193 = vmatprep.subr.bf16.mxu0 %v12082_v25  ;;  %v7174_v25 = vrot.slane %v14990_v10, %v15027_v5 }
 0xa23   :  { %8194 = vmatpush1.bf16.msra.mxu0 %v12080_v27 }
 0xa24   :  { %8195 = vmatprep.subr.bf16.mxu0 %v12088_v12  ;;  %v7178_v12 = vrot.slane %v14990_v10, %v15030_v15  ;;  %v12031_v10 = vld [vmem:[%s15812_s13 + $0x24] ss:$16 sps:$4 sm:$0xff]  }
 0xa27   :  { %8196 = vmatpush1.bf16.msra.mxu0 %v12086_v34 }
 0xa28   :  { %8197 = vmatprep.subr.bf16.mxu0 %v12094_v13 }
 0xa2b   :  { %8198 = vmatpush1.bf16.msra.mxu0 %v12092_v33 }
 0xa2c   :  { %8199 = vmatprep.subr.bf16.mxu0 %v12100_v11 }
 0xa2f   :  { %8200 = vmatpush1.bf16.msra.mxu0 %v12098_v9  ;;  %v12053_v9 = vld [vmem:[%s15812_s13 + $0xa0] ss:$16 sps:$4 sm:$0xff]  }
 0xa30   :  { %8201 = vmatprep.subr.bf16.mxu0 %v12106_v37  ;;  %v12061_v37 = vld [vmem:[%s15812_s13 + $0xc4] ss:$16 sps:$4 sm:$0xff]  }
 0xa33   :  { %8202 = vmatpush1.bf16.msra.mxu0 %v12104_v58  ;;  %v12079_v58 = vld [vmem:[%s15812_s13 + $0x124] ss:$16 sps:$4 sm:$0xff]  }
 0xa34   :  { %8203 = vmatprep.subr.bf16.mxu0 %v12112_v59  ;;  %v12077_v59 = vld [vmem:[%s15812_s13 + $0x120] ss:$16 sps:$4 sm:$0xff]  }
 0xa37   :  { %8204 = vmatpush1.bf16.msra.mxu0 %v12110_v31  ;;  %v12097_v31 = vld [vmem:[%s15812_s13 + $0x184] ss:$16 sps:$4 sm:$0xff]  }
 0xa91   :  { %v7031_v6 = vpop.f32.mrb[20].mxu0 }
 0xa92   :  { %v7117_v62 = vadd.f32 %v7100_v52, %v7031_v6  ;;  %v7033_v3 = vpop.f32.mrb[21].mxu0 }
 0xa93   :  { %v7118_v57 = vadd.f32 %v7104_v55, %v7033_v3  ;;  %v7035_v39 = vpop.f32.mrb[22].mxu0  ;;  %v12023_v3 = vld [vmem:[%s15812_s13] ss:$16 sps:$4 sm:$0xff]  }
 0xa94   :  { %v7125_v41 = vmax.f32 %v7117_v62, 0.0  ;;  %v7121_v44 = vadd.f32 %v7100_v52, %v7035_v39  ;;  %v7037_v17 = vpop.f32.mrb[23].mxu0  ;;  %v12035_v39 = vld [vmem:[%s15812_s13 + $0x40] ss:$16 sps:$4 sm:$0xff]  }
 0xa95   :  { %v7126_v0 = vmax.f32 %v7118_v57, 0.0  ;;  %v7122_v8 = vadd.f32 %v7104_v55, %v7037_v17  ;;  %v12029_v57 = vld [vmem:[%s15812_s13 + $0x20] ss:$16 sps:$4 sm:$0xff]   ;;  %v12049_v17 = vld [vmem:[%s15812_s13 + $0x84] ss:$16 sps:$4 sm:$0xff]  }
 0xa96   :  { %v7154_v38 = vmul.f32 %v7137_v1, %v7125_v41  ;;  %v7129_v54 = vmax.f32 %v7121_v44, 0.0  ;;  %v12043_v41 = vld [vmem:[%s15812_s13 + $0x64] ss:$16 sps:$4 sm:$0xff]   ;;  %v12041_v44 = vld [vmem:[%s15812_s13 + $0x60] ss:$16 sps:$4 sm:$0xff]  }
 0xa97   :  { %v7155_v61 = vmul.f32 %v7141_v7, %v7126_v0  ;;  %v7130_v26 = vmax.f32 %v7122_v8, 0.0  ;;  %v12047_v0 = vld [vmem:[%s15812_s13 + $0x80] ss:$16 sps:$4 sm:$0xff]   ;;  %v12055_v8 = vld [vmem:[%s15812_s13 + $0xa4] ss:$16 sps:$4 sm:$0xff]  }
 0xa98   :  { %v7158_v28 = vmul.f32 %v7137_v1, %v7129_v54  ;;  %v7183_v2 = vadd.f32 %v7166_v50, %v7154_v38  ;;  %v12025_v1 = vld [vmem:[%s15812_s13 + $0x4] ss:$16 sps:$4 sm:$0xff]   ;;  %v12118_v38 = vld [vmem:[%s15812_s13 + $0x1ec] ss:$16 sps:$4 sm:$0xff]   ;;  %v12116_v54 = vld [vmem:[%s15812_s13 + $0x1e8] ss:$16 sps:$4 sm:$0xff]  }
 0xa99   :  { %v7159_v51 = vmul.f32 %v7141_v7, %v7130_v26  ;;  %v7184_v63 = vadd.f32 %v7170_v22, %v7155_v61  ;;  %v12037_v7 = vld [vmem:[%s15812_s13 + $0x44] ss:$16 sps:$4 sm:$0xff]   ;;  %8205 = vmatprep.subr.bf16.mxu0 %v12118_v38  ;;  %v12065_v26 = vld [vmem:[%s15812_s13 + $0xe0] ss:$16 sps:$4 sm:$0xff]  }
 0xa9a   :  { %v7187_v14 = vadd.f32 %v7166_v50, %v7158_v28  ;;  %v12059_v50 = vld [vmem:[%s15812_s13 + $0xc0] ss:$16 sps:$4 sm:$0xff]   ;;  %v12067_v61 = vld [vmem:[%s15812_s13 + $0xe4] ss:$16 sps:$4 sm:$0xff]   ;;  %8206 = vmatpush1.bf16.msra.mxu0 %v12116_v54 }
 0xa9b   :  { %v7188_v4 = vadd.f32 %v7170_v22, %v7159_v51  ;;  %v12124_v22 = vld [vmem:[%s15812_s13 + $0x20c] ss:$16 sps:$4 sm:$0xff]   ;;  %v12073_v28 = vld [vmem:[%s15812_s13 + $0x104] ss:$16 sps:$4 sm:$0xff]   ;;  %v12071_v51 = vld [vmem:[%s15812_s13 + $0x100] ss:$16 sps:$4 sm:$0xff]  }
 0xa9c   :  { %v7193_v35 = vpack.c.bf16 %v7187_v14, %v7183_v2  ;;  %8218 = vmatprep.subr.bf16.mxu0 %v12124_v22  ;;  %v12085_v2 = vld [vmem:[%s15812_s13 + $0x144] ss:$16 sps:$4 sm:$0xff]   ;;  %v12083_v14 = vld [vmem:[%s15812_s13 + $0x140] ss:$16 sps:$4 sm:$0xff]  }
 0xa9d   :  { %v7194_v36 = vpack.c.bf16 %v7188_v4, %v7184_v63  ;;  %v12091_v63 = vld [vmem:[%s15812_s13 + $0x164] ss:$16 sps:$4 sm:$0xff]   ;;  %v12089_v4 = vld [vmem:[%s15812_s13 + $0x160] ss:$16 sps:$4 sm:$0xff]  }
 0xa9e   :  { %v12169_v38 = vld [vmem:[%s15812_s13 + $0x304] ss:$16 sps:$4 sm:$0xff]   ;;  %v12167_v54 = vld [vmem:[%s15812_s13 + $0x300] ss:$16 sps:$4 sm:$0xff]  }
 0xa9f   :  { %7205 = vmatprep.subr.bf16.mxu1 %v7194_v36  ;;  %v12103_v36 = vld [vmem:[%s15812_s13 + $0x1a4] ss:$16 sps:$4 sm:$0xff]  }
 0xaa0   :  { %7206 = vmatpush1.bf16.msra.mxu1 %v7193_v35  ;;  %v12095_v35 = vld [vmem:[%s15812_s13 + $0x180] ss:$16 sps:$4 sm:$0xff]   ;;  %v12175_v22 = vld [vmem:[%s15812_s13 + $0x324] ss:$16 sps:$4 sm:$0xff]  }
 0xaa3   :  { %10186 = vmatmul.mubr.msk.bf16.vlgmr.msra.gmra.mrb[120].mxu1 %vm5101_vm2, %v12022_v47 }
 0xaa4   :  { %7280 = vmatprep.mubr.bf16.mxu1 %v12408_v43 }
 0xad1   :  { %v7074_v18 = vpop.f32.mrb[24].mxu0 }
 0xad2   :  { %v7119_v19 = vadd.f32 %v7108_v60, %v7074_v18  ;;  %v7076_v23 = vpop.f32.mrb[25].mxu0  ;;  %v12115_v18 = vld [vmem:[%s15812_s13 + $0x1e4] ss:$16 sps:$4 sm:$0xff]  }
 0xad3   :  { %v7120_v49 = vadd.f32 %v7112_v16, %v7076_v23  ;;  %v7078_v53 = vpop.f32.mrb[26].mxu0 }
 0xad4   :  { %v7127_v29 = vmax.f32 %v7119_v19, 0.0  ;;  %v7123_v48 = vadd.f32 %v7108_v60, %v7078_v53  ;;  %v7080_v30 = vpop.f32.mrb[27].mxu0  ;;  %v12109_v60 = vld [vmem:[%s15812_s13 + $0x1c4] ss:$16 sps:$4 sm:$0xff]   ;;  %v12113_v19 = vld [vmem:[%s15812_s13 + $0x1e0] ss:$16 sps:$4 sm:$0xff]  }
 0xad5   :  { %v7128_v32 = vmax.f32 %v7120_v49, 0.0  ;;  %v7124_v20 = vadd.f32 %v7112_v16, %v7080_v30  ;;  %v12107_v16 = vld [vmem:[%s15812_s13 + $0x1c0] ss:$16 sps:$4 sm:$0xff]  }
 0xad6   :  { %v7156_v24 = vmul.f32 %v7145_v21, %v7127_v29  ;;  %v7131_v42 = vmax.f32 %v7123_v48, 0.0  ;;  %v12119_v30 = vld [vmem:[%s15812_s13 + $0x200] ss:$16 sps:$4 sm:$0xff]  }
 0xad7   :  { %v7157_v27 = vmul.f32 %v7149_v56, %v7128_v32  ;;  %v7132_v34 = vmax.f32 %v7124_v20, 0.0  ;;  %v12122_v32 = vld [vmem:[%s15812_s13 + $0x208] ss:$16 sps:$4 sm:$0xff]   ;;  %v12127_v20 = vld [vmem:[%s15812_s13 + $0x224] ss:$16 sps:$4 sm:$0xff]  }
 0xad8   :  { %v7160_v13 = vmul.f32 %v7145_v21, %v7131_v42  ;;  %v7185_v55 = vadd.f32 %v7174_v25, %v7156_v24  ;;  %v12121_v21 = vld [vmem:[%s15812_s13 + $0x204] ss:$16 sps:$4 sm:$0xff]   ;;  %v12130_v24 = vld [vmem:[%s15812_s13 + $0x22c] ss:$16 sps:$4 sm:$0xff]   ;;  %v12128_v42 = vld [vmem:[%s15812_s13 + $0x228] ss:$16 sps:$4 sm:$0xff]  }
 0xad9   :  { %v7161_v52 = vmul.f32 %v7149_v56, %v7132_v34  ;;  %v7186_v6 = vadd.f32 %v7178_v12, %v7157_v27  ;;  %v12133_v27 = vld [vmem:[%s15812_s13 + $0x244] ss:$16 sps:$4 sm:$0xff]   ;;  %v12131_v34 = vld [vmem:[%s15812_s13 + $0x240] ss:$16 sps:$4 sm:$0xff]  }
 0xada   :  { %v7189_v46 = vadd.f32 %v7174_v25, %v7160_v13  ;;  %v12125_v25 = vld [vmem:[%s15812_s13 + $0x220] ss:$16 sps:$4 sm:$0xff]   ;;  %v12134_v13 = vld [vmem:[%s15812_s13 + $0x248] ss:$16 sps:$4 sm:$0xff]  }
 0xadb   :  { %v7190_v33 = vadd.f32 %v7178_v12, %v7161_v52  ;;  %v12136_v12 = vld [vmem:[%s15812_s13 + $0x24c] ss:$16 sps:$4 sm:$0xff]   ;;  %v12139_v52 = vld [vmem:[%s15812_s13 + $0x264] ss:$16 sps:$4 sm:$0xff]  }
 0xadc   :  { %v7195_v11 = vpack.c.bf16 %v7189_v46, %v7185_v55  ;;  %v12142_v55 = vld [vmem:[%s15812_s13 + $0x26c] ss:$16 sps:$4 sm:$0xff]   ;;  %v12137_v46 = vld [vmem:[%s15812_s13 + $0x260] ss:$16 sps:$4 sm:$0xff]  }
 0xadd   :  { %v7196_v62 = vpack.c.bf16 %v7190_v33, %v7186_v6  ;;  %v12140_v6 = vld [vmem:[%s15812_s13 + $0x268] ss:$16 sps:$4 sm:$0xff]   ;;  %v12145_v33 = vld [vmem:[%s15812_s13 + $0x284] ss:$16 sps:$4 sm:$0xff]  }
 0xadf   :  { %7248 = vmatprep.subr.bf16.mxu1 %v7196_v62  ;;  %v12143_v62 = vld [vmem:[%s15812_s13 + $0x280] ss:$16 sps:$4 sm:$0xff]  }
 0xae0   :  { %7249 = vmatpush1.bf16.msra.mxu1 %v7195_v11  ;;  %v12148_v11 = vld [vmem:[%s15812_s13 + $0x28c] ss:$16 sps:$4 sm:$0xff]  }
 0xae1   :  { %8089 = vmatprep.subr.bf16.mxu1 %v12025_v1  ;;  %v12146_v1 = vld [vmem:[%s15812_s13 + $0x288] ss:$16 sps:$4 sm:$0xff]  }
 0xae3   :  { %10187 = vmatmul.mubr.msk.bf16.vlgmr.msra.gmra.mrb[124].mxu1 %vm5101_vm2, %v12022_v47  ;;  %v12101_v47 = vld [vmem:[%s15812_s13 + $0x1a0] ss:$16 sps:$4 sm:$0xff]  }
 0xae4   :  { %8090 = vmatpush1.bf16.msra.mxu1 %v12023_v3  ;;  %v12151_v3 = vld [vmem:[%s15812_s13 + $0x2a4] ss:$16 sps:$4 sm:$0xff]  }
 0xae5   :  { %8091 = vmatprep.subr.bf16.mxu1 %v12031_v10  ;;  %v12154_v10 = vld [vmem:[%s15812_s13 + $0x2ac] ss:$16 sps:$4 sm:$0xff]  }
 0xae8   :  { %8092 = vmatpush1.bf16.msra.mxu1 %v12029_v57  ;;  %v12149_v57 = vld [vmem:[%s15812_s13 + $0x2a0] ss:$16 sps:$4 sm:$0xff]  }
 0xae9   :  { %8093 = vmatprep.subr.bf16.mxu1 %v12037_v7  ;;  %v12152_v7 = vld [vmem:[%s15812_s13 + $0x2a8] ss:$16 sps:$4 sm:$0xff]  }
 0xaec   :  { %8094 = vmatpush1.bf16.msra.mxu1 %v12035_v39  ;;  %v12157_v39 = vld [vmem:[%s15812_s13 + $0x2c4] ss:$16 sps:$4 sm:$0xff]  }
 0xaed   :  { %8095 = vmatprep.subr.bf16.mxu1 %v12043_v41  ;;  %v12160_v41 = vld [vmem:[%s15812_s13 + $0x2cc] ss:$16 sps:$4 sm:$0xff]  }
 0xaf0   :  { %8096 = vmatpush1.bf16.msra.mxu1 %v12041_v44  ;;  %v12155_v44 = vld [vmem:[%s15812_s13 + $0x2c0] ss:$16 sps:$4 sm:$0xff]  }
 0xaf1   :  { %8097 = vmatprep.subr.bf16.mxu1 %v12049_v17  ;;  %v12158_v17 = vld [vmem:[%s15812_s13 + $0x2c8] ss:$16 sps:$4 sm:$0xff]  }
 0xaf4   :  { %8098 = vmatpush1.bf16.msra.mxu1 %v12047_v0  ;;  %v12163_v0 = vld [vmem:[%s15812_s13 + $0x2e4] ss:$16 sps:$4 sm:$0xff]  }
 0xaf5   :  { %8099 = vmatprep.subr.bf16.mxu1 %v12055_v8  ;;  %v12166_v8 = vld [vmem:[%s15812_s13 + $0x2ec] ss:$16 sps:$4 sm:$0xff]  }
 0xaf8   :  { %8100 = vmatpush1.bf16.msra.mxu1 %v12053_v9  ;;  %v12161_v9 = vld [vmem:[%s15812_s13 + $0x2e0] ss:$16 sps:$4 sm:$0xff]  }
 0xaf9   :  { %8101 = vmatprep.subr.bf16.mxu1 %v12061_v37  ;;  %v12164_v37 = vld [vmem:[%s15812_s13 + $0x2e8] ss:$16 sps:$4 sm:$0xff]  }
 0xafc   :  { %8102 = vmatpush1.bf16.msra.mxu1 %v12059_v50  ;;  %v12172_v50 = vld [vmem:[%s15812_s13 + $0x30c] ss:$16 sps:$4 sm:$0xff]  }
 0xafd   :  { %8103 = vmatprep.subr.bf16.mxu1 %v12067_v61  ;;  %v12170_v61 = vld [vmem:[%s15812_s13 + $0x308] ss:$16 sps:$4 sm:$0xff]  }
 0xb00   :  { %8104 = vmatpush1.bf16.msra.mxu1 %v12065_v26  ;;  %v12178_v26 = vld [vmem:[%s15812_s13 + $0x32c] ss:$16 sps:$4 sm:$0xff]  }
 0xb01   :  { %8105 = vmatprep.subr.bf16.mxu1 %v12073_v28  ;;  %v12173_v28 = vld [vmem:[%s15812_s13 + $0x320] ss:$16 sps:$4 sm:$0xff]  }
 0xb04   :  { %8106 = vmatpush1.bf16.msra.mxu1 %v12071_v51  ;;  %v12176_v51 = vld [vmem:[%s15812_s13 + $0x328] ss:$16 sps:$4 sm:$0xff]  }
 0xb05   :  { %8107 = vmatprep.subr.bf16.mxu1 %v12079_v58  ;;  %v12181_v58 = vld [vmem:[%s15812_s13 + $0x344] ss:$16 sps:$4 sm:$0xff]  }
 0xb08   :  { %8108 = vmatpush1.bf16.msra.mxu1 %v12077_v59  ;;  %v12184_v59 = vld [vmem:[%s15812_s13 + $0x34c] ss:$16 sps:$4 sm:$0xff]  }
 0xb09   :  { %8109 = vmatprep.subr.bf16.mxu1 %v12085_v2  ;;  %v12179_v2 = vld [vmem:[%s15812_s13 + $0x340] ss:$16 sps:$4 sm:$0xff]  }
 0xb0c   :  { %8110 = vmatpush1.bf16.msra.mxu1 %v12083_v14  ;;  %v12182_v14 = vld [vmem:[%s15812_s13 + $0x348] ss:$16 sps:$4 sm:$0xff]  }
 0xb0d   :  { %8111 = vmatprep.subr.bf16.mxu1 %v12091_v63  ;;  %v12187_v63 = vld [vmem:[%s15812_s13 + $0x364] ss:$16 sps:$4 sm:$0xff]  }
 0xb10   :  { %8112 = vmatpush1.bf16.msra.mxu1 %v12089_v4  ;;  %v12190_v4 = vld [vmem:[%s15812_s13 + $0x36c] ss:$16 sps:$4 sm:$0xff]  }
 0xb11   :  { %8113 = vmatprep.subr.bf16.mxu1 %v12097_v31  ;;  %v12185_v31 = vld [vmem:[%s15812_s13 + $0x360] ss:$16 sps:$4 sm:$0xff]  }
 0xb14   :  { %8114 = vmatpush1.bf16.msra.mxu1 %v12095_v35  ;;  %v12188_v35 = vld [vmem:[%s15812_s13 + $0x368] ss:$16 sps:$4 sm:$0xff]  }
 0xb15   :  { %8115 = vmatprep.subr.bf16.mxu1 %v12103_v36  ;;  %v12193_v36 = vld [vmem:[%s15812_s13 + $0x384] ss:$16 sps:$4 sm:$0xff]  }
 0xb18   :  { %8116 = vmatpush1.bf16.msra.mxu1 %v12101_v47  ;;  %v12196_v47 = vld [vmem:[%s15812_s13 + $0x38c] ss:$16 sps:$4 sm:$0xff]  }
 0xb19   :  { %8117 = vmatprep.subr.bf16.mxu1 %v12109_v60  ;;  %v12191_v60 = vld [vmem:[%s15812_s13 + $0x380] ss:$16 sps:$4 sm:$0xff]  }
 0xb1c   :  { %8118 = vmatpush1.bf16.msra.mxu1 %v12107_v16  ;;  %v12194_v16 = vld [vmem:[%s15812_s13 + $0x388] ss:$16 sps:$4 sm:$0xff]  }
 0xb1d   :  { %8119 = vmatprep.subr.bf16.mxu1 %v12115_v18  ;;  %v12199_v18 = vld [vmem:[%s15812_s13 + $0x3a4] ss:$16 sps:$4 sm:$0xff]  }
 0xb20   :  { %8120 = vmatpush1.bf16.msra.mxu1 %v12113_v19  ;;  %v12202_v19 = vld [vmem:[%s15812_s13 + $0x3ac] ss:$16 sps:$4 sm:$0xff]  }
 0xb21   :  { %8132 = vmatprep.subr.bf16.mxu1 %v12121_v21  ;;  %v12197_v21 = vld [vmem:[%s15812_s13 + $0x3a0] ss:$16 sps:$4 sm:$0xff]  }
 0xb76   :  { %v7239_v23 = vpop.f32.mrb[120].mxu1 }
 0xb77   :  { %v7241_v49 = vpop.f32.mrb[121].mxu1 }
 0xb78   :  { %v7243_v56 = vpop.f32.mrb[122].mxu1 }
 0xb79   :  { %v7291_v53 = vpack.c.bf16 %v7243_v56, %v7239_v23  ;;  %v7245_v29 = vpop.f32.mrb[123].mxu1  ;;  %v12200_v23 = vld [vmem:[%s15812_s13 + $0x3a8] ss:$16 sps:$4 sm:$0xff]   ;;  %v12208_v56 = vld [vmem:[%s15812_s13 + $0x3cc] ss:$16 sps:$4 sm:$0xff]  }
 0xb7a   :  { %v7292_v48 = vpack.c.bf16 %v7245_v29, %v7241_v49  ;;  %v12205_v49 = vld [vmem:[%s15812_s13 + $0x3c4] ss:$16 sps:$4 sm:$0xff]   ;;  %v12206_v29 = vld [vmem:[%s15812_s13 + $0x3c8] ss:$16 sps:$4 sm:$0xff]  }
 0xb7c   :  { %8121 = vmatprep.mubr.bf16.mxu1 %v7292_v48  ;;  %8207 = vmatprep.mubr.bf16.mxu0 %v7292_v48  ;;  %v12211_v48 = vld [vmem:[%s15812_s13 + $0x3e4] ss:$16 sps:$4 sm:$0xff]  }
 0xb7d   :  { %8122 = vmatmul.mubr.bf16.vlgmr.msra.gmra.mrb[128].mxu1 %v7291_v53  ;;  %8208 = vmatmul.mubr.bf16.vlgmr.msra.gmra.mrb[28].mxu0 %v7291_v53  ;;  %v12203_v53 = vld [vmem:[%s15812_s13 + $0x3c0] ss:$16 sps:$4 sm:$0xff]  }
 0xb7e   :  { %8133 = vmatpush1.bf16.msra.mxu1 %v12119_v30  ;;  %8219 = vmatpush1.bf16.msra.mxu0 %v12122_v32  ;;  %v12214_v30 = vld [vmem:[%s15812_s13 + $0x3ec] ss:$16 sps:$4 sm:$0xff]  }
 0xb7f   :  { %8134 = vmatprep.subr.bf16.mxu1 %v12127_v20  ;;  %8220 = vmatprep.subr.bf16.mxu0 %v12130_v24  ;;  %v12209_v20 = vld [vmem:[%s15812_s13 + $0x3e0] ss:$16 sps:$4 sm:$0xff]   ;;  %v12212_v24 = vld [vmem:[%s15812_s13 + $0x3e8] ss:$16 sps:$4 sm:$0xff]  }
 0xb82   :  { %8135 = vmatpush1.bf16.msra.mxu1 %v12125_v25  ;;  %8221 = vmatpush1.bf16.msra.mxu0 %v12128_v42 }
 0xb83   :  { %8136 = vmatprep.subr.bf16.mxu1 %v12133_v27  ;;  %8222 = vmatprep.subr.bf16.mxu0 %v12136_v12 }
 0xb86   :  { %8137 = vmatpush1.bf16.msra.mxu1 %v12131_v34  ;;  %8223 = vmatpush1.bf16.msra.mxu0 %v12134_v13  ;;  %v12219_v13 = vld [vmem:[%s15815_s16 + $0x8] ss:$16 sps:$4 sm:$0xff]  }
 0xb87   :  { %8138 = vmatprep.subr.bf16.mxu1 %v12139_v52  ;;  %8224 = vmatprep.subr.bf16.mxu0 %v12142_v55  ;;  %v12221_v52 = vld [vmem:[%s15815_s16 + $0xc] ss:$16 sps:$4 sm:$0xff]   ;;  %v12225_v55 = vld [vmem:[%s15815_s16 + $0x28] ss:$16 sps:$4 sm:$0xff]  }
 0xb8a   :  { %8139 = vmatpush1.bf16.msra.mxu1 %v12137_v46  ;;  %8225 = vmatpush1.bf16.msra.mxu0 %v12140_v6  ;;  %v12227_v46 = vld [vmem:[%s15815_s16 + $0x2c] ss:$16 sps:$4 sm:$0xff]  }
 0xb8b   :  { %8140 = vmatprep.subr.bf16.mxu1 %v12145_v33  ;;  %8226 = vmatprep.subr.bf16.mxu0 %v12148_v11  ;;  %v12233_v6 = vld [vmem:[%s15815_s16 + $0x4c] ss:$16 sps:$4 sm:$0xff]   ;;  %v12231_v33 = vld [vmem:[%s15815_s16 + $0x48] ss:$16 sps:$4 sm:$0xff]  }
 0xb8c   :  { %v12239_v11 = vld [vmem:[%s15815_s16 + $0x6c] ss:$16 sps:$4 sm:$0xff]  }
 0xb8e   :  { %8141 = vmatpush1.bf16.msra.mxu1 %v12143_v62  ;;  %8227 = vmatpush1.bf16.msra.mxu0 %v12146_v1  ;;  %v12237_v62 = vld [vmem:[%s15815_s16 + $0x68] ss:$16 sps:$4 sm:$0xff]   ;;  %v12245_v1 = vld [vmem:[%s15815_s16 + $0x8c] ss:$16 sps:$4 sm:$0xff]  }
 0xb8f   :  { %8142 = vmatprep.subr.bf16.mxu1 %v12151_v3  ;;  %8228 = vmatprep.subr.bf16.mxu0 %v12154_v10  ;;  %v12243_v3 = vld [vmem:[%s15815_s16 + $0x88] ss:$16 sps:$4 sm:$0xff]   ;;  %v12251_v10 = vld [vmem:[%s15815_s16 + $0xac] ss:$16 sps:$4 sm:$0xff]  }
 0xb92   :  { %8143 = vmatpush1.bf16.msra.mxu1 %v12149_v57  ;;  %8229 = vmatpush1.bf16.msra.mxu0 %v12152_v7  ;;  %v12249_v57 = vld [vmem:[%s15815_s16 + $0xa8] ss:$16 sps:$4 sm:$0xff]   ;;  %v12257_v7 = vld [vmem:[%s15815_s16 + $0xcc] ss:$16 sps:$4 sm:$0xff]  }
 0xb93   :  { %8144 = vmatprep.subr.bf16.mxu1 %v12157_v39  ;;  %8230 = vmatprep.subr.bf16.mxu0 %v12160_v41  ;;  %v12255_v39 = vld [vmem:[%s15815_s16 + $0xc8] ss:$16 sps:$4 sm:$0xff]   ;;  %v12263_v41 = vld [vmem:[%s15815_s16 + $0xec] ss:$16 sps:$4 sm:$0xff]  }
 0xb96   :  { %8145 = vmatpush1.bf16.msra.mxu1 %v12155_v44  ;;  %8231 = vmatpush1.bf16.msra.mxu0 %v12158_v17  ;;  %v12261_v44 = vld [vmem:[%s15815_s16 + $0xe8] ss:$16 sps:$4 sm:$0xff]   ;;  %v12269_v17 = vld [vmem:[%s15815_s16 + $0x10c] ss:$16 sps:$4 sm:$0xff]  }
 0xb97   :  { %8146 = vmatprep.subr.bf16.mxu1 %v12163_v0  ;;  %8232 = vmatprep.subr.bf16.mxu0 %v12166_v8  ;;  %v12267_v0 = vld [vmem:[%s15815_s16 + $0x108] ss:$16 sps:$4 sm:$0xff]   ;;  %v12275_v8 = vld [vmem:[%s15815_s16 + $0x12c] ss:$16 sps:$4 sm:$0xff]  }
 0xb9a   :  { %8147 = vmatpush1.bf16.msra.mxu1 %v12161_v9  ;;  %8233 = vmatpush1.bf16.msra.mxu0 %v12164_v37  ;;  %v12273_v9 = vld [vmem:[%s15815_s16 + $0x128] ss:$16 sps:$4 sm:$0xff]   ;;  %v12281_v37 = vld [vmem:[%s15815_s16 + $0x14c] ss:$16 sps:$4 sm:$0xff]  }
 0xb9b   :  { %8148 = vmatprep.subr.bf16.mxu1 %v12169_v38  ;;  %8234 = vmatprep.subr.bf16.mxu0 %v12172_v50  ;;  %v12279_v38 = vld [vmem:[%s15815_s16 + $0x148] ss:$16 sps:$4 sm:$0xff]   ;;  %v12287_v50 = vld [vmem:[%s15815_s16 + $0x16c] ss:$16 sps:$4 sm:$0xff]  }
 0xb9e   :  { %8149 = vmatpush1.bf16.msra.mxu1 %v12167_v54  ;;  %8235 = vmatpush1.bf16.msra.mxu0 %v12170_v61  ;;  %v12285_v54 = vld [vmem:[%s15815_s16 + $0x168] ss:$16 sps:$4 sm:$0xff]   ;;  %v12293_v61 = vld [vmem:[%s15815_s16 + $0x18c] ss:$16 sps:$4 sm:$0xff]  }
 0xb9f   :  { %8150 = vmatprep.subr.bf16.mxu1 %v12175_v22  ;;  %8236 = vmatprep.subr.bf16.mxu0 %v12178_v26  ;;  %v12291_v22 = vld [vmem:[%s15815_s16 + $0x188] ss:$16 sps:$4 sm:$0xff]   ;;  %v12299_v26 = vld [vmem:[%s15815_s16 + $0x1ac] ss:$16 sps:$4 sm:$0xff]  }
 0xba2   :  { %8151 = vmatpush1.bf16.msra.mxu1 %v12173_v28  ;;  %8237 = vmatpush1.bf16.msra.mxu0 %v12176_v51  ;;  %v12297_v28 = vld [vmem:[%s15815_s16 + $0x1a8] ss:$16 sps:$4 sm:$0xff]   ;;  %v12305_v51 = vld [vmem:[%s15815_s16 + $0x1cc] ss:$16 sps:$4 sm:$0xff]  }
 0xba3   :  { %8152 = vmatprep.subr.bf16.mxu1 %v12181_v58  ;;  %8238 = vmatprep.subr.bf16.mxu0 %v12184_v59  ;;  %v12303_v58 = vld [vmem:[%s15815_s16 + $0x1c8] ss:$16 sps:$4 sm:$0xff]  }
 0xba4   :  { %v7423_v59 = vld [vmem:[%s15816_s14] ss:$8 sm:$0xf] }
 0xba6   :  { %8153 = vmatpush1.bf16.msra.mxu1 %v12179_v2  ;;  %8239 = vmatpush1.bf16.msra.mxu0 %v12182_v14  ;;  %v10188_v2 = vld [vmem:[%s15816_s14 + $0x1] ss:$8 sm:$0xf]  ;;  %v7432_v14 = vrot.slane %v7423_v59, %v14069_v40 }
 0xba7   :  { %8154 = vmatprep.subr.bf16.mxu1 %v12187_v63  ;;  %8240 = vmatprep.subr.bf16.mxu0 %v12190_v4  ;;  %v7440_v63 = vrot.slane %v7423_v59, %v15027_v5  ;;  %v10189_v4 = vld [vmem:[%s15816_s14 + $0x2] ss:$8 sm:$0xf] }
 0xbaa   :  { %8155 = vmatpush1.bf16.msra.mxu1 %v12185_v31  ;;  %8241 = vmatpush1.bf16.msra.mxu0 %v12188_v35  ;;  %v7436_v31 = vrot.slane %v7423_v59, %v14075_v45  ;;  %v7444_v35 = vrot.slane %v7423_v59, %v15030_v15  ;;  %v12215_v59 = vld [vmem:[%s15814_s15] sm:$0xff]  }
 0xbab   :  { %8156 = vmatprep.subr.bf16.mxu1 %v12193_v36  ;;  %8242 = vmatprep.subr.bf16.mxu0 %v12196_v47  ;;  %v8273_v47 = vrot.slane %v10188_v2, %v14069_v40 }
 0xbae   :  { %8157 = vmatpush1.bf16.msra.mxu1 %v12191_v60  ;;  %8243 = vmatpush1.bf16.msra.mxu0 %v12194_v16  ;;  %v8281_v16 = vrot.slane %v10188_v2, %v15027_v5 }
 0xbaf   :  { %8158 = vmatprep.subr.bf16.mxu1 %v12199_v18  ;;  %8244 = vmatprep.subr.bf16.mxu0 %v12202_v19  ;;  %v8277_v18 = vrot.slane %v10188_v2, %v14075_v45  ;;  %v8285_v19 = vrot.slane %v10188_v2, %v15030_v15  ;;  %v12218_v2 = vld [vmem:[%s15815_s16 + $0x4] ss:$16 sps:$4 sm:$0xff]  }
 0xbb2   :  { %8159 = vmatpush1.bf16.msra.mxu1 %v12197_v21  ;;  %8245 = vmatpush1.bf16.msra.mxu0 %v12200_v23  ;;  %v8302_v23 = vrot.slane %v10189_v4, %v14069_v40 }
 0xbb3   :  { %8160 = vmatprep.subr.bf16.mxu1 %v12205_v49  ;;  %8246 = vmatprep.subr.bf16.mxu0 %v12208_v56  ;;  %v8310_v56 = vrot.slane %v10189_v4, %v15027_v5 }
 0xbb6   :  { %v7282_v32 = vpop.f32.mrb[124].mxu1  ;;  %8161 = vmatpush1.bf16.msra.mxu1 %v12203_v53  ;;  %8247 = vmatpush1.bf16.msra.mxu0 %v12206_v29 }
 0xbb7   :  { %v7284_v25 = vpop.f32.mrb[125].mxu1  ;;  %8162 = vmatprep.subr.bf16.mxu1 %v12211_v48  ;;  %8248 = vmatprep.subr.bf16.mxu0 %v12214_v30  ;;  %v8306_v30 = vrot.slane %v10189_v4, %v14075_v45 }
 0xbb8   :  { %v7286_v42 = vpop.f32.mrb[126].mxu1 }
 0xbb9   :  { %v7293_v27 = vpack.c.bf16 %v7286_v42, %v7282_v32  ;;  %v7288_v12 = vpop.f32.mrb[127].mxu1 }
 0xbba   :  { %v7294_v34 = vpack.c.bf16 %v7288_v12, %v7284_v25  ;;  %8163 = vmatpush1.bf16.msra.mxu1 %v12209_v20  ;;  %8249 = vmatpush1.bf16.msra.mxu0 %v12212_v24  ;;  %v8314_v20 = vrot.slane %v10189_v4, %v15030_v15  ;;  %v12222_v4 = vld [vmem:[%s15815_s16 + $0x20] ss:$16 sps:$4 sm:$0xff]  }
 0xbbb   :  { %9311 = vmatprep.subr.bf16.mxu0 %v12221_v52 }
 0xbbc   :  { %8164 = vmatprep.mubr.bf16.mxu1 %v7294_v34  ;;  %8250 = vmatprep.mubr.bf16.mxu0 %v7294_v34 }
 0xbbd   :  { %8165 = vmatmul.mubr.bf16.vlgmr.msra.gmra.mrb[128].mxu1 %v7293_v27  ;;  %8251 = vmatmul.mubr.bf16.vlgmr.msra.gmra.mrb[28].mxu0 %v7293_v27 }
 0xbbe   :  { %8373 = vmatprep.mubr.bf16.mxu1 %v12408_v43  ;;  %9312 = vmatpush1.bf16.msra.mxu0 %v12219_v13 }
 0xbbf   :  { %9313 = vmatprep.subr.bf16.mxu0 %v12227_v46 }
 0xbc2   :  { %9314 = vmatpush1.bf16.msra.mxu0 %v12225_v55 }
 0xbc3   :  { %9315 = vmatprep.subr.bf16.mxu0 %v12233_v6 }
 0xbc6   :  { %9316 = vmatpush1.bf16.msra.mxu0 %v12231_v33 }
 0xbc7   :  { %9317 = vmatprep.subr.bf16.mxu0 %v12239_v11 }
 0xbca   :  { %9318 = vmatpush1.bf16.msra.mxu0 %v12237_v62 }
 0xbcb   :  { %9319 = vmatprep.subr.bf16.mxu0 %v12245_v1 }
 0xbce   :  { %9320 = vmatpush1.bf16.msra.mxu0 %v12243_v3 }
 0xbcf   :  { %9321 = vmatprep.subr.bf16.mxu0 %v12251_v10 }
 0xbd2   :  { %9322 = vmatpush1.bf16.msra.mxu0 %v12249_v57 }
 0xbd3   :  { %9323 = vmatprep.subr.bf16.mxu0 %v12257_v7 }
 0xbd6   :  { %9324 = vmatpush1.bf16.msra.mxu0 %v12255_v39 }
 0xbd7   :  { %9325 = vmatprep.subr.bf16.mxu0 %v12263_v41 }
 0xbda   :  { %9326 = vmatpush1.bf16.msra.mxu0 %v12261_v44 }
 0xbdb   :  { %9327 = vmatprep.subr.bf16.mxu0 %v12269_v17 }
 0xbde   :  { %9328 = vmatpush1.bf16.msra.mxu0 %v12267_v0 }
 0xbdf   :  { %9329 = vmatprep.subr.bf16.mxu0 %v12275_v8 }
 0xbe2   :  { %9330 = vmatpush1.bf16.msra.mxu0 %v12273_v9 }
 0xbe3   :  { %9331 = vmatprep.subr.bf16.mxu0 %v12281_v37 }
 0xbe6   :  { %9332 = vmatpush1.bf16.msra.mxu0 %v12279_v38 }
 0xbe7   :  { %9333 = vmatprep.subr.bf16.mxu0 %v12287_v50 }
 0xbea   :  { %9334 = vmatpush1.bf16.msra.mxu0 %v12285_v54 }
 0xbeb   :  { %9335 = vmatprep.subr.bf16.mxu0 %v12293_v61 }
 0xbee   :  { %9336 = vmatpush1.bf16.msra.mxu0 %v12291_v22 }
 0xbef   :  { %9337 = vmatprep.subr.bf16.mxu0 %v12299_v26 }
 0xbf2   :  { %9338 = vmatpush1.bf16.msra.mxu0 %v12297_v28 }
 0xbf3   :  { %9339 = vmatprep.subr.bf16.mxu0 %v12305_v51 }
 0xbf6   :  { %9340 = vmatpush1.bf16.msra.mxu0 %v12303_v58 }
 0xc90   :  { %v8166_v36 = vpop.f32.mrb[128].mxu1  ;;  %v8252_v60 = vpop.f32.mrb[28].mxu0 }
 0xc91   :  { %v10953_v21 = vadd.f32 %v8166_v36, %v7432_v14  ;;  %v10957_v49 = vadd.f32 %v8252_v60, %v7440_v63  ;;  %v8168_v53 = vpop.f32.mrb[129].mxu1  ;;  %v8254_v29 = vpop.f32.mrb[29].mxu0  ;;  %v12234_v36 = vld [vmem:[%s15815_s16 + $0x60] ss:$16 sps:$4 sm:$0xff]  }
 0xc92   :  { %v10954_v48 = vadd.f32 %v8168_v53, %v7436_v31  ;;  %v10958_v32 = vadd.f32 %v8254_v29, %v7444_v35  ;;  %v8170_v24 = vpop.f32.mrb[130].mxu1  ;;  %v8256_v25 = vpop.f32.mrb[30].mxu0  ;;  %v12240_v60 = vld [vmem:[%s15815_s16 + $0x80] ss:$16 sps:$4 sm:$0xff]   ;;  %v12272_v29 = vld [vmem:[%s15815_s16 + $0x124] ss:$16 sps:$4 sm:$0xff]  }
 0xc93   :  { %v8261_v42 = vmax.f32 %v10953_v21, 0.0  ;;  %v8263_v27 = vmax.f32 %v10957_v49, 0.0  ;;  %v10955_v12 = vadd.f32 %v8170_v24, %v7432_v14  ;;  %v10959_v34 = vadd.f32 %v8256_v25, %v7440_v63  ;;  %v8172_v13 = vpop.f32.mrb[131].mxu1  ;;  %v8258_v52 = vpop.f32.mrb[31].mxu0  ;;  %v12216_v14 = vld [vmem:[%s15815_s16] ss:$16 sps:$4 sm:$0xff]  }
 0xc94   :  { %v8262_v55 = vmax.f32 %v10954_v48, 0.0  ;;  %v8264_v46 = vmax.f32 %v10958_v32, 0.0  ;;  %v10956_v6 = vadd.f32 %v8172_v13, %v7436_v31  ;;  %v10960_v33 = vadd.f32 %v8258_v52, %v7444_v35  ;;  %v12224_v63 = vld [vmem:[%s15815_s16 + $0x24] ss:$16 sps:$4 sm:$0xff]   ;;  %v12228_v31 = vld [vmem:[%s15815_s16 + $0x40] ss:$16 sps:$4 sm:$0xff]  }
 0xc95   :  { %v8290_v11 = vmul.f32 %v8273_v47, %v8261_v42  ;;  %v8292_v62 = vmul.f32 %v8281_v16, %v8263_v27  ;;  %v8265_v1 = vmax.f32 %v10955_v12, 0.0  ;;  %v8267_v3 = vmax.f32 %v10959_v34, 0.0  ;;  %v12236_v35 = vld [vmem:[%s15815_s16 + $0x64] ss:$16 sps:$4 sm:$0xff]   ;;  %v12252_v21 = vld [vmem:[%s15815_s16 + $0xc0] ss:$16 sps:$4 sm:$0xff]  }
 0xc96   :  { %v8291_v10 = vmul.f32 %v8277_v18, %v8262_v55  ;;  %v8293_v57 = vmul.f32 %v8285_v19, %v8264_v46  ;;  %v8266_v7 = vmax.f32 %v10956_v6, 0.0  ;;  %v8268_v39 = vmax.f32 %v10960_v33, 0.0  ;;  %v12258_v49 = vld [vmem:[%s15815_s16 + $0xe0] ss:$16 sps:$4 sm:$0xff]   ;;  %v12290_v25 = vld [vmem:[%s15815_s16 + $0x184] ss:$16 sps:$4 sm:$0xff]  }
 0xc97   :  { %v8294_v41 = vmul.f32 %v8273_v47, %v8265_v1  ;;  %v8296_v44 = vmul.f32 %v8281_v16, %v8267_v3  ;;  %v8319_v8 = vadd.f32 %v8302_v23, %v8290_v11  ;;  %v8321_v9 = vadd.f32 %v8310_v56, %v8292_v62  ;;  %v12242_v47 = vld [vmem:[%s15815_s16 + $0x84] ss:$16 sps:$4 sm:$0xff]   ;;  %v12264_v53 = vld [vmem:[%s15815_s16 + $0x100] ss:$16 sps:$4 sm:$0xff]   ;;  %v12311_v55 = vld [vmem:[%s15815_s16 + $0x1ec] ss:$16 sps:$4 sm:$0xff]  }
 0xc98   :  { %v8295_v17 = vmul.f32 %v8277_v18, %v8266_v7  ;;  %v8297_v0 = vmul.f32 %v8285_v19, %v8268_v39  ;;  %v8320_v50 = vadd.f32 %v8306_v30, %v8291_v10  ;;  %v8322_v54 = vadd.f32 %v8314_v20, %v8293_v57  ;;  %v12248_v16 = vld [vmem:[%s15815_s16 + $0xa4] ss:$16 sps:$4 sm:$0xff]   ;;  %v12246_v18 = vld [vmem:[%s15815_s16 + $0xa0] ss:$16 sps:$4 sm:$0xff]   ;;  %v12309_v6 = vld [vmem:[%s15815_s16 + $0x1e8] ss:$16 sps:$4 sm:$0xff]   ;;  %9341 = vmatprep.subr.bf16.mxu0 %v12311_v55 }
 0xc99   :  { %v8323_v37 = vadd.f32 %v8302_v23, %v8294_v41  ;;  %v8325_v38 = vadd.f32 %v8310_v56, %v8296_v44  ;;  %v12254_v19 = vld [vmem:[%s15815_s16 + $0xc4] ss:$16 sps:$4 sm:$0xff]   ;;  %v12270_v48 = vld [vmem:[%s15815_s16 + $0x120] ss:$16 sps:$4 sm:$0xff]   ;;  %9342 = vmatpush1.bf16.msra.mxu0 %v12309_v6  ;;  %v12317_v11 = vld [vmem:[%s15815_s16 + $0x20c] ss:$16 sps:$4 sm:$0xff]  }
 0xc9a   :  { %v8324_v61 = vadd.f32 %v8306_v30, %v8295_v17  ;;  %v8326_v22 = vadd.f32 %v8314_v20, %v8297_v0  ;;  %v12260_v23 = vld [vmem:[%s15815_s16 + $0xe4] ss:$16 sps:$4 sm:$0xff]   ;;  %v12276_v32 = vld [vmem:[%s15815_s16 + $0x140] ss:$16 sps:$4 sm:$0xff]   ;;  %9354 = vmatprep.subr.bf16.mxu0 %v12317_v11  ;;  %v12315_v41 = vld [vmem:[%s15815_s16 + $0x208] ss:$16 sps:$4 sm:$0xff]  }
 0xc9b   :  { %v8329_v26 = vpack.c.bf16 %v8323_v37, %v8319_v8  ;;  %v8331_v28 = vpack.c.bf16 %v8325_v38, %v8321_v9  ;;  %v12266_v56 = vld [vmem:[%s15815_s16 + $0x104] ss:$16 sps:$4 sm:$0xff]   ;;  %v12282_v24 = vld [vmem:[%s15815_s16 + $0x160] ss:$16 sps:$4 sm:$0xff]   ;;  %v12323_v17 = vld [vmem:[%s15815_s16 + $0x22c] ss:$16 sps:$4 sm:$0xff]  }
 0xc9c   :  { %v8330_v51 = vpack.c.bf16 %v8324_v61, %v8320_v50  ;;  %v8332_v58 = vpack.c.bf16 %v8326_v22, %v8322_v54  ;;  %v12278_v30 = vld [vmem:[%s15815_s16 + $0x144] ss:$16 sps:$4 sm:$0xff]   ;;  %v12288_v42 = vld [vmem:[%s15815_s16 + $0x180] ss:$16 sps:$4 sm:$0xff]   ;;  %v12321_v8 = vld [vmem:[%s15815_s16 + $0x228] ss:$16 sps:$4 sm:$0xff]  }
 0xc9d   :  { %v12284_v20 = vld [vmem:[%s15815_s16 + $0x164] ss:$16 sps:$4 sm:$0xff]   ;;  %v12294_v12 = vld [vmem:[%s15815_s16 + $0x1a0] ss:$16 sps:$4 sm:$0xff]   ;;  %v12329_v38 = vld [vmem:[%s15815_s16 + $0x24c] ss:$16 sps:$4 sm:$0xff]  }
 0xc9e   :  { %8341 = vmatprep.subr.bf16.mxu1 %v8330_v51  ;;  %v12296_v27 = vld [vmem:[%s15815_s16 + $0x1a4] ss:$16 sps:$4 sm:$0xff]   ;;  %v12300_v13 = vld [vmem:[%s15815_s16 + $0x1c0] ss:$16 sps:$4 sm:$0xff]   ;;  %v12383_v55 = vld [vmem:[%s15815_s16 + $0x36c] ss:$16 sps:$4 sm:$0xff]  }
 0xc9f   :  { %8342 = vmatpush1.bf16.msra.mxu1 %v8329_v26  ;;  %v12302_v34 = vld [vmem:[%s15815_s16 + $0x1c4] ss:$16 sps:$4 sm:$0xff]   ;;  %v12306_v46 = vld [vmem:[%s15815_s16 + $0x1e0] ss:$16 sps:$4 sm:$0xff]   ;;  %v12381_v6 = vld [vmem:[%s15815_s16 + $0x368] ss:$16 sps:$4 sm:$0xff]  }
 0xca0   :  { %8384 = vmatprep.subr.bf16.mxu1 %v8332_v58  ;;  %v12308_v52 = vld [vmem:[%s15815_s16 + $0x1e4] ss:$16 sps:$4 sm:$0xff]   ;;  %v12312_v39 = vld [vmem:[%s15815_s16 + $0x200] ss:$16 sps:$4 sm:$0xff]   ;;  %v12389_v11 = vld [vmem:[%s15815_s16 + $0x38c] ss:$16 sps:$4 sm:$0xff]  }
 0xca1   :  { %v12314_v33 = vld [vmem:[%s15815_s16 + $0x204] ss:$16 sps:$4 sm:$0xff]   ;;  %v12318_v0 = vld [vmem:[%s15815_s16 + $0x220] ss:$16 sps:$4 sm:$0xff]  }
 0xca2   :  { %10319 = vmatmul.mubr.msk.bf16.vlgmr.msra.gmra.mrb[132].mxu1 %vm5101_vm2, %v12215_v59  ;;  %v12320_v44 = vld [vmem:[%s15815_s16 + $0x224] ss:$16 sps:$4 sm:$0xff]   ;;  %v12324_v26 = vld [vmem:[%s15815_s16 + $0x240] ss:$16 sps:$4 sm:$0xff]  }
 0xca3   :  { %8385 = vmatpush1.bf16.msra.mxu1 %v8331_v28  ;;  %8416 = vmatprep.mubr.bf16.mxu1 %v12408_v43  ;;  %v12230_v43 = vld [vmem:[%s15815_s16 + $0x44] ss:$16 sps:$4 sm:$0xff]   ;;  %v12327_v28 = vld [vmem:[%s15815_s16 + $0x248] ss:$16 sps:$4 sm:$0xff]  }
 0xca4   :  { %9225 = vmatprep.subr.bf16.mxu1 %v12218_v2  ;;  %v12326_v37 = vld [vmem:[%s15815_s16 + $0x244] ss:$16 sps:$4 sm:$0xff]   ;;  %v12330_v2 = vld [vmem:[%s15815_s16 + $0x260] ss:$16 sps:$4 sm:$0xff]  }
 0xca5   :  { %v12332_v58 = vld [vmem:[%s15815_s16 + $0x264] ss:$16 sps:$4 sm:$0xff]  }
 0xcaa   :  { %10320 = vmatmul.mubr.msk.bf16.vlgmr.msra.gmra.mrb[136].mxu1 %vm5101_vm2, %v12215_v59  ;;  %v12335_v59 = vld [vmem:[%s15815_s16 + $0x26c] ss:$16 sps:$4 sm:$0xff]  }
 0xcab   :  { %9226 = vmatpush1.bf16.msra.mxu1 %v12216_v14  ;;  %v12333_v14 = vld [vmem:[%s15815_s16 + $0x268] ss:$16 sps:$4 sm:$0xff]  }
 0xcac   :  { %9227 = vmatprep.subr.bf16.mxu1 %v12224_v63  ;;  %v12338_v63 = vld [vmem:[%s15815_s16 + $0x284] ss:$16 sps:$4 sm:$0xff]  }
 0xcaf   :  { %9228 = vmatpush1.bf16.msra.mxu1 %v12222_v4  ;;  %v12341_v4 = vld [vmem:[%s15815_s16 + $0x28c] ss:$16 sps:$4 sm:$0xff]  }
 0xcb0   :  { %9229 = vmatprep.subr.bf16.mxu1 %v12230_v43  ;;  %v12336_v43 = vld [vmem:[%s15815_s16 + $0x280] ss:$16 sps:$4 sm:$0xff]  }
 0xcb3   :  { %9230 = vmatpush1.bf16.msra.mxu1 %v12228_v31  ;;  %v12339_v31 = vld [vmem:[%s15815_s16 + $0x288] ss:$16 sps:$4 sm:$0xff]  }
 0xcb4   :  { %9231 = vmatprep.subr.bf16.mxu1 %v12236_v35  ;;  %v12344_v35 = vld [vmem:[%s15815_s16 + $0x2a4] ss:$16 sps:$4 sm:$0xff]  }
 0xcb7   :  { %9232 = vmatpush1.bf16.msra.mxu1 %v12234_v36  ;;  %v12347_v36 = vld [vmem:[%s15815_s16 + $0x2ac] ss:$16 sps:$4 sm:$0xff]  }
 0xcb8   :  { %9233 = vmatprep.subr.bf16.mxu1 %v12242_v47  ;;  %v12342_v47 = vld [vmem:[%s15815_s16 + $0x2a0] ss:$16 sps:$4 sm:$0xff]  }
 0xcbb   :  { %9234 = vmatpush1.bf16.msra.mxu1 %v12240_v60  ;;  %v12345_v60 = vld [vmem:[%s15815_s16 + $0x2a8] ss:$16 sps:$4 sm:$0xff]  }
 0xcbc   :  { %9235 = vmatprep.subr.bf16.mxu1 %v12248_v16  ;;  %v12350_v16 = vld [vmem:[%s15815_s16 + $0x2c4] ss:$16 sps:$4 sm:$0xff]  }
 0xcbf   :  { %9236 = vmatpush1.bf16.msra.mxu1 %v12246_v18  ;;  %v12353_v18 = vld [vmem:[%s15815_s16 + $0x2cc] ss:$16 sps:$4 sm:$0xff]  }
 0xcc0   :  { %9237 = vmatprep.subr.bf16.mxu1 %v12254_v19  ;;  %v12348_v19 = vld [vmem:[%s15815_s16 + $0x2c0] ss:$16 sps:$4 sm:$0xff]  }
 0xcc3   :  { %9238 = vmatpush1.bf16.msra.mxu1 %v12252_v21  ;;  %v12351_v21 = vld [vmem:[%s15815_s16 + $0x2c8] ss:$16 sps:$4 sm:$0xff]  }
 0xcc4   :  { %9239 = vmatprep.subr.bf16.mxu1 %v12260_v23  ;;  %v12356_v23 = vld [vmem:[%s15815_s16 + $0x2e4] ss:$16 sps:$4 sm:$0xff]  }
 0xcc7   :  { %9240 = vmatpush1.bf16.msra.mxu1 %v12258_v49  ;;  %v12359_v49 = vld [vmem:[%s15815_s16 + $0x2ec] ss:$16 sps:$4 sm:$0xff]  }
 0xcc8   :  { %9241 = vmatprep.subr.bf16.mxu1 %v12266_v56  ;;  %v12354_v56 = vld [vmem:[%s15815_s16 + $0x2e0] ss:$16 sps:$4 sm:$0xff]  }
 0xccb   :  { %9242 = vmatpush1.bf16.msra.mxu1 %v12264_v53  ;;  %v12357_v53 = vld [vmem:[%s15815_s16 + $0x2e8] ss:$16 sps:$4 sm:$0xff]  }
 0xccc   :  { %9243 = vmatprep.subr.bf16.mxu1 %v12272_v29  ;;  %v12362_v29 = vld [vmem:[%s15815_s16 + $0x304] ss:$16 sps:$4 sm:$0xff]  }
 0xccf   :  { %9244 = vmatpush1.bf16.msra.mxu1 %v12270_v48  ;;  %v12365_v48 = vld [vmem:[%s15815_s16 + $0x30c] ss:$16 sps:$4 sm:$0xff]  }
 0xcd0   :  { %9245 = vmatprep.subr.bf16.mxu1 %v12278_v30  ;;  %v12360_v30 = vld [vmem:[%s15815_s16 + $0x300] ss:$16 sps:$4 sm:$0xff]  }
 0xcd3   :  { %9246 = vmatpush1.bf16.msra.mxu1 %v12276_v32  ;;  %v12363_v32 = vld [vmem:[%s15815_s16 + $0x308] ss:$16 sps:$4 sm:$0xff]  }
 0xcd4   :  { %9247 = vmatprep.subr.bf16.mxu1 %v12284_v20  ;;  %v12368_v20 = vld [vmem:[%s15815_s16 + $0x324] ss:$16 sps:$4 sm:$0xff]  }
 0xcd7   :  { %9248 = vmatpush1.bf16.msra.mxu1 %v12282_v24  ;;  %v12371_v24 = vld [vmem:[%s15815_s16 + $0x32c] ss:$16 sps:$4 sm:$0xff]  }
 0xcd8   :  { %9249 = vmatprep.subr.bf16.mxu1 %v12290_v25  ;;  %v12366_v25 = vld [vmem:[%s15815_s16 + $0x320] ss:$16 sps:$4 sm:$0xff]  }
 0xcdb   :  { %9250 = vmatpush1.bf16.msra.mxu1 %v12288_v42  ;;  %v12369_v42 = vld [vmem:[%s15815_s16 + $0x328] ss:$16 sps:$4 sm:$0xff]  }
 0xcdc   :  { %9251 = vmatprep.subr.bf16.mxu1 %v12296_v27  ;;  %v12374_v27 = vld [vmem:[%s15815_s16 + $0x344] ss:$16 sps:$4 sm:$0xff]  }
 0xcdf   :  { %9252 = vmatpush1.bf16.msra.mxu1 %v12294_v12  ;;  %v12377_v12 = vld [vmem:[%s15815_s16 + $0x34c] ss:$16 sps:$4 sm:$0xff]  }
 0xce0   :  { %9253 = vmatprep.subr.bf16.mxu1 %v12302_v34  ;;  %v12372_v34 = vld [vmem:[%s15815_s16 + $0x340] ss:$16 sps:$4 sm:$0xff]  }
 0xce3   :  { %9254 = vmatpush1.bf16.msra.mxu1 %v12300_v13  ;;  %v12375_v13 = vld [vmem:[%s15815_s16 + $0x348] ss:$16 sps:$4 sm:$0xff]  }
 0xce4   :  { %9255 = vmatprep.subr.bf16.mxu1 %v12308_v52  ;;  %v12380_v52 = vld [vmem:[%s15815_s16 + $0x364] ss:$16 sps:$4 sm:$0xff]  }
 0xce7   :  { %9256 = vmatpush1.bf16.msra.mxu1 %v12306_v46  ;;  %v12378_v46 = vld [vmem:[%s15815_s16 + $0x360] ss:$16 sps:$4 sm:$0xff]  }
 0xce8   :  { %9268 = vmatprep.subr.bf16.mxu1 %v12314_v33  ;;  %v12386_v33 = vld [vmem:[%s15815_s16 + $0x384] ss:$16 sps:$4 sm:$0xff]  }
 0xd75   :  { %v8375_v62 = vpop.f32.mrb[132].mxu1 }
 0xd76   :  { %v8377_v1 = vpop.f32.mrb[133].mxu1 }
 0xd77   :  { %v8379_v3 = vpop.f32.mrb[134].mxu1 }
 0xd78   :  { %v8427_v10 = vpack.c.bf16 %v8379_v3, %v8375_v62  ;;  %v8381_v57 = vpop.f32.mrb[135].mxu1  ;;  %v12384_v62 = vld [vmem:[%s15815_s16 + $0x380] ss:$16 sps:$4 sm:$0xff]   ;;  %v12392_v3 = vld [vmem:[%s15815_s16 + $0x3a4] ss:$16 sps:$4 sm:$0xff]  }
 0xd79   :  { %v8428_v7 = vpack.c.bf16 %v8381_v57, %v8377_v1  ;;  %v12387_v1 = vld [vmem:[%s15815_s16 + $0x388] ss:$16 sps:$4 sm:$0xff]   ;;  %v12390_v57 = vld [vmem:[%s15815_s16 + $0x3a0] ss:$16 sps:$4 sm:$0xff]  }
 0xd7b   :  { %9257 = vmatprep.mubr.bf16.mxu1 %v8428_v7  ;;  %9343 = vmatprep.mubr.bf16.mxu0 %v8428_v7  ;;  %v12393_v7 = vld [vmem:[%s15815_s16 + $0x3a8] ss:$16 sps:$4 sm:$0xff]  }
 0xd7c   :  { %9258 = vmatmul.mubr.bf16.vlgmr.msra.gmra.mrb[140].mxu1 %v8427_v10  ;;  %9344 = vmatmul.mubr.bf16.vlgmr.msra.gmra.mrb[32].mxu0 %v8427_v10  ;;  %v12395_v10 = vld [vmem:[%s15815_s16 + $0x3ac] ss:$16 sps:$4 sm:$0xff]  }
 0xd7d   :  { %9269 = vmatpush1.bf16.msra.mxu1 %v12312_v39  ;;  %9355 = vmatpush1.bf16.msra.mxu0 %v12315_v41  ;;  %v8418_v9 = vpop.f32.mrb[136].mxu1  ;;  %v12398_v39 = vld [vmem:[%s15815_s16 + $0x3c4] ss:$16 sps:$4 sm:$0xff]   ;;  %v12401_v41 = vld [vmem:[%s15815_s16 + $0x3cc] ss:$16 sps:$4 sm:$0xff]  }
 0xd7e   :  { %9270 = vmatprep.subr.bf16.mxu1 %v12320_v44  ;;  %9356 = vmatprep.subr.bf16.mxu0 %v12323_v17  ;;  %v8420_v50 = vpop.f32.mrb[137].mxu1  ;;  %v12396_v44 = vld [vmem:[%s15815_s16 + $0x3c0] ss:$16 sps:$4 sm:$0xff]   ;;  %v12399_v17 = vld [vmem:[%s15815_s16 + $0x3c8] ss:$16 sps:$4 sm:$0xff]  }
 0xd7f   :  { %v8422_v54 = vpop.f32.mrb[138].mxu1 }
 0xd80   :  { %v15589_v61 = vpack.c.bf16 %v8422_v54, %v8418_v9  ;;  %v8424_v22 = vpop.f32.mrb[139].mxu1  ;;  %v12402_v9 = vld [vmem:[%s15815_s16 + $0x3e0] ss:$16 sps:$4 sm:$0xff]  }
 0xd81   :  { %9271 = vmatpush1.bf16.msra.mxu1 %v12318_v0  ;;  %9357 = vmatpush1.bf16.msra.mxu0 %v12321_v8  ;;  %v8430_v51 = vpack.c.bf16 %v8424_v22, %v8420_v50  ;;  %v12404_v0 = vld [vmem:[%s15815_s16 + $0x3e4] ss:$16 sps:$4 sm:$0xff]   ;;  %v12407_v8 = vld [vmem:[%s15815_s16 + $0x3ec] ss:$16 sps:$4 sm:$0xff]  }
 0xd82   :  { %9272 = vmatprep.subr.bf16.mxu1 %v12326_v37  ;;  %9358 = vmatprep.subr.bf16.mxu0 %v12329_v38  ;;  %v12405_v37 = vld [vmem:[%s15815_s16 + $0x3e8] ss:$16 sps:$4 sm:$0xff]  }
 0xd83   :  { %9300 = vmatprep.mubr.bf16.mxu1 %v8430_v51  ;;  %9386 = vmatprep.mubr.bf16.mxu0 %v8430_v51  ;;  %v8559_v38 = vld [vmem:[%s15817_s17] ss:$8 sm:$0xf]  ;;  %v10321_v50 = vld [vmem:[%s15817_s17 + $0x1] ss:$8 sm:$0xf] }
 0xd84   :  { %v8568_v54 = vrot.slane %v8559_v38, %v14069_v40  ;;  %v8576_v22 = vrot.slane %v8559_v38, %v15027_v5 }
 0xd85   :  { %9273 = vmatpush1.bf16.msra.mxu1 %v12324_v26  ;;  %9359 = vmatpush1.bf16.msra.mxu0 %v12327_v28  ;;  %v10322_v26 = vld [vmem:[%s15817_s17 + $0x2] ss:$8 sm:$0xf]  ;;  %v8572_v28 = vrot.slane %v8559_v38, %v14075_v45 }
 0xd86   :  { %9274 = vmatprep.subr.bf16.mxu1 %v12332_v58  ;;  %9360 = vmatprep.subr.bf16.mxu0 %v12335_v59  ;;  %v9409_v58 = vrot.slane %v10321_v50, %v14069_v40 }
 0xd89   :  { %9275 = vmatpush1.bf16.msra.mxu1 %v12330_v2  ;;  %9361 = vmatpush1.bf16.msra.mxu0 %v12333_v14  ;;  %v9417_v2 = vrot.slane %v10321_v50, %v15027_v5  ;;  %v9413_v14 = vrot.slane %v10321_v50, %v14075_v45 }
 0xd8a   :  { %9276 = vmatprep.subr.bf16.mxu1 %v12338_v63  ;;  %9362 = vmatprep.subr.bf16.mxu0 %v12341_v4  ;;  %v9421_v63 = vrot.slane %v10321_v50, %v15030_v15 }
 0xd8d   :  { %9277 = vmatpush1.bf16.msra.mxu1 %v12336_v43  ;;  %9363 = vmatpush1.bf16.msra.mxu0 %v12339_v31  ;;  %v9438_v43 = vrot.slane %v10322_v26, %v14069_v40 }
 0xd8e   :  { %9278 = vmatprep.subr.bf16.mxu1 %v12344_v35  ;;  %9364 = vmatprep.subr.bf16.mxu0 %v12347_v36  ;;  %v9446_v35 = vrot.slane %v10322_v26, %v15027_v5 }
 0xd91   :  { %9279 = vmatpush1.bf16.msra.mxu1 %v12342_v47  ;;  %9365 = vmatpush1.bf16.msra.mxu0 %v12345_v60 }
 0xd92   :  { %9280 = vmatprep.subr.bf16.mxu1 %v12350_v16  ;;  %9366 = vmatprep.subr.bf16.mxu0 %v12353_v18  ;;  %v9442_v16 = vrot.slane %v10322_v26, %v14075_v45 }
 0xd95   :  { %9281 = vmatpush1.bf16.msra.mxu1 %v12348_v19  ;;  %9367 = vmatpush1.bf16.msra.mxu0 %v12351_v21  ;;  %v9450_v19 = vrot.slane %v10322_v26, %v15030_v15 }
 0xd96   :  { %9282 = vmatprep.subr.bf16.mxu1 %v12356_v23  ;;  %9368 = vmatprep.subr.bf16.mxu0 %v12359_v49 }
 0xd99   :  { %9283 = vmatpush1.bf16.msra.mxu1 %v12354_v56  ;;  %9369 = vmatpush1.bf16.msra.mxu0 %v12357_v53 }
 0xd9a   :  { %9284 = vmatprep.subr.bf16.mxu1 %v12362_v29  ;;  %9370 = vmatprep.subr.bf16.mxu0 %v12365_v48 }
 0xd9d   :  { %9285 = vmatpush1.bf16.msra.mxu1 %v12360_v30  ;;  %9371 = vmatpush1.bf16.msra.mxu0 %v12363_v32 }
 0xd9e   :  { %9286 = vmatprep.subr.bf16.mxu1 %v12368_v20  ;;  %9372 = vmatprep.subr.bf16.mxu0 %v12371_v24 }
 0xda1   :  { %9287 = vmatpush1.bf16.msra.mxu1 %v12366_v25  ;;  %9373 = vmatpush1.bf16.msra.mxu0 %v12369_v42 }
 0xda2   :  { %9288 = vmatprep.subr.bf16.mxu1 %v12374_v27  ;;  %9374 = vmatprep.subr.bf16.mxu0 %v12377_v12 }
 0xda5   :  { %9289 = vmatpush1.bf16.msra.mxu1 %v12372_v34  ;;  %9375 = vmatpush1.bf16.msra.mxu0 %v12375_v13 }
 0xda6   :  { %9290 = vmatprep.subr.bf16.mxu1 %v12380_v52  ;;  %9376 = vmatprep.subr.bf16.mxu0 %v12383_v55 }
 0xda9   :  { %9291 = vmatpush1.bf16.msra.mxu1 %v12378_v46  ;;  %9377 = vmatpush1.bf16.msra.mxu0 %v12381_v6 }
 0xdaa   :  { %9292 = vmatprep.subr.bf16.mxu1 %v12386_v33  ;;  %9378 = vmatprep.subr.bf16.mxu0 %v12389_v11 }
 0xdad   :  { %9293 = vmatpush1.bf16.msra.mxu1 %v12384_v62  ;;  %9379 = vmatpush1.bf16.msra.mxu0 %v12387_v1 }
 0xdae   :  { %9294 = vmatprep.subr.bf16.mxu1 %v12392_v3  ;;  %9380 = vmatprep.subr.bf16.mxu0 %v12395_v10 }
 0xdb1   :  { %9295 = vmatpush1.bf16.msra.mxu1 %v12390_v57  ;;  %9381 = vmatpush1.bf16.msra.mxu0 %v12393_v7 }
 0xdb2   :  { %9296 = vmatprep.subr.bf16.mxu1 %v12398_v39  ;;  %9382 = vmatprep.subr.bf16.mxu0 %v12401_v41 }
 0xdb5   :  { %9297 = vmatpush1.bf16.msra.mxu1 %v12396_v44  ;;  %9383 = vmatpush1.bf16.msra.mxu0 %v12399_v17 }
 0xdb6   :  { %9298 = vmatprep.subr.bf16.mxu1 %v12404_v0  ;;  %9384 = vmatprep.subr.bf16.mxu0 %v12407_v8 }
 0xdb9   :  { %9299 = vmatpush1.bf16.msra.mxu1 %v12402_v9  ;;  %9385 = vmatpush1.bf16.msra.mxu0 %v12405_v37 }
 0xdbc   :  { %9301 = vmatmul.mubr.bf16.vlgmr.msra.gmra.mrb[140].mxu1 %v15589_v61  ;;  %9387 = vmatmul.mubr.bf16.vlgmr.msra.gmra.mrb[32].mxu0 %v15589_v61  ;;  %v8580_v61 = vrot.slane %v8559_v38, %v15030_v15 }
 0xe8f   :  { %v9302_v51 = vpop.f32.mrb[140].mxu1  ;;  %v9388_v59 = vpop.f32.mrb[32].mxu0 }
 0xe90   :  { %v10961_v4 = vadd.f32 %v9302_v51, %v8568_v54  ;;  %v10965_v31 = vadd.f32 %v9388_v59, %v8576_v22  ;;  %v9304_v36 = vpop.f32.mrb[141].mxu1  ;;  %v9390_v47 = vpop.f32.mrb[33].mxu0 }
 0xe91   :  { %v10962_v60 = vadd.f32 %v9304_v36, %v8572_v28  ;;  %v10966_v18 = vadd.f32 %v9390_v47, %v8580_v61  ;;  %v9306_v21 = vpop.f32.mrb[142].mxu1  ;;  %v9392_v23 = vpop.f32.mrb[34].mxu0 }
 0xe92   :  { %v9397_v49 = vmax.f32 %v10961_v4, 0.0  ;;  %v9399_v56 = vmax.f32 %v10965_v31, 0.0  ;;  %v10963_v53 = vadd.f32 %v9306_v21, %v8568_v54  ;;  %v10967_v29 = vadd.f32 %v9392_v23, %v8576_v22  ;;  %v9308_v48 = vpop.f32.mrb[143].mxu1  ;;  %v9394_v30 = vpop.f32.mrb[35].mxu0 }
 0xe93   :  { %v9398_v40 = vmax.f32 %v10962_v60, 0.0  ;;  %v9400_v32 = vmax.f32 %v10966_v18, 0.0  ;;  %v10964_v20 = vadd.f32 %v9308_v48, %v8572_v28  ;;  %v10968_v5 = vadd.f32 %v9394_v30, %v8580_v61 }
 0xe94   :  { %v9426_v24 = vmul.f32 %v9409_v58, %v9397_v49  ;;  %v9428_v25 = vmul.f32 %v9417_v2, %v9399_v56  ;;  %v9401_v42 = vmax.f32 %v10963_v53, 0.0  ;;  %v9403_v27 = vmax.f32 %v10967_v29, 0.0 }
 0xe95   :  { %v9427_v45 = vmul.f32 %v9413_v14, %v9398_v40  ;;  %v9429_v12 = vmul.f32 %v9421_v63, %v9400_v32  ;;  %v9402_v34 = vmax.f32 %v10964_v20, 0.0  ;;  %v9404_v15 = vmax.f32 %v10968_v5, 0.0 }
 0xe96   :  { %v9455_v13 = vadd.f32 %v9438_v43, %v9426_v24  ;;  %v9457_v52 = vadd.f32 %v9446_v35, %v9428_v25  ;;  %v9430_v55 = vmul.f32 %v9409_v58, %v9401_v42  ;;  %v9432_v46 = vmul.f32 %v9417_v2, %v9403_v27 }
 0xe97   :  { %v9456_v6 = vadd.f32 %v9442_v16, %v9427_v45  ;;  %v9458_v33 = vadd.f32 %v9450_v19, %v9429_v12  ;;  %v9431_v11 = vmul.f32 %v9413_v14, %v9402_v34  ;;  %v9433_v62 = vmul.f32 %v9421_v63, %v9404_v15 }
 0xe98   :  { %9463 = vst [vmem:[%s15818_s18] sm:$0xff] %v9455_v13  ;;  %9465 = vst [vmem:[%s15818_s18 + $0x10] sm:$0xff] %v9457_v52  ;;  %v9459_v1 = vadd.f32 %v9438_v43, %v9430_v55  ;;  %v9461_v3 = vadd.f32 %v9446_v35, %v9432_v46 }
 0xe99   :  { %9464 = vst [vmem:[%s15818_s18 + $0x8] sm:$0xff] %v9456_v6  ;;  %9466 = vst [vmem:[%s15818_s18 + $0x18] sm:$0xff] %v9458_v33  ;;  %v9460_v10 = vadd.f32 %v9442_v16, %v9431_v11  ;;  %v9462_v57 = vadd.f32 %v9450_v19, %v9433_v62 }
 0xe9a   :  { %9467 = vst [vmem:[%s15818_s18 + $0x20] sm:$0xff] %v9459_v1  ;;  %9469 = vst [vmem:[%s15818_s18 + $0x30] sm:$0xff] %v9461_v3 }
 0xe9b   :  { %9468 = vst [vmem:[%s15818_s18 + $0x28] sm:$0xff] %v9460_v10  ;;  %9470 = vst [vmem:[%s15818_s18 + $0x38] sm:$0xff] %v9462_v57 }

</bundles_post_ra>
